<compile_context>
chip_gen: v5e
topology: v5e:2x2
jax: 0.10.0
libtpu: 0.0.40
codegen_flags: <defaults>
</compile_context>

<pallas_src>
import jax
import jax.numpy as jnp
from jax.experimental import pallas as pl
from jax.experimental.pallas import tpu as pltpu


def _round_up(x: int, m: int) -> int:
    return ((x + m - 1) // m) * m


def _make_kernel(d: int, num_fc2: int):
    """Kernel for a fixed d and a fixed number of fc2 layers."""

    def kernel(*refs):
        # refs = (x, w1, b1, [w2_l, b2_l]*num_fc2, w3, out)
        x_ref = refs[0]
        w1_ref, b1_ref = refs[1], refs[2]
        fc2_refs = refs[3:3 + 2 * num_fc2]
        w3_ref = refs[3 + 2 * num_fc2]
        out_ref = refs[4 + 2 * num_fc2]

        x = x_ref[...]                       # [tn, d]   (current batch tile)
        w1 = w1_ref[...]                     # [d, d*m1] (fc1_pos - fc1_neg, transposed)
        b1 = b1_ref[...]                     # [1, d*m1]
        w3 = w3_ref[...]                     # [d, m_last]
        tn = x.shape[0]
        m_last = w3.shape[1]

        # --- fc1 for all d zero-column variants: one matmul + rank-1 corrections ---
        base = jnp.dot(x, w1, preferred_element_type=jnp.float32) + b1      # [tn, F1]
        # h_j = base - x[:, j] (outer) w1[j, :]   (zeroing column j of x removes this term)
        h_blocks = [base - x[:, j:j + 1] * w1[j:j + 1, :] for j in range(d)]
        h = jnp.concatenate(h_blocks, axis=0)                               # [d*tn, F1]

        # --- fc2 chain: one big-M matmul + one sigmoid per layer over the stack ---
        for l in range(num_fc2):
            w_l = fc2_refs[2 * l][...]        # [in_l, out_l]
            b_l = fc2_refs[2 * l + 1][...]    # [1, out_l]
            h = jax.nn.sigmoid(h)
            h = jnp.dot(h, w_l, preferred_element_type=jnp.float32) + b_l

        # --- fc3: per-column dot with its own weight row, lane-dense [d, tn] output ---
        h3 = h.reshape(d, tn, m_last)                       # [d, tn, m_last]
        out = jnp.sum(h3 * w3[:, None, :], axis=-1)         # [d, tn]
        out_ref[...] = out

    return kernel


def scalable_dag_v2_1_forward(x, params, tile_n=None):
    """x: [n, d] float32.  params: dict with fc1/fc2/fc3 weights (PyTorch conventions)."""
    n, d = x.shape
    x = x.astype(jnp.float32)

    # Glue: fold fc1_pos - fc1_neg, transpose to [in, out], biases to [1, out].
    w1 = (params["fc1_pos_w"] - params["fc1_neg_w"]).T.astype(jnp.float32)          # [d, d*m1]
    b1 = (params["fc1_pos_b"] - params["fc1_neg_b"])[None, :].astype(jnp.float32)   # [1, d*m1]
    fc2 = [(w[0].astype(jnp.float32), b[0][None, :].astype(jnp.float32))
           for (w, b) in params["fc2"]]                                             # [in,out],[1,out]
    w3 = jnp.concatenate([w[0:1, :] for w in params["fc3"]],
                         axis=0).astype(jnp.float32)                                # [d, m_last]

    # --- batch tiling ---------------------------------------------------------
    # Activations are tiny at these widths; 128 rows/tile keeps VMEM use well below
    # even v7x's 32 MiB scoped default while giving the pipeline work to overlap.
    if tile_n is None:
        tile_n = 128
    if n <= tile_n:
        tile_n = max(8, _round_up(n, 8))          # single tile (block == full dim)
    else:
        tile_n = _round_up(tile_n, 128)           # multi-tile => lane dim must be 128-aligned
    n_pad = _round_up(n, tile_n)
    if n_pad != n:
        x = jnp.pad(x, ((0, n_pad - n), (0, 0)))
    num_tiles = n_pad // tile_n

    flat_inputs = [x, w1, b1]
    for (w, b) in fc2:
        flat_inputs += [w, b]
    flat_inputs.append(w3)

    # BlockSpecs: x / out tiled over the batch grid; weights use constant index
    # maps so they are DMA'd once and stay VMEM-resident across all grid steps.
    def _const(shape):
        nd = len(shape)
        return pl.BlockSpec(shape, lambda i, _nd=nd: (0,) * _nd)

    in_specs = [pl.BlockSpec((tile_n, d), lambda i: (i, 0)),
                _const(w1.shape), _const(b1.shape)]
    for (w, b) in fc2:
        in_specs += [_const(w.shape), _const(b.shape)]
    in_specs.append(_const(w3.shape))
    out_specs = pl.BlockSpec((d, tile_n), lambda i: (0, i))   # lane-dense output blocks

    # Advisory cost estimate (helps XLA overlap neighbouring HLOs).
    F1 = w1.shape[1]
    m_last = w3.shape[1]
    fc2_flops_per_row = sum(2 * w.shape[0] * w.shape[1] for (w, _) in fc2)
    flops = (2 * n_pad * d * F1                      # base fc1 matmul
             + 2 * n_pad * d * F1                    # rank-1 corrections
             + d * n_pad * fc2_flops_per_row         # stacked fc2 matmuls
             + d * n_pad * 2 * m_last)               # fc3 dot
    transcendentals = d * n_pad * sum(w.shape[0] for (w, _) in fc2)   # sigmoids
    bytes_accessed = 4 * (x.size + d * n_pad + w1.size + b1.size + w3.size
                          + sum(w.size + b.size for (w, b) in fc2))

    kernel = _make_kernel(d, len(fc2))
    out_t = pl.pallas_call(
        kernel,
        out_shape=jax.ShapeDtypeStruct((d, n_pad), jnp.float32),
        grid=(num_tiles,),
        in_specs=in_specs,
        out_specs=out_specs,
        compiler_params=pltpu.CompilerParams(
            dimension_semantics=("parallel",)),
        cost_estimate=pl.CostEstimate(flops=int(flops),
                                      transcendentals=int(transcendentals),
                                      bytes_accessed=int(bytes_accessed)),
    )(*flat_inputs)

    return out_t[:, :n].T                            # back to [n, d]


def _reference_forward(x, params):
    """Pure-JAX reference mirroring the PyTorch forward exactly."""
    n, d = x.shape
    w1 = (params["fc1_pos_w"] - params["fc1_neg_w"]).T
    b1 = params["fc1_pos_b"] - params["fc1_neg_b"]
    cols = []
    for j in range(d):
        x_j = x.at[:, j].set(0.0)
        h = x_j @ w1 + b1
        for (w, b) in params["fc2"]:
            h = jax.nn.sigmoid(h)
            h = h @ w[0] + b[0]
        col = h @ params["fc3"][j].T        # [n, 1]
        cols.append(col[:, 0])
    return jnp.stack(cols, axis=1)


def init_params(key, dims):
    """Deterministic synthetic init with the shapes implied by the module's __init__."""
    d, m1 = dims[0], dims[1]
    keys = jax.random.split(key, 16)
    ki = iter(range(16))
    p = {}
    p["fc1_pos_w"] = 0.1 * jax.random.normal(keys[next(ki)], (d * m1, d), jnp.float32)
    p["fc1_pos_b"] = 0.1 * jax.random.normal(keys[next(ki)], (d * m1,), jnp.float32)
    p["fc1_neg_w"] = 0.1 * jax.random.normal(keys[next(ki)], (d * m1, d), jnp.float32)
    p["fc1_neg_b"] = 0.1 * jax.random.normal(keys[next(ki)], (d * m1,), jnp.float32)

    # fc2: LocallyConnected(1, d*m1, dims[2]), then LC(1, dims[l+1], dims[l+2]) ...
    fc2 = []
    in_f = d * m1
    for l in range(2, len(dims)):
        out_f = dims[l]
        w = 0.1 * jax.random.normal(keys[next(ki)], (1, in_f, out_f), jnp.float32)
        b = 0.1 * jax.random.normal(keys[next(ki)], (1, out_f), jnp.float32)
        fc2.append((w, b))
        in_f = out_f
    p["fc2"] = fc2[: len(dims) - 2]

    p["fc3"] = [
        0.1 * jax.random.normal(keys[next(ki)], (1, dims[-1]), jnp.float32)
        for _ in range(d)
    ]
    return p


if __name__ == "__main__":
    dims = [4, 8, 16, 8]        # d=4, m1=8, hidden=16, m_last=8
    n = 200                     # exercises both the batch grid (2 tiles) and padding

    key = jax.random.PRNGKey(0)
    kx, kp = jax.random.split(key)
    x = jax.random.normal(kx, (n, dims[0]), jnp.float32)
    params = init_params(kp, dims)

    out = scalable_dag_v2_1_forward(x, params, tile_n=128)
    out = jax.block_until_ready(out)

    ref = _reference_forward(x, params)
    assert out.shape == (n, dims[0])
    err = float(jnp.max(jnp.abs(out - ref)))
    assert err < 1e-4, f"Pallas kernel mismatch vs reference: {err}"

    print("KERNEL_OK")
</pallas_src>

<mosaic_0001>
module attributes {stable_mosaic.version = 11 : i64} {
  func.func @kernel(%arg0: i32, %arg1: memref<128x4xf32, #tpu.memory_space<vmem>>, %arg2: memref<4x32xf32, #tpu.memory_space<vmem>>, %arg3: memref<1x32xf32, #tpu.memory_space<vmem>>, %arg4: memref<32x16xf32, #tpu.memory_space<vmem>>, %arg5: memref<1x16xf32, #tpu.memory_space<vmem>>, %arg6: memref<16x8xf32, #tpu.memory_space<vmem>>, %arg7: memref<1x8xf32, #tpu.memory_space<vmem>>, %arg8: memref<4x8xf32, #tpu.memory_space<vmem>>, %arg9: memref<4x128xf32, #tpu.memory_space<vmem>>) attributes {dimension_semantics = [#tpu.dimension_semantics<parallel>], iteration_bounds = array<i64: 2>, scalar_prefetch = 0 : i64, scratch_operands = 0 : i64, tpu.core_type = #tpu.core_type<tc>, window_params = [{transform_indices = @transform_0, window_bounds = array<i64: 128, 4>}, {pipeline_mode = #tpu.pipeline_mode<synchronous>, transform_indices = @transform_1, window_bounds = array<i64: 4, 32>}, {pipeline_mode = #tpu.pipeline_mode<synchronous>, transform_indices = @transform_2, window_bounds = array<i64: 1, 32>}, {pipeline_mode = #tpu.pipeline_mode<synchronous>, transform_indices = @transform_3, window_bounds = array<i64: 32, 16>}, {pipeline_mode = #tpu.pipeline_mode<synchronous>, transform_indices = @transform_4, window_bounds = array<i64: 1, 16>}, {pipeline_mode = #tpu.pipeline_mode<synchronous>, transform_indices = @transform_5, window_bounds = array<i64: 16, 8>}, {pipeline_mode = #tpu.pipeline_mode<synchronous>, transform_indices = @transform_6, window_bounds = array<i64: 1, 8>}, {pipeline_mode = #tpu.pipeline_mode<synchronous>, transform_indices = @transform_7, window_bounds = array<i64: 4, 8>}, {transform_indices = @transform_8, window_bounds = array<i64: 4, 128>}]} {
    %c0 = arith.constant 0 : index
    %c0_0 = arith.constant 0 : index
    %0 = vector.load %arg1[%c0, %c0_0] : memref<128x4xf32, #tpu.memory_space<vmem>>, vector<128x4xf32>
    %c0_1 = arith.constant 0 : index
    %c0_2 = arith.constant 0 : index
    %1 = vector.load %arg2[%c0_1, %c0_2] : memref<4x32xf32, #tpu.memory_space<vmem>>, vector<4x32xf32>
    %c0_3 = arith.constant 0 : index
    %c0_4 = arith.constant 0 : index
    %2 = vector.load %arg3[%c0_3, %c0_4] : memref<1x32xf32, #tpu.memory_space<vmem>>, vector<1x32xf32>
    %c0_5 = arith.constant 0 : index
    %c0_6 = arith.constant 0 : index
    %3 = vector.load %arg8[%c0_5, %c0_6] : memref<4x8xf32, #tpu.memory_space<vmem>>, vector<4x8xf32>
    %cst = arith.constant dense<0.000000e+00> : vector<128x32xf32>
    %4 = tpu.matmul %0, %1, %cst {dimension_numbers = #tpu.dot_dimension_numbers<[1], [0], [0], [1], [0, 0, 1, 1], [], []>} : vector<128x4xf32>, vector<4x32xf32>, vector<128x32xf32> -> vector<128x32xf32>
    %5 = vector.broadcast %2 : vector<1x32xf32> to vector<128x32xf32>
    %6 = arith.addf %4, %5 : vector<128x32xf32>
    %7 = vector.extract_strided_slice %0 {offsets = [0, 0], sizes = [128, 1], strides = [1, 1]} : vector<128x4xf32> to vector<128x1xf32>
    %8 = vector.extract_strided_slice %1 {offsets = [0, 0], sizes = [1, 32], strides = [1, 1]} : vector<4x32xf32> to vector<1x32xf32>
    %9 = vector.broadcast %7 : vector<128x1xf32> to vector<128x32xf32>
    %10 = vector.broadcast %8 : vector<1x32xf32> to vector<128x32xf32>
    %11 = arith.mulf %9, %10 : vector<128x32xf32>
    %12 = arith.subf %6, %11 : vector<128x32xf32>
    %13 = vector.extract_strided_slice %0 {offsets = [0, 1], sizes = [128, 1], strides = [1, 1]} : vector<128x4xf32> to vector<128x1xf32>
    %14 = vector.extract_strided_slice %1 {offsets = [1, 0], sizes = [1, 32], strides = [1, 1]} : vector<4x32xf32> to vector<1x32xf32>
    %15 = vector.broadcast %13 : vector<128x1xf32> to vector<128x32xf32>
    %16 = vector.broadcast %14 : vector<1x32xf32> to vector<128x32xf32>
    %17 = arith.mulf %15, %16 : vector<128x32xf32>
    %18 = arith.subf %6, %17 : vector<128x32xf32>
    %19 = vector.extract_strided_slice %0 {offsets = [0, 2], sizes = [128, 1], strides = [1, 1]} : vector<128x4xf32> to vector<128x1xf32>
    %20 = vector.extract_strided_slice %1 {offsets = [2, 0], sizes = [1, 32], strides = [1, 1]} : vector<4x32xf32> to vector<1x32xf32>
    %21 = vector.broadcast %19 : vector<128x1xf32> to vector<128x32xf32>
    %22 = vector.broadcast %20 : vector<1x32xf32> to vector<128x32xf32>
    %23 = arith.mulf %21, %22 : vector<128x32xf32>
    %24 = arith.subf %6, %23 : vector<128x32xf32>
    %25 = vector.extract_strided_slice %0 {offsets = [0, 3], sizes = [128, 1], strides = [1, 1]} : vector<128x4xf32> to vector<128x1xf32>
    %26 = vector.extract_strided_slice %1 {offsets = [3, 0], sizes = [1, 32], strides = [1, 1]} : vector<4x32xf32> to vector<1x32xf32>
    %27 = vector.broadcast %25 : vector<128x1xf32> to vector<128x32xf32>
    %28 = vector.broadcast %26 : vector<1x32xf32> to vector<128x32xf32>
    %29 = arith.mulf %27, %28 : vector<128x32xf32>
    %30 = arith.subf %6, %29 : vector<128x32xf32>
    %31 = tpu.concatenate %12, %18, %24, %30 in 0 : vector<128x32xf32>, vector<128x32xf32>, vector<128x32xf32>, vector<128x32xf32> -> vector<512x32xf32>
    %c0_7 = arith.constant 0 : index
    %c0_8 = arith.constant 0 : index
    %32 = vector.load %arg4[%c0_7, %c0_8] : memref<32x16xf32, #tpu.memory_space<vmem>>, vector<32x16xf32>
    %c0_9 = arith.constant 0 : index
    %c0_10 = arith.constant 0 : index
    %33 = vector.load %arg5[%c0_9, %c0_10] : memref<1x16xf32, #tpu.memory_space<vmem>>, vector<1x16xf32>
    %34 = arith.negf %31 : vector<512x32xf32>
    %35 = math.exp %34 : vector<512x32xf32>
    %cst_11 = arith.constant 1.000000e+00 : f32
    %36 = vector.broadcast %cst_11 : f32 to vector<512x32xf32>
    %37 = arith.addf %36, %35 : vector<512x32xf32>
    %38 = arith.divf %36, %37 : vector<512x32xf32>
    %cst_12 = arith.constant dense<0.000000e+00> : vector<512x16xf32>
    %39 = tpu.matmul %38, %32, %cst_12 {dimension_numbers = #tpu.dot_dimension_numbers<[1], [0], [0], [1], [0, 0, 1, 1], [], []>} : vector<512x32xf32>, vector<32x16xf32>, vector<512x16xf32> -> vector<512x16xf32>
    %40 = vector.broadcast %33 : vector<1x16xf32> to vector<512x16xf32>
    %41 = arith.addf %39, %40 : vector<512x16xf32>
    %c0_13 = arith.constant 0 : index
    %c0_14 = arith.constant 0 : index
    %42 = vector.load %arg6[%c0_13, %c0_14] : memref<16x8xf32, #tpu.memory_space<vmem>>, vector<16x8xf32>
    %c0_15 = arith.constant 0 : index
    %c0_16 = arith.constant 0 : index
    %43 = vector.load %arg7[%c0_15, %c0_16] : memref<1x8xf32, #tpu.memory_space<vmem>>, vector<1x8xf32>
    %44 = arith.negf %41 : vector<512x16xf32>
    %45 = math.exp %44 : vector<512x16xf32>
    %cst_17 = arith.constant 1.000000e+00 : f32
    %46 = vector.broadcast %cst_17 : f32 to vector<512x16xf32>
    %47 = arith.addf %46, %45 : vector<512x16xf32>
    %48 = arith.divf %46, %47 : vector<512x16xf32>
    %cst_18 = arith.constant dense<0.000000e+00> : vector<512x8xf32>
    %49 = tpu.matmul %48, %42, %cst_18 {dimension_numbers = #tpu.dot_dimension_numbers<[1], [0], [0], [1], [0, 0, 1, 1], [], []>} : vector<512x16xf32>, vector<16x8xf32>, vector<512x8xf32> -> vector<512x8xf32>
    %50 = vector.broadcast %43 : vector<1x8xf32> to vector<512x8xf32>
    %51 = arith.addf %49, %50 : vector<512x8xf32>
    %52 = vector.shape_cast %51 : vector<512x8xf32> to vector<4x128x8xf32>
    %53 = vector.shape_cast %3 : vector<4x8xf32> to vector<4x1x8xf32>
    %54 = vector.broadcast %53 : vector<4x1x8xf32> to vector<4x128x8xf32>
    %55 = arith.mulf %52, %54 : vector<4x128x8xf32>
    %cst_19 = arith.constant dense<0.000000e+00> : vector<4x128xf32>
    %56 = vector.multi_reduction <add>, %55, %cst_19 [2] : vector<4x128x8xf32> to vector<4x128xf32>
    %c0_20 = arith.constant 0 : index
    %c0_21 = arith.constant 0 : index
    %57 = vector.load %arg9[%c0_20, %c0_21] : memref<4x128xf32, #tpu.memory_space<vmem>>, vector<4x128xf32>
    tpu.vector_store %arg9[%c0_20, %c0_21], %56 {strides = array<i32>} : memref<4x128xf32, #tpu.memory_space<vmem>>, vector<4x128xf32>,
    return
  }
  func.func @transform_0(%arg0: i32) -> (i32, i32) {
    %c0_i32 = arith.constant 0 : i32
    %c0_i32_0 = arith.constant 0 : i32
    return %arg0, %c0_i32 : i32, i32
  }
  func.func @transform_1(%arg0: i32) -> (i32, i32) {
    %c0_i32 = arith.constant 0 : i32
    %c0_i32_0 = arith.constant 0 : i32
    %c0_i32_1 = arith.constant 0 : i32
    return %c0_i32, %c0_i32_0 : i32, i32
  }
  func.func @transform_2(%arg0: i32) -> (i32, i32) {
    %c0_i32 = arith.constant 0 : i32
    %c0_i32_0 = arith.constant 0 : i32
    %c0_i32_1 = arith.constant 0 : i32
    return %c0_i32, %c0_i32_0 : i32, i32
  }
  func.func @transform_3(%arg0: i32) -> (i32, i32) {
    %c0_i32 = arith.constant 0 : i32
    %c0_i32_0 = arith.constant 0 : i32
    %c0_i32_1 = arith.constant 0 : i32
    return %c0_i32, %c0_i32_0 : i32, i32
  }
  func.func @transform_4(%arg0: i32) -> (i32, i32) {
    %c0_i32 = arith.constant 0 : i32
    %c0_i32_0 = arith.constant 0 : i32
    %c0_i32_1 = arith.constant 0 : i32
    return %c0_i32, %c0_i32_0 : i32, i32
  }
  func.func @transform_5(%arg0: i32) -> (i32, i32) {
    %c0_i32 = arith.constant 0 : i32
    %c0_i32_0 = arith.constant 0 : i32
    %c0_i32_1 = arith.constant 0 : i32
    return %c0_i32, %c0_i32_0 : i32, i32
  }
  func.func @transform_6(%arg0: i32) -> (i32, i32) {
    %c0_i32 = arith.constant 0 : i32
    %c0_i32_0 = arith.constant 0 : i32
    %c0_i32_1 = arith.constant 0 : i32
    return %c0_i32, %c0_i32_0 : i32, i32
  }
  func.func @transform_7(%arg0: i32) -> (i32, i32) {
    %c0_i32 = arith.constant 0 : i32
    %c0_i32_0 = arith.constant 0 : i32
    %c0_i32_1 = arith.constant 0 : i32
    return %c0_i32, %c0_i32_0 : i32, i32
  }
  func.func @transform_8(%arg0: i32) -> (i32, i32) {
    %c0_i32 = arith.constant 0 : i32
    %c0_i32_0 = arith.constant 0 : i32
    return %c0_i32, %arg0 : i32, i32
  }
}

</mosaic_0001>

<bundles_post_ra>
// kernel: tpu_custom_call.1
= control target key start
LH: loop header
LB: loop body
LE: loop exit
PB: predicated region body
PF: predicated region fallthrough
CT: control target
= control target key end

     0   :  { %13 = vsyncpa [#allocation3], 0  ;;  %s9091_s0 = inlined_call_operand.vmem [shape: f32[256,4], index: 0, kind: input, shape index: {}]   ;;  %s9092_s1 = inlined_call_operand.vmem [shape: f32[4,32], index: 1, kind: input, shape index: {}]   ;;  %s9093_s2 = inlined_call_operand.vmem [shape: f32[1,32], index: 2, kind: input, shape index: {}]   ;;  %s9094_s3 = inlined_call_operand.vmem [shape: f32[32,16], index: 3, kind: input, shape index: {}]   ;;  %s9095_s4 = inlined_call_operand.vmem [shape: f32[1,16], index: 4, kind: input, shape index: {}]   ;;  %s9096_s5 = inlined_call_operand.vmem [shape: f32[16,8], index: 5, kind: input, shape index: {}]   ;;  %s9097_s6 = inlined_call_operand.vmem [shape: f32[1,8], index: 6, kind: input, shape index: {}]   ;;  %s9098_s7 = inlined_call_operand.vmem [shape: f32[4,8], index: 7, kind: input, shape index: {}]   ;;  %s9099_s8 = inlined_call_operand.hbm [shape: f32[4,256], index: 8, kind: output, shape index: {}]  }
   0x1   :  { %15 = vsyncpa [#allocation3 + $0x1], 0  ;;  %s5640_s27 = smov 0   ;;  %s5642_s28 = smov 0  }
   0x2   :  { %s5644_s29 = smov 0   ;;  %s5646_s30 = smov 0  }
   0x3 LB: > { %s5661_s9 = sadd.s32 4294967295, %s5589_s30   ;;  %s4656_s10 = sadd.s32 4294967294, %s5589_s30   ;;  %s5589_s30 = sphi %s5646_s30, %s9352_s30   ;;  %s5585_s29 = sphi %s5644_s29, %s9351_s29   ;;  %s5581_s28 = sphi %s5642_s28, %s9350_s28   ;;  %s5577_s27 = sphi %s5640_s27, %s9349_s27  }
   0x4   : > { %s5665_s11 = sadd.s32 1, %s5589_s30   ;;  %s201_s12 = sadd.s32 1, %s5585_s29 }
   0x5   : > { %s198_s13 = ssub.s32 %s5589_s30, %s5665_s11  ;;  %p211_p0 = scmp.ne.s32.totalorder %s5585_s29, %s5581_s28 }
   0x6   : > { %p199_p1 = scmp.eq.s32.totalorder %s198_s13, 0  ;;  %p212_p2 = scmp.eq.s32.totalorder %s5661_s9, 1 }
   0x7   : > { %p217_p3 = scmp.ne.s32.totalorder %s5581_s28, %s5577_s27  ;;  %p218_p4 = scmp.eq.s32.totalorder %s4656_s10, 1 }
   0x8   : > { %s5676_s14 = scalar_select %p199_p1, %s5585_s29, %s201_s12  }
   0x9   : > { %p5678_p5 = por %p212_p2, %p211_p0  ;;  %p5682_p6 = por %p218_p4, %p217_p3 }
   0xa   : > { %p4659_p7 = scmp.ge.s32.totalorder %s5589_s30, 1  ;;  %p266_p8 = scmp.lt.s32.totalorder %s5589_s30, 3 }
   0xc   : > { %p267_p9 = pnand %p4659_p7, %p266_p8 }
   0xe   : > { %270 = sbr.rel (%p267_p9) target bundleno = 1159 (0x487), region = 52 }
  0x13   : > { %v5691_v0 = vld [vmem:[%s9092_s1] sm:$0xf]  ;;  %vm377_vm0 = vcmask 1043456   ;;  %s4661_s19 = sshll.u32 %s5661_s9, 4  ;;  %v5591_v1 = vmov 0   ;;  %vm328_vm1 = vcmask 31744  }
  0x14   : > { %4994 = vset.pattern.permute.xlu2 %v5591_v1  ;;  %4993 = vset.pattern.permute.xlu1 %v5591_v1  ;;  %p301_p10 = scmp.lt.s32.totalorder %s4661_s19, 31  ;;  %v5592_v18 = vmov 1   ;;  %v5593_v19 = vmov 2   ;;  %v5833_v26 = vperm.slane %v5691_v0, 0  ;;  %v837_v28 = vld [vmem:[%s9094_s3 + $0x18] sm:$0xff]  ;;  %v5594_v31 = vmov 3  }
  0x15   : > { %4992 = vset.pattern.permute.xlu0 %v5591_v1  ;;  %4663 = vmatpush.msk.msra.mxu0 %vm377_vm0, %v5691_v0  ;;  %v5847_v32 = vld [vmem:[%s9093_s2] ss:$0 sm:$0xff]  ;;  %v836_v33 = vld [vmem:[%s9094_s3 + $0x10] sm:$0xff]  ;;  %v835_v35 = vld [vmem:[%s9094_s3 + $0x8] sm:$0xff]  ;;  %v5871_v44 = vperm.slane %v5691_v0, 1  ;;  %vm2058_vm2 = vcmask 261120  }
  0x16   : > { %4940 = vmatpush.msk.msra.mxu3 %vm377_vm0, %v5691_v0  ;;  %s9354_s19 = smov (!%p301_p10, %s4661_s19), 31  ;;  %2263 = vmatpush.msra.mxu1 %v837_v28  ;;  %v834_v38 = vld [vmem:[%s9094_s3] sm:$0xff]  ;;  %s297_s21 = sand.u32 1, %s5581_s28  }
  0x17   : > { %s4662_s20 = sshll.u32 %s9354_s19, 3  ;;  %s4660_s22 = sshll.u32 %s297_s21, 2 }
  0x18   : > { %s5699_s23 = scalar_lea.vmem %s9091_s0, %s4662_s20  ;;  %2264 = vmatpush.msra.mxu1 %v836_v33  ;;  %4941 = vmatpush.msrb.mxu3 %v837_v28  ;;  %s4582_s13 = scalar_lea.sflag [#allocation3], %s297_s21 }
  0x19   : > { %v5702_v2 = vld [vmem:[%s5699_s23 + $0x50] sm:$0xff]  ;;  %v5705_v3 = vld [vmem:[%s5699_s23 + $0x20] sm:$0xff]  ;;  %v5721_v6 = vld [vmem:[%s5699_s23 + $0x58] sm:$0xff] }
  0x1a   : > { %v5708_v4 = vld [vmem:[%s5699_s23 + $0x10] sm:$0xff]  ;;  %4674 = vmatmul.msk.f32.vlgmr.msra.gmra.mxu3 %vm328_vm1, %v5702_v2  ;;  %463 = vperm.xlu2 %4994, %v5705_v3   ;;  %v5714_v5 = vld [vmem:[%s5699_s23] sm:$0xff]  ;;  %v5724_v7 = vld [vmem:[%s5699_s23 + $0x28] sm:$0xff] }
  0x1b   : > { %455 = vperm.xlu1 %4993, %v5708_v4   ;;  %447 = vperm.xlu0 %4992, %v5714_v5   ;;  %v5727_v8 = vld [vmem:[%s5699_s23 + $0x18] sm:$0xff]  ;;  %v5730_v9 = vld [vmem:[%s5699_s23 + $0x8] sm:$0xff]  ;;  %v5740_v10 = vld [vmem:[%s5699_s23 + $0x60] sm:$0xff] }
  0x1c   : > { %4664 = vmatmul.msk.f32.vlgmr.msra.gmra.mxu0 %vm328_vm1, %v5714_v5  ;;  %v5743_v11 = vld [vmem:[%s5699_s23 + $0x40] sm:$0xff]  ;;  %v5746_v12 = vld [vmem:[%s5699_s23 + $0x38] sm:$0xff]  ;;  %v5749_v13 = vld [vmem:[%s5699_s23 + $0x30] sm:$0xff]  ;;  %2265 = vmatpush.msra.mxu1 %v835_v35 }
  0x1d   : > { %v5759_v14 = vld [vmem:[%s5699_s23 + $0x68] sm:$0xff]  ;;  %v5772_v16 = vld [vmem:[%s5699_s23 + $0x70] sm:$0xff]  ;;  %v5782_v17 = vld [vmem:[%s5699_s23 + $0x78] sm:$0xff]  ;;  %4942 = vmatpush.msrb.mxu3 %v836_v33 }
  0x1e   : > { %v5762_v15 = vld [vmem:[%s5699_s23 + $0x48] sm:$0xff]  ;;  %2266 = vmatpush.msra.mxu1 %v834_v38  ;;  %s4937_s23 = sshll.u32 %s5661_s9, 2  ;;  %s299_s9 = scalar_lea.vmem [#allocation2], %s4660_s22 }
  0x1f   : > { %4943 = vmatpush.msrb.mxu3 %v835_v35  ;;  %s4592_s26 = scalar_lea.hbm %s9099_s8, %s4937_s23  ;;  %s4594_s10 = sshll.u32 %s299_s9, 4  ;;  %s4595_s10 = int_to_ptr.vmem [resolvable:$true] %s4594_s10 }
  0x20   : > { %s4596_s12 = sshll.u32 %s4592_s26, 4  ;;  %s5547_s22 = scalar_lea.hbm %s9099_s8, 8  ;;  %s4597_s12 = int_to_ptr.hbm [resolvable:$true] %s4596_s12 }
  0x21   : > { %4944 = vmatpush.msrb.mxu3 %v834_v38  ;;  %s5541_s17 = sshra.s32 %s4597_s12, 4  ;;  %s5542_s17 = int_to_ptr.hbm [resolvable:$true] %s5541_s17 }
  0x22   : > { %4675 = vmatmul.msk.f32.gmra.mxu3 %vm328_vm1, %v5721_v6  ;;  %467 = vperm.xlu2 %4994, %v5724_v7   ;;  %s5543_s18 = scalar_lea.hbm %s5542_s17, 4  ;;  %p5548_p0 = scmp.lt.s32.totalorder %s5542_s17, %s9099_s8 }
  0x23   : > { %459 = vperm.xlu1 %4993, %v5727_v8   ;;  %451 = vperm.xlu0 %4992, %v5730_v9   ;;  %p5544_p11 = scmp.ne.s32.totalorder %s5542_s17, %s5543_s18  ;;  %p5549_p1 = scmp.lt.s32.totalorder %s5547_s22, %s5543_s18 }
  0x24   : > { %4665 = vmatmul.msk.f32.gmra.mxu0 %vm328_vm1, %v5730_v9 }
  0x25   : > { %p5545_p12 = pnand %p5544_p11, %p5678_p5  ;;  %p5550_p2 = por %p5549_p1, %p5548_p0 }
  0x27   : > { %p5546_p13 = pneg %p5545_p12 }
  0x29   : > { %p5551_p3 = pnand %p5550_p2, %p5546_p13 }
  0x2a   : > { %4676 = vmatmul.msk.f32.gmra.mxu3 %vm328_vm1, %v5740_v10  ;;  %479 = vperm.xlu2 %4994, %v5743_v11  }
  0x2b   : > { %475 = vperm.xlu1 %4993, %v5746_v12   ;;  %471 = vperm.xlu0 %4992, %v5749_v13  }
  0x2c   : > { %4666 = vmatmul.msk.f32.gmra.mxu0 %vm328_vm1, %v5708_v4 }
  0x32   : > { %4677 = vmatmul.msk.f32.gmra.mxu3 %vm328_vm1, %v5759_v14  ;;  %491 = vperm.xlu2 %4994, %v5721_v6  }
  0x33   : > { %487 = vperm.xlu1 %4993, %v5702_v2   ;;  %483 = vperm.xlu0 %4992, %v5762_v15  }
  0x34   : > { %4667 = vmatmul.msk.f32.gmra.mxu0 %vm328_vm1, %v5727_v8 }
  0x3a   : > { %4678 = vmatmul.msk.f32.gmra.mxu3 %vm328_vm1, %v5772_v16  ;;  %503 = vperm.xlu2 %4994, %v5772_v16  }
  0x3b   : > { %499 = vperm.xlu1 %4993, %v5759_v14   ;;  %495 = vperm.xlu0 %4992, %v5740_v10  }
  0x3c   : > { %4668 = vmatmul.msk.f32.gmra.mxu0 %vm328_vm1, %v5705_v3 }
  0x42   : > { %4679 = vmatmul.msk.f32.gmra.mxu3 %vm328_vm1, %v5782_v17  ;;  %4996 = vset.pattern.permute.xlu2 %v5592_v18 }
  0x43   : > { %4995 = vset.pattern.permute.xlu1 %v5592_v18  ;;  %507 = vperm.xlu0 %4992, %v5782_v17  }
  0x44   : > { %4669 = vmatmul.msk.f32.gmra.mxu0 %vm328_vm1, %v5724_v7  ;;  %548 = vperm.xlu2 %4996, %v5730_v9  }
  0x45   : > { %544 = vperm.xlu1 %4995, %v5714_v5  }
  0x4b   : > { %4997 = vset.pattern.permute.xlu0 %v5592_v18 }
  0x4c   : > { %4670 = vmatmul.msk.f32.gmra.mxu0 %vm328_vm1, %v5749_v13  ;;  %560 = vperm.xlu2 %4996, %v5705_v3  }
  0x4d   : > { %556 = vperm.xlu1 %4995, %v5727_v8   ;;  %552 = vperm.xlu0 %4997, %v5708_v4  }
  0x54   : > { %4671 = vmatmul.msk.f32.gmra.mxu0 %vm328_vm1, %v5746_v12  ;;  %568 = vperm.xlu2 %4996, %v5749_v13  }
  0x55   : > { %564 = vperm.xlu1 %4995, %v5724_v7   ;;  %572 = vperm.xlu0 %4997, %v5746_v12  }
  0x5c   : > { %4672 = vmatmul.msk.f32.gmra.mxu0 %vm328_vm1, %v5743_v11  ;;  %580 = vperm.xlu2 %4996, %v5762_v15  }
  0x5d   : > { %576 = vperm.xlu1 %4995, %v5743_v11   ;;  %584 = vperm.xlu0 %4997, %v5702_v2  }
  0x64   : > { %4673 = vmatmul.msk.f32.gmra.mxu0 %vm328_vm1, %v5762_v15  ;;  %592 = vperm.xlu2 %4996, %v5740_v10  }
  0x65   : > { %588 = vperm.xlu1 %4995, %v5721_v6   ;;  %596 = vperm.xlu0 %4997, %v5759_v14  }
  0x6c   : > { %604 = vperm.xlu2 %4996, %v5782_v17  }
  0x6d   : > { %600 = vperm.xlu1 %4995, %v5772_v16   ;;  %4998 = vset.pattern.permute.xlu0 %v5593_v19 }
  0x6e   : > { %641 = vperm.xlu0 %4998, %v5714_v5  }
  0x74   : > { %5000 = vset.pattern.permute.xlu2 %v5593_v19  ;;  %v5814_v20 = vpop.permute.xlu2 %463 }
  0x75   : > { %4999 = vset.pattern.permute.xlu1 %v5593_v19  ;;  %649 = vperm.xlu2 %5000, %v5708_v4  }
  0x76   : > { %645 = vperm.xlu1 %4999, %v5730_v9   ;;  %661 = vperm.xlu0 %4998, %v5724_v7  }
  0x7c   : > { %v5819_v21 = vpop.permute.xlu2 %467 }
  0x7d   : > { %653 = vperm.xlu2 %5000, %v5727_v8  }
  0x7e   : > { %657 = vperm.xlu1 %4999, %v5705_v3   ;;  %673 = vperm.xlu0 %4998, %v5743_v11  }
  0x84   : > { %v5824_v22 = vpop.permute.xlu2 %479 }
  0x85   : > { %669 = vperm.xlu2 %5000, %v5746_v12  }
  0x86   : > { %665 = vperm.xlu1 %4999, %v5749_v13   ;;  %685 = vperm.xlu0 %4998, %v5721_v6  }
  0x8c   : > { %v492_v23 = vpop.permute.xlu2 %491 }
  0x8d   : > { %v456_v24 = vpop.permute.xlu1 %455  ;;  %681 = vperm.xlu2 %5000, %v5702_v2   ;;  %v448_v25 = vpop.permute.xlu0 %447  ;;  %v522_v60 = vmul.f32 %v5833_v26, %v492_v23 }
  0x8e   : > { %677 = vperm.xlu1 %4999, %v5762_v15   ;;  %697 = vperm.xlu0 %4998, %v5772_v16   ;;  %v511_v34 = vmul.f32 %v5833_v26, %v448_v25  ;;  %v513_v62 = vmul.f32 %v5833_v26, %v456_v24 }
  0x94   : > { %v5835_v27 = vpop.permute.xlu2 %503 }
  0x95   : > { %v5840_v29 = vpop.permute.xlu1 %459  ;;  %693 = vperm.xlu2 %5000, %v5759_v14   ;;  %v452_v30 = vpop.permute.xlu0 %451 }
  0x96   : > { %689 = vperm.xlu1 %4999, %v5740_v10   ;;  %5002 = vset.pattern.permute.xlu0 %v5594_v31  ;;  %v512_v47 = vmul.f32 %v5833_v26, %v452_v30 }
  0x97   : > { %742 = vperm.xlu0 %5002, %v5730_v9  }
  0x99   : > { %v398_v36 = vpop.f32.mrf.mxu0 }
  0x9a   : > { %v5858_v37 = vadd.f32 %v5847_v32, %v398_v36 }
  0x9c   : > { %v527_v39 = vsub.f32 %v5858_v37, %v511_v34 }
  0x9d   : > { %v5864_v40 = vpop.permute.xlu1 %475  ;;  %5001 = vset.pattern.permute.xlu2 %v5594_v31  ;;  %v5866_v41 = vpop.permute.xlu0 %471 }
  0x9e   : > { %v4680_v42 = vmul.f32 -1.442695, %v527_v39  ;;  %701 = vperm.xlu1 %4999, %v5782_v17   ;;  %v428_v43 = vpop.f32.mrf.mxu3  ;;  %738 = vperm.xlu2 %5001, %v5714_v5   ;;  %v549_v45 = vpop.permute.xlu2 %548  ;;  %v514_v39 = vmul.f32 %v5833_v26, %v5840_v29 }
  0x9f   : > { %762 = vperm.xlu0 %5002, %v5749_v13   ;;  %v609_v48 = vmul.f32 %v5871_v44, %v549_v45  ;;  %v5880_v50 = vadd.f32 %v5847_v32, %v428_v43  ;;  %v515_v43 = vmul.f32 %v5833_v26, %v5814_v20  ;;  %v5928_v45 = vmul.f32 %v5833_v26, %v5819_v21 }
  0xa0   : > { %5007 = vpow2.f32 %v4680_v42 }
  0xa1   : > { %v401_v46 = vpop.f32.mrf.mxu0  ;;  %9161 = vst [vmem:[#allocation5_spill] sm:$0xff] %v5880_v50 }
  0xa2   : > { %v5877_v49 = vadd.f32 %v5847_v32, %v401_v46 }
  0xa4   : > { %v528_v51 = vsub.f32 %v5877_v49, %v512_v47  ;;  %v625_v55 = vsub.f32 %v5877_v49, %v609_v48 }
  0xa5   : > { %v488_v52 = vpop.permute.xlu1 %487  ;;  %v5883_v53 = vpop.permute.xlu0 %483 }
  0xa6   : > { %v5008_v54 = vpop.eup %5007  ;;  %v4681_v56 = vmul.f32 -1.442695, %v528_v51  ;;  %v521_v57 = vmul.f32 %v5833_v26, %v488_v52  ;;  %5003 = vset.pattern.permute.xlu1 %v5594_v31  ;;  %v431_v58 = vpop.f32.mrf.mxu3  ;;  %750 = vperm.xlu2 %5001, %v5727_v8   ;;  %v4697_v8 = vmul.f32 -1.442695, %v625_v55 }
  0xa7   : > { %v561_v59 = vpop.permute.xlu2 %560  ;;  %v5889_v61 = vadd.f32 1.0, %v5008_v54  ;;  %746 = vperm.xlu1 %5003, %v5708_v4   ;;  %774 = vperm.xlu0 %5002, %v5762_v15   ;;  %v5896_v1 = vadd.f32 %v5847_v32, %v431_v58 }
  0xa8   : > { %5009 = vpow2.f32 %v4681_v56  ;;  %v537_v63 = vsub.f32 %v5880_v50, %v521_v57  ;;  %v5932_v51 = vmul.f32 %v5871_v44, %v561_v59 }
  0xa9   : > { %5011 = vrcp.f32 %v5889_v61  ;;  %v404_v5 = vpop.f32.mrf.mxu0  ;;  %v538_v4 = vsub.f32 %v5896_v1, %v522_v60  ;;  %v1104_v38 = vand.u32 2147483647, %v5889_v61  ;;  %v1106_v42 = vand.u32 2147483648, %v5889_v61 }
  0xaa   : > { %v5900_v9 = vadd.f32 %v5847_v32, %v404_v5  ;;  %v4690_v13 = vmul.f32 -1.442695, %v537_v63  ;;  %5013 = vpow2.f32 %v4697_v8  ;;  %vm1100_vm4 = vweird.f32 %v5889_v61 }
  0xab   : > { %v4691_v33 = vmul.f32 -1.442695, %v538_v4  ;;  %vm5938_vm5 = vcmp.eq.f32.partialorder %v1104_v38, 8.507059e+37  ;;  %v1107_v60 = vor.u32 1.1754944e-38, %v1106_v42 }
  0xac   : > { %v529_v15 = vsub.f32 %v5900_v9, %v513_v62  ;;  %5015 = vpow2.f32 %v4690_v13 }
  0xad   : > { %v500_v18 = vpop.permute.xlu1 %499  ;;  %v496_v19 = vpop.permute.xlu0 %495 }
  0xae   : > { %v5010_v23 = vpop.eup %5009  ;;  %v4682_v24 = vmul.f32 -1.442695, %v529_v15  ;;  %v434_v25 = vpop.f32.mrf.mxu3  ;;  %758 = vperm.xlu2 %5001, %v5724_v7   ;;  %v523_v35 = vmul.f32 %v5833_v26, %v496_v19  ;;  %v524_v55 = vmul.f32 %v5833_v26, %v500_v18 }
  0xaf   : > { %v5905_v28 = vpop.permute.xlu2 %568  ;;  %v5012_v30 = vpop.eup %5011  ;;  %v5907_v31 = vadd.f32 1.0, %v5010_v23  ;;  %754 = vperm.xlu1 %5003, %v5705_v3   ;;  %786 = vperm.xlu0 %5002, %v5740_v10   ;;  %v5915_v7 = vadd.f32 %v5847_v32, %v434_v25 }
  0xb0   : > { %5017 = vpow2.f32 %v4682_v24  ;;  %v1096_v34 = vmul.f32 %v5012_v30, %v5889_v61  ;;  %v5014_v46 = vpop.eup %5013  ;;  %vm1101_vm3 = vweird.f32 %v5012_v30 }
  0xb1   : > { %5019 = vrcp.f32 %v5907_v31  ;;  %9162 = vst [vmem:[#allocation6_spill] sm:$0xff] %v5915_v7  ;;  %v407_v36 = vpop.f32.mrf.mxu0  ;;  %v539_v52 = vsub.f32 %v5915_v7, %v523_v35  ;;  %v5948_v63 = vadd.f32 1.0, %v5014_v46  ;;  %vm1102_vm6 = vmor %vm1100_vm4, %vm1101_vm3  ;;  %v5979_v35 = vmul.f32 %v5833_v26, %v5864_v40 }
  0xb2   : > { %v5921_v3 = vadd.f32 %v5847_v32, %v407_v36  ;;  %v1097_v10 = vsub.f32 1.0, %v1096_v34  ;;  %5021 = vpow2.f32 %v4691_v33  ;;  %v5016_v29 = vpop.eup %5015  ;;  %v525_v34 = vmul.f32 %v5833_v26, %v5835_v27 }
  0xb3   : > { %v4692_v19 = vmul.f32 -1.442695, %v539_v52  ;;  %v5968_v24 = vadd.f32 1.0, %v5016_v29  ;;  %vm1115_vm7 = vweird.f32 %v5907_v31  ;;  %v1119_v27 = vand.u32 2147483647, %v5907_v31 }
  0xb4   : > { %v530_v47 = vsub.f32 %v5921_v3, %v514_v39  ;;  %v1098_v48 = vmul.f32 %v5012_v30, %v1097_v10 }
  0xb5   : > { %v5935_v54 = vpop.permute.xlu0 %507  ;;  %vm1120_vm10 = vcmp.eq.f32.partialorder %v1119_v27, 8.507059e+37 }
  0xb6   : > { %v5018_v21 = vpop.eup %5017  ;;  %v4683_v56 = vmul.f32 -1.442695, %v530_v47  ;;  %v437_v57 = vpop.f32.mrf.mxu3  ;;  %770 = vperm.xlu2 %5001, %v5743_v11   ;;  %v1099_v59 = vadd.f32 %v5012_v30, %v1098_v48  ;;  %v1121_v11 = vand.u32 2147483648, %v5907_v31 }
  0xb7   : > { %v5944_v58 = vpop.permute.xlu2 %580  ;;  %v5946_v62 = vpop.eup %5019  ;;  %v5950_v5 = vadd.f32 1.0, %v5018_v21  ;;  %v5953_v8 = vadd.f32 %v5847_v32, %v437_v57  ;;  %766 = vperm.xlu1 %5003, %v5746_v12   ;;  %798 = vperm.xlu0 %5002, %v5782_v17  }
  0xb8   : > { %v545_v13 = vpop.permute.xlu1 %544  ;;  %5023 = vpow2.f32 %v4683_v56  ;;  %v1103_v15 = vsel %vm1102_vm6, %v5012_v30, %v1099_v59  ;;  %v1111_v18 = vmul.f32 %v5946_v62, %v5907_v31  ;;  %v5022_v61 = vpop.eup %5021  ;;  %vm1116_vm8 = vweird.f32 %v5946_v62 }
  0xb9   : > { %9165 = vst [vmem:[#allocation7_spill] sm:$0xff] %v5953_v8  ;;  %v608_v4 = vmul.f32 %v5871_v44, %v545_v13  ;;  %5025 = vrcp.f32 %v5950_v5  ;;  %v540_v12 = vsub.f32 %v5953_v8, %v524_v55  ;;  %v410_v23 = vpop.f32.mrf.mxu0  ;;  %v1108_v17 = vsel %vm5938_vm5, %v1107_v60, %v1103_v15  ;;  %vm6009_vm9 = vmor %vm1115_vm7, %vm1116_vm8 }
  0xba   : > { %v5972_v33 = vadd.f32 %v5847_v32, %v410_v23  ;;  %4744 = vmatmul.msk.f32.vlgmr.msra.gmra.mxu1 %vm2058_vm2, %v1108_v17  ;;  %v1112_v30 = vsub.f32 1.0, %v1111_v18  ;;  %5027 = vrcp.f32 %v5948_v63  ;;  %v5987_v42 = vadd.f32 1.0, %v5022_v61 }
  0xbb   : > { %v624_v25 = vsub.f32 %v5858_v37, %v608_v4  ;;  %v4693_v36 = vmul.f32 -1.442695, %v540_v12  ;;  %5029 = vpow2.f32 %v4692_v19  ;;  %v1122_v29 = vor.u32 1.1754944e-38, %v1121_v11 }
  0xbc   : > { %v531_v38 = vsub.f32 %v5972_v33, %v515_v43  ;;  %v628_v39 = vsub.f32 %v5972_v33, %v5932_v51  ;;  %v1113_v10 = vmul.f32 %v5946_v62, %v1112_v30  ;;  %5031 = vrcp.f32 %v5968_v24 }
  0xbd   : > { %v4696_v46 = vmul.f32 -1.442695, %v624_v25  ;;  %5033 = vpow2.f32 %v4693_v36  ;;  %v6036_v30 = vmul.f32 %v5871_v44, %v5905_v28  ;;  %vm1130_vm11 = vweird.f32 %v5950_v5 }
  0xbe   : > { %v5024_v40 = vpop.eup %5023  ;;  %v4684_v47 = vmul.f32 -1.442695, %v531_v38  ;;  %v440_v48 = vpop.f32.mrf.mxu3  ;;  %782 = vperm.xlu2 %5001, %v5721_v6   ;;  %v1114_v56 = vadd.f32 %v5946_v62, %v1113_v10  ;;  %v4700_v57 = vmul.f32 -1.442695, %v628_v39  ;;  %v526_v38 = vmul.f32 %v5833_v26, %v5935_v54 }
  0xbf   : > { %v593_v43 = vpop.permute.xlu2 %592  ;;  %v5993_v51 = vpop.eup %5025  ;;  %v5995_v52 = vadd.f32 1.0, %v5024_v40  ;;  %v5998_v20 = vadd.f32 %v5847_v32, %v440_v48  ;;  %778 = vperm.xlu1 %5003, %v5702_v2   ;;  %v1134_v28 = vand.u32 2147483647, %v5950_v5 }
  0xc0   : > { %v557_v21 = vpop.permute.xlu1 %556  ;;  %v553_v55 = vpop.permute.xlu0 %552  ;;  %v620_v60 = vmul.f32 %v5871_v44, %v593_v43  ;;  %v1118_v4 = vsel %vm6009_vm9, %v5946_v62, %v1114_v56  ;;  %v1126_v15 = vmul.f32 %v5993_v51, %v5950_v5  ;;  %v6031_v62 = vmul.f32 %v5833_v26, %v5866_v41 }
  0xc1   : > { %9166 = vst [vmem:[#allocation8_spill] sm:$0xff] %v5998_v20  ;;  %v611_v59 = vmul.f32 %v5871_v44, %v557_v21  ;;  %v610_v6 = vmul.f32 %v5871_v44, %v553_v55  ;;  %5035 = vrcp.f32 %v5995_v52  ;;  %v541_v2 = vsub.f32 %v5998_v20, %v525_v34  ;;  %v413_v11 = vpop.f32.mrf.mxu0  ;;  %v6020_v18 = vpop.eup %5027 }
  0xc2   : > { %9169 = vst [vmem:[#allocation9_spill] sm:$0xff] %v6020_v18  ;;  %5037 = vpow2.f32 %v4684_v47  ;;  %v5030_v12 = vpop.eup %5029  ;;  %v6025_v17 = vadd.f32 %v5847_v32, %v413_v11  ;;  %v1123_v61 = vsel %vm1120_vm10, %v1122_v29, %v1118_v4  ;;  %v636_v34 = vsub.f32 %v5915_v7, %v620_v60 }
  0xc3   : > { %v627_v31 = vsub.f32 %v5921_v3, %v611_v59  ;;  %v626_v19 = vsub.f32 %v5900_v9, %v610_v6  ;;  %5039 = vpow2.f32 %v4696_v46  ;;  %v4694_v23 = vmul.f32 -1.442695, %v541_v2  ;;  %v6027_v25 = vpop.eup %5031  ;;  %4745 = vmatmul.msk.f32.gmra.mxu1 %vm2058_vm2, %v1123_v61 }
  0xc4   : > { %5041 = vrcp.f32 %v5987_v42  ;;  %v5034_v36 = vpop.eup %5033  ;;  %v1127_v10 = vsub.f32 1.0, %v1126_v15  ;;  %v6042_v27 = vadd.f32 1.0, %v5030_v12  ;;  %v532_v54 = vsub.f32 %v6025_v17, %v5928_v45 }
  0xc5   : > { %5043 = vpow2.f32 %v4700_v57  ;;  %v4699_v39 = vmul.f32 -1.442695, %v627_v31  ;;  %v4698_v41 = vmul.f32 -1.442695, %v626_v19  ;;  %v4708_v55 = vmul.f32 -1.442695, %v636_v34 }
  0xc6   : > { %v443_v40 = vpop.f32.mrf.mxu3  ;;  %794 = vperm.xlu2 %5001, %v5772_v16   ;;  %5045 = vpow2.f32 %v4694_v23  ;;  %v1128_v16 = vmul.f32 %v5993_v51, %v1127_v10  ;;  %vm1131_vm12 = vweird.f32 %v5993_v51  ;;  %v1136_v56 = vand.u32 2147483648, %v5950_v5 }
  0xc7   : > { %v605_v46 = vpop.permute.xlu2 %604  ;;  %v6047_v47 = vpop.eup %5035  ;;  %v6052_v48 = vadd.f32 %v5847_v32, %v443_v40  ;;  %790 = vperm.xlu1 %5003, %v5759_v14   ;;  %v6061_v57 = vperm.slane %v5691_v0, 2  ;;  %5047 = vpow2.f32 %v4699_v39  ;;  %v6071_v2 = vadd.f32 1.0, %v5034_v36  ;;  %vm1132_vm14 = vmor %vm1130_vm11, %vm1131_vm12 }
  0xc8   : > { %v565_v43 = vpop.permute.xlu1 %564  ;;  %v6055_v29 = vpop.permute.xlu0 %572  ;;  %v1141_v60 = vmul.f32 %v6047_v47, %v5995_v52  ;;  %5049 = vrcp.f32 %v6042_v27  ;;  %vm6076_vm13 = vcmp.eq.f32.partialorder %v1134_v28, 8.507059e+37  ;;  %v4685_v15 = vmul.f32 -1.442695, %v532_v54 }
  0xc9   : > { %v5038_v21 = vpop.eup %5037  ;;  %v613_v14 = vmul.f32 %v5871_v44, %v565_v43  ;;  %v416_v6 = vpop.f32.mrf.mxu0  ;;  %5051 = vpow2.f32 %v4698_v41  ;;  %v542_v31 = vsub.f32 %v6052_v48, %v526_v38  ;;  %v1129_v19 = vadd.f32 %v5993_v51, %v1128_v16 }
  0xca   : > { %v5040_v45 = vpop.eup %5039  ;;  %v6063_v59 = vadd.f32 1.0, %v5038_v21  ;;  %v6074_v11 = vadd.f32 %v5847_v32, %v416_v6  ;;  %5053 = vpow2.f32 %v4708_v55  ;;  %v623_v23 = vmul.f32 %v5871_v44, %v605_v46 }
  0xcb   : > { %v6068_v13 = vpop.eup %5041  ;;  %v6082_v12 = vadd.f32 1.0, %v5040_v45  ;;  %v1137_v61 = vor.u32 1.1754944e-38, %v1136_v56  ;;  %v629_v36 = vsub.f32 %v6025_v17, %v613_v14  ;;  %v1133_v38 = vsel %vm1132_vm14, %v5993_v51, %v1129_v19 }
  0xcc   : > { %v5044_v4 = vpop.eup %5043  ;;  %5055 = vrcp.f32 %v6063_v59  ;;  %v1142_v39 = vsub.f32 1.0, %v1141_v60  ;;  %v533_v41 = vsub.f32 %v6074_v11, %v6031_v62  ;;  %v4695_v46 = vmul.f32 -1.442695, %v542_v31 }
  0xcd   : > { %v5046_v34 = vpop.eup %5045  ;;  %5057 = vrcp.f32 %v6071_v2  ;;  %v6093_v10 = vadd.f32 1.0, %v5044_v4  ;;  %v1138_v5 = vsel %vm6076_vm13, %v1137_v61, %v1133_v38  ;;  %vm1145_vm15 = vweird.f32 %v5995_v52 }
  0xce   : > { %v5048_v40 = vpop.eup %5047  ;;  %5059 = vpow2.f32 %v4685_v15  ;;  %4746 = vmatmul.msk.f32.gmra.mxu1 %vm2058_vm2, %v1138_v5  ;;  %v1143_v51 = vmul.f32 %v6047_v47, %v1142_v39  ;;  %v6104_v16 = vadd.f32 1.0, %v5046_v34  ;;  %v639_v62 = vsub.f32 %v6052_v48, %v623_v23 }
  0xcf   : > { %9172 = vst [vmem:[#allocation10_spill] sm:$0xff] %v6093_v10  ;;  %v650_v28 = vpop.permute.xlu2 %649  ;;  %v6102_v43 = vpop.eup %5049  ;;  %vm1146_vm0 = vweird.f32 %v6047_v47  ;;  %v1149_v55 = vand.u32 2147483647, %v5995_v52  ;;  %5061 = vrcp.f32 %v6082_v12  ;;  %v4701_v45 = vmul.f32 -1.442695, %v629_v36 }
  0xd0   : > { %v577_v54 = vpop.permute.xlu1 %576  ;;  %v585_v21 = vpop.permute.xlu0 %584  ;;  %v630_v14 = vsub.f32 %v6074_v11, %v6036_v30  ;;  %v1144_v60 = vadd.f32 %v6047_v47, %v1143_v51  ;;  %5063 = vrcp.f32 %v6093_v10  ;;  %v6114_v4 = vadd.f32 1.0, %v5048_v40  ;;  %vm6127_vm1 = vmor %vm1145_vm15, %vm1146_vm0 }
  0xd1   : > { %v5052_v56 = vpop.eup %5051  ;;  %v419_v6 = vpop.f32.mrf.mxu0  ;;  %v4686_v15 = vmul.f32 -1.442695, %v533_v41  ;;  %v707_v31 = vmul.f32 %v6061_v57, %v650_v28  ;;  %5065 = vpow2.f32 %v4695_v46  ;;  %v618_v23 = vmul.f32 %v5871_v44, %v585_v21 }
  0xd2   : > { %v5054_v0 = vpop.eup %5053  ;;  %9173 = vst [vmem:[#allocation11_spill] sm:$0xff] %v6114_v4  ;;  %v6121_v61 = vadd.f32 %v5847_v32, %v419_v6  ;;  %v1151_v34 = vand.u32 2147483648, %v5995_v52  ;;  %5067 = vrcp.f32 %v6104_v16  ;;  %v6135_v38 = vadd.f32 1.0, %v5052_v56 }
  0xd3   : > { %v6117_v19 = vpop.eup %5055  ;;  %v4711_v39 = vmul.f32 -1.442695, %v639_v62  ;;  %v1148_v41 = vsel %vm6127_vm1, %v6047_v47, %v1144_v60  ;;  %v6140_v40 = vadd.f32 1.0, %v5054_v0  ;;  %5069 = vpow2.f32 %v4701_v45 }
  0xd4   : > { %v6132_v36 = vpop.eup %5057  ;;  %9176 = vst [vmem:[#allocation12_spill] sm:$0xff] %v6135_v38  ;;  %v4702_v46 = vmul.f32 -1.442695, %v630_v14  ;;  %v1152_v28 = vor.u32 1.1754944e-38, %v1151_v34  ;;  %5071 = vpow2.f32 %v4686_v15  ;;  %v723_v52 = vsub.f32 %v5900_v9, %v707_v31 }
  0xd5   : > { %v5060_v5 = vpop.eup %5059  ;;  %9177 = vst [vmem:[#allocation13_spill] sm:$0xff] %v6140_v40  ;;  %vm1150_vm3 = vcmp.eq.f32.partialorder %v1149_v55, 8.507059e+37  ;;  %v1156_v51 = vmul.f32 %v6117_v19, %v6063_v59  ;;  %5073 = vrcp.f32 %v6114_v4  ;;  %v634_v62 = vsub.f32 %v5880_v50, %v618_v23 }
  0xd6   : > { %v6145_v21 = vpop.eup %5061  ;;  %v534_v47 = vsub.f32 %v6121_v61, %v5979_v35  ;;  %v1153_v56 = vsel %vm1150_vm3, %v1152_v28, %v1148_v41  ;;  %5075 = vrcp.f32 %v6135_v38  ;;  %v6154_v6 = vadd.f32 1.0, %v5060_v5 }
  0xd7   : > { %v6151_v14 = vpop.eup %5063  ;;  %v615_v55 = vmul.f32 %v5871_v44, %v6055_v29  ;;  %4747 = vmatmul.msk.f32.gmra.mxu1 %vm2058_vm2, %v1153_v56  ;;  %v654_v60 = vpop.permute.xlu2 %653  ;;  %v1157_v15 = vsub.f32 1.0, %v1156_v51  ;;  %5077 = vpow2.f32 %v4711_v39  ;;  %v6160_v35 = vmul.f32 %v5871_v44, %v577_v54 }
  0xd8   : > { %v589_v45 = vpop.permute.xlu1 %588  ;;  %9178 = vst [vmem:[#allocation14_spill] sm:$0xff] %v6151_v14  ;;  %v597_v0 = vpop.permute.xlu0 %596  ;;  %v519_v34 = vmul.f32 %v5833_v26, %v5824_v22  ;;  %5079 = vrcp.f32 %v6140_v40  ;;  %v4714_v41 = vmul.f32 -1.442695, %v723_v52  ;;  %v4706_v28 = vmul.f32 -1.442695, %v634_v62 }
  0xd9   : > { %v5066_v31 = vpop.eup %5065  ;;  %v422_v23 = vpop.f32.mrf.mxu0  ;;  %5081 = vpow2.f32 %v4702_v46  ;;  %v4687_v51 = vmul.f32 -1.442695, %v534_v47  ;;  %v1158_v39 = vmul.f32 %v6117_v19, %v1157_v15  ;;  %v631_v14 = vsub.f32 %v6121_v61, %v615_v55 }
  0xda   : > { %v6162_v30 = vpop.eup %5067  ;;  %v6168_v29 = vadd.f32 %v5847_v32, %v422_v23  ;;  %5083 = vrcp.f32 %v6154_v6  ;;  %v6172_v56 = vadd.f32 1.0, %v5066_v31  ;;  %vm1161_vm4 = vweird.f32 %v6117_v19 }
  0xdb   : > { %v5070_v5 = vpop.eup %5069  ;;  %v708_v52 = vmul.f32 %v6061_v57, %v654_v60  ;;  %v619_v23 = vmul.f32 %v5871_v44, %v589_v45  ;;  %v621_v46 = vmul.f32 %v5871_v44, %v597_v0  ;;  %5085 = vpow2.f32 %v4714_v41 }
  0xdc   : > { %v5072_v54 = vpop.eup %5071  ;;  %v632_v62 = vsub.f32 %v6168_v29, %v6160_v35  ;;  %v1159_v15 = vadd.f32 %v6117_v19, %v1158_v39  ;;  %vm1160_vm5 = vweird.f32 %v6063_v59  ;;  %v1164_v55 = vand.u32 2147483647, %v6063_v59 }
  0xdd   : > { %v6176_v22 = vpop.eup %5073  ;;  %v6188_v40 = vadd.f32 1.0, %v5072_v54  ;;  %5087 = vpow2.f32 %v4687_v51  ;;  %v535_v45 = vsub.f32 %v6168_v29, %v519_v34  ;;  %vm6193_vm6 = vmor %vm1160_vm5, %vm1161_vm4  ;;  %v1166_v0 = vand.u32 2147483648, %v6063_v59 }
  0xde   : > { %9179 = vst [vmem:[#allocation15_spill] sm:$0xff] %v6176_v22  ;;  %v6183_v47 = vpop.eup %5075  ;;  %5089 = vrcp.f32 %v6172_v56  ;;  %v6201_v39 = vadd.f32 1.0, %v5070_v5  ;;  %v1163_v51 = vsel %vm6193_vm6, %v6117_v19, %v1159_v15  ;;  %v4703_v54 = vmul.f32 -1.442695, %v631_v14 }
  0xdf   : > { %9180 = vst [vmem:[#allocation16_spill] sm:$0xff] %v6183_v47  ;;  %v5078_v31 = vpop.eup %5077  ;;  %5091 = vpow2.f32 %v4706_v28  ;;  %v724_v10 = vsub.f32 %v5921_v3, %v708_v52  ;;  %v1167_v22 = vor.u32 1.1754944e-38, %v1166_v0  ;;  %v637_v5 = vsub.f32 %v5953_v8, %v621_v46  ;;  %v670_v18 = vpop.permute.xlu2 %669 }
  0xe0   : > { %v601_v35 = vpop.permute.xlu1 %600  ;;  %v6198_v41 = vpop.eup %5079  ;;  %v6209_v38 = vadd.f32 1.0, %v5078_v31  ;;  %vm1165_vm7 = vcmp.eq.f32.partialorder %v1164_v55, 8.507059e+37  ;;  %v6215_v19 = vmul.f32 %v5871_v44, %v5944_v58  ;;  %5093 = vrcp.f32 %v6188_v40 }
  0xe1   : > { %9183 = vst [vmem:[#allocation17_spill] sm:$0xff] %v6198_v41  ;;  %v5082_v34 = vpop.eup %5081  ;;  %v642_v4 = vpop.permute.xlu0 %641  ;;  %v635_v41 = vsub.f32 %v5896_v1, %v619_v23  ;;  %v4688_v14 = vmul.f32 -1.442695, %v535_v45  ;;  %v1168_v28 = vsel %vm1165_vm7, %v1167_v22, %v1163_v51  ;;  %5095 = vrcp.f32 %v6201_v39 }
  0xe2   : > { %v425_v47 = vpop.f32.mrf.mxu0  ;;  %v6207_v59 = vpop.eup %5083  ;;  %9184 = vst [vmem:[#allocation18_spill] sm:$0xff] %v6209_v38  ;;  %v6219_v15 = vadd.f32 1.0, %v5082_v34  ;;  %4748 = vmatmul.msk.f32.gmra.mxu1 %vm2058_vm2, %v1168_v28  ;;  %v520_v55 = vmul.f32 %v5833_v26, %v5883_v53  ;;  %5097 = vpow2.f32 %v4703_v54  ;;  %v4715_v58 = vmul.f32 -1.442695, %v724_v10 }
  0xe3   : > { %v5086_v52 = vpop.eup %5085  ;;  %v6223_v23 = vadd.f32 %v5847_v32, %v425_v47  ;;  %v1171_v31 = vmul.f32 %v6207_v59, %v6154_v6  ;;  %5099 = vrcp.f32 %v6209_v38  ;;  %v4707_v45 = vmul.f32 -1.442695, %v635_v41 }
  0xe4   : > { %9185 = vst [vmem:[#allocation19_spill] sm:$0xff] %v6219_v15  ;;  %v5088_v46 = vpop.eup %5087  ;;  %v4709_v60 = vmul.f32 -1.442695, %v637_v5  ;;  %v4704_v0 = vmul.f32 -1.442695, %v632_v62  ;;  %5101 = vpow2.f32 %v4688_v14  ;;  %v712_v32 = vmul.f32 %v6061_v57, %v670_v18 }
  0xe5   : > { %v6229_v22 = vpop.eup %5089  ;;  %v1172_v26 = vsub.f32 1.0, %v1171_v31  ;;  %5103 = vrcp.f32 %v6219_v15  ;;  %v6236_v53 = vadd.f32 1.0, %v5086_v52  ;;  %v6238_v10 = vadd.f32 1.0, %v5088_v46 }
  0xe6   : > { %v5092_v51 = vpop.eup %5091  ;;  %v622_v34 = vmul.f32 %v5871_v44, %v601_v35  ;;  %v536_v62 = vsub.f32 %v6223_v23, %v520_v55  ;;  %vm1176_vm8 = vweird.f32 %v6207_v59  ;;  %v1179_v5 = vand.u32 2147483647, %v6154_v6 }
  0xe7   : > { %9186 = vst [vmem:[#allocation20_spill] sm:$0xff] %v6236_v53  ;;  %v6243_v41 = vpop.eup %5093  ;;  %v1173_v18 = vmul.f32 %v6207_v59, %v1172_v26  ;;  %v6251_v28 = vadd.f32 1.0, %v5092_v51  ;;  %5105 = vpow2.f32 %v4715_v58  ;;  %v705_v52 = vmul.f32 %v6061_v57, %v642_v4  ;;  %v682_v58 = vpop.permute.xlu2 %681 }
  0xe8   : > { %v6241_v54 = vpop.permute.xlu1 %645  ;;  %v6249_v14 = vpop.eup %5095  ;;  %v1181_v44 = vand.u32 2147483648, %v6154_v6  ;;  %5107 = vpow2.f32 %v4707_v45  ;;  %v728_v46 = vsub.f32 %v6121_v61, %v712_v32  ;;  %vm1175_vm9 = vweird.f32 %v6154_v6 }
  0xe9   : > { %9187 = vst [vmem:[#allocation21_spill] sm:$0xff] %v6249_v14  ;;  %v5098_v35 = vpop.eup %5097  ;;  %v1174_v55 = vadd.f32 %v6207_v59, %v1173_v18  ;;  %v662_v31 = vpop.permute.xlu0 %661  ;;  %5109 = vrcp.f32 %v6238_v10  ;;  %v638_v51 = vsub.f32 %v5998_v20, %v622_v34  ;;  %vm1177_vm10 = vmor %vm1175_vm9, %vm1176_vm8  ;;  %v1186_v45 = vmul.f32 %v6243_v41, %v6188_v40 }
  0xea   : > { %9188 = vst [vmem:[#allocation22_spill] sm:$0xff] %v6251_v28  ;;  %v6258_v26 = vpop.eup %5099  ;;  %v1182_v4 = vor.u32 1.1754944e-38, %v1181_v44  ;;  %5111 = vpow2.f32 %v4709_v60  ;;  %v4689_v18 = vmul.f32 -1.442695, %v536_v62  ;;  %vm1180_vm11 = vcmp.eq.f32.partialorder %v1179_v5, 8.507059e+37 }
  0xeb   : > { %9189 = vst [vmem:[#allocation23_spill] sm:$0xff] %v6258_v26  ;;  %v5102_v32 = vpop.eup %5101  ;;  %v1178_v6 = vsel %vm1177_vm10, %v6207_v59, %v1174_v55  ;;  %v6269_v26 = vadd.f32 1.0, %v5098_v35  ;;  %5113 = vpow2.f32 %v4704_v0  ;;  %v721_v34 = vsub.f32 %v5858_v37, %v705_v52 }
  0xec   : > { %v6267_v47 = vpop.eup %5103  ;;  %v1183_v38 = vsel %vm1180_vm11, %v1182_v4, %v1178_v6  ;;  %5115 = vrcp.f32 %v6236_v53  ;;  %v4719_v44 = vmul.f32 -1.442695, %v728_v46  ;;  %v1187_v15 = vsub.f32 1.0, %v1186_v45 }
  0xed   : > { %4749 = vmatmul.msk.f32.gmra.mxu1 %vm2058_vm2, %v1183_v38  ;;  %v5106_v14 = vpop.eup %5105  ;;  %5117 = vrcp.f32 %v6251_v28  ;;  %v6275_v60 = vadd.f32 1.0, %v5102_v32  ;;  %v4710_v59 = vmul.f32 -1.442695, %v638_v51  ;;  %vm1191_vm12 = vweird.f32 %v6243_v41 }
  0xee   : > { %v5108_v62 = vpop.eup %5107  ;;  %5119 = vpow2.f32 %v4689_v18  ;;  %v1188_v5 = vmul.f32 %v6243_v41, %v1187_v15  ;;  %v1194_v0 = vand.u32 2147483647, %v6188_v40  ;;  %v4712_v38 = vmul.f32 -1.442695, %v721_v34 }
  0xef   : > { %v6280_v35 = vpop.eup %5109  ;;  %5121 = vrcp.f32 %v6269_v26  ;;  %v715_v46 = vmul.f32 %v6061_v57, %v682_v58  ;;  %v1196_v55 = vand.u32 2147483648, %v6188_v40  ;;  %v6285_v51 = vadd.f32 1.0, %v5106_v14  ;;  %v694_v53 = vpop.permute.xlu2 %693 }
  0xf0   : > { %v658_v52 = vpop.permute.xlu1 %657  ;;  %v5112_v4 = vpop.eup %5111  ;;  %5123 = vpow2.f32 %v4719_v44  ;;  %v1189_v15 = vadd.f32 %v6243_v41, %v1188_v5  ;;  %vm1190_vm13 = vweird.f32 %v6188_v40  ;;  %v6289_v32 = vadd.f32 1.0, %v5108_v62 }
  0xf1   : > { %9190 = vst [vmem:[#allocation24_spill] sm:$0xff] %v6285_v51  ;;  %v5114_v45 = vpop.eup %5113  ;;  %5125 = vrcp.f32 %v6275_v60  ;;  %vm1192_vm14 = vmor %vm1190_vm13, %vm1191_vm12  ;;  %v1197_v18 = vor.u32 1.1754944e-38, %v1196_v55  ;;  %v709_v58 = vmul.f32 %v6061_v57, %v658_v52  ;;  %v706_v14 = vmul.f32 %v6061_v57, %v6241_v54  ;;  %v674_v44 = vpop.permute.xlu0 %673 }
  0xf2   : > { %9191 = vst [vmem:[#allocation25_spill] sm:$0xff] %v6289_v32  ;;  %v6295_v6 = vpop.eup %5115  ;;  %v6300_v34 = vmul.f32 %v6061_v57, %v662_v31  ;;  %v1193_v40 = vsel %vm1192_vm14, %v6243_v41, %v1189_v15  ;;  %vm1195_vm15 = vcmp.eq.f32.partialorder %v1194_v0, 8.507059e+37  ;;  %v6305_v5 = vadd.f32 1.0, %v5112_v4 }
  0xf3   : > { %9192 = vst [vmem:[#allocation26_spill] sm:$0xff] %v6295_v6  ;;  %v6303_v62 = vpop.eup %5117  ;;  %5127 = vpow2.f32 %v4710_v59  ;;  %v731_v55 = vsub.f32 %v5880_v50, %v715_v46  ;;  %v1198_v52 = vsel %vm1195_vm15, %v1197_v18, %v1193_v40  ;;  %v6309_v54 = vadd.f32 1.0, %v5114_v45 }
  0xf4   : > { %9193 = vst [vmem:[#allocation27_spill] sm:$0xff] %v6303_v62  ;;  %v5120_v6 = vpop.eup %5119  ;;  %5129 = vrcp.f32 %v6285_v51  ;;  %v1201_v41 = vmul.f32 %v6280_v35, %v6238_v10  ;;  %v9196_v59 = vsub.f32 %v6223_v23, %v6215_v19  ;;  %v725_v46 = vsub.f32 %v5972_v33, %v709_v58 }
  0xf5   : > { %9194 = vst [vmem:[#allocation28_spill] sm:$0xff] %v6305_v5  ;;  %4750 = vmatmul.msk.f32.gmra.mxu1 %vm2058_vm2, %v1198_v52  ;;  %v6314_v31 = vpop.eup %5121  ;;  %5131 = vrcp.f32 %v6289_v32  ;;  %v6321_v15 = vadd.f32 1.0, %v5120_v6  ;;  %v722_v45 = vsub.f32 %v5877_v49, %v706_v14  ;;  %v4722_v52 = vmul.f32 -1.442695, %v731_v55 }
  0xf6   : > { %9195 = vst [vmem:[#allocation29_spill] sm:$0xff] %v6309_v54  ;;  %v4705_v0 = vmul.f32 -1.442695, %v9196_v59  ;;  %v5124_v4 = vpop.eup %5123  ;;  %5133 = vpow2.f32 %v4712_v38  ;;  %v1202_v18 = vsub.f32 1.0, %v1201_v41  ;;  %v726_v51 = vsub.f32 %v6025_v17, %v6300_v34 }
  0xf7   : > { %v6324_v40 = vpop.eup %5125  ;;  %5135 = vrcp.f32 %v6305_v5  ;;  %v1211_v19 = vand.u32 2147483648, %v6238_v10  ;;  %vm1206_vm0 = vweird.f32 %v6280_v35  ;;  %v1209_v38 = vand.u32 2147483647, %v6238_v10 }
  0xf8   : > { %5137 = vrcp.f32 %v6309_v54  ;;  %v1203_v58 = vmul.f32 %v6280_v35, %v1202_v18  ;;  %v666_v6 = vpop.permute.xlu1 %665  ;;  %v6334_v41 = vadd.f32 1.0, %v5124_v4  ;;  %v4716_v59 = vmul.f32 -1.442695, %v725_v46  ;;  %v739_v28 = vpop.permute.xlu2 %738 }
  0xf9   : > { %v5128_v14 = vpop.eup %5127  ;;  %v713_v55 = vmul.f32 %v6061_v57, %v674_v44  ;;  %v718_v50 = vmul.f32 %v6061_v57, %v694_v53  ;;  %5139 = vrcp.f32 %v6321_v15  ;;  %vm1205_vm1 = vweird.f32 %v6238_v10  ;;  %v686_v10 = vpop.permute.xlu0 %685 }
  0xfa   : > { %v6338_v34 = vpop.eup %5129  ;;  %v1204_v5 = vadd.f32 %v6280_v35, %v1203_v58  ;;  %v1216_v18 = vmul.f32 %v6324_v40, %v6275_v60  ;;  %5141 = vpow2.f32 %v4705_v0  ;;  %vm1207_vm3 = vmor %vm1205_vm1, %vm1206_vm0  ;;  %v1212_v44 = vor.u32 1.1754944e-38, %v1211_v19 }
  0xfb   : > { %9197 = vst [vmem:[#allocation30_spill] sm:$0xff] %v6338_v34  ;;  %v6345_v32 = vpop.eup %5131  ;;  %v711_v53 = vmul.f32 %v6061_v57, %v666_v6  ;;  %v6350_v4 = vadd.f32 1.0, %v5128_v14  ;;  %5143 = vpow2.f32 %v4722_v52  ;;  %vm1210_vm4 = vcmp.eq.f32.partialorder %v1209_v38, 8.507059e+37 }
  0xfc   : > { %9198 = vst [vmem:[#allocation31_spill] sm:$0xff] %v6345_v32  ;;  %v5134_v46 = vpop.eup %5133  ;;  %v1208_v58 = vsel %vm1207_vm3, %v6280_v35, %v1204_v5  ;;  %v4713_v62 = vmul.f32 -1.442695, %v722_v45  ;;  %5145 = vpow2.f32 %v4716_v59  ;;  %v729_v0 = vsub.f32 %v6168_v29, %v713_v55  ;;  %v5519_v55 = vld [vmem:[%s9092_s1] sm:$0xf] }
  0xfd   : > { %9199 = vst [vmem:[#allocation32_spill] sm:$0xff] %v6350_v4  ;;  %v6353_v34 = vpop.eup %5135  ;;  %v1213_v32 = vsel %vm1210_vm4, %v1212_v44, %v1208_v58  ;;  %5147 = vrcp.f32 %v6334_v41  ;;  %v4717_v19 = vmul.f32 -1.442695, %v726_v51  ;;  %v734_v6 = vsub.f32 %v5953_v8, %v718_v50 }
  0xfe   : > { %9200 = vst [vmem:[#allocation33_spill] sm:$0xff] %v6353_v34  ;;  %v6356_v54 = vpop.eup %5137  ;;  %4751 = vmatmul.msk.f32.gmra.mxu1 %vm2058_vm2, %v1213_v32  ;;  %v1217_v35 = vsub.f32 1.0, %v1216_v18  ;;  %v6361_v5 = vadd.f32 1.0, %v5134_v46  ;;  %v727_v52 = vsub.f32 %v6074_v11, %v711_v53  ;;  %v716_v45 = vmul.f32 %v6061_v57, %v686_v10 }
  0xff   : > { %v1226_v38 = vand.u32 2147483648, %v6275_v60  ;;  %v6366_v14 = vpop.eup %5139  ;;  %5149 = vrcp.f32 %v6350_v4  ;;  %vm1221_vm5 = vweird.f32 %v6324_v40  ;;  %v1224_v50 = vand.u32 2147483647, %v6275_v60 }
 0x100   : > { %9201 = vst [vmem:[#allocation34_spill] sm:$0xff] %v6361_v5  ;;  %v1218_v59 = vmul.f32 %v6324_v40, %v1217_v35  ;;  %v5142_v51 = vpop.eup %5141  ;;  %5151 = vpow2.f32 %v4713_v62  ;;  %v4720_v32 = vmul.f32 -1.442695, %v729_v0  ;;  %v6375_v18 = vperm.slane %v5519_v55, 3 }
 0x101   : > { %v5144_v44 = vpop.eup %5143  ;;  %5153 = vpow2.f32 %v4717_v19  ;;  %v4725_v53 = vmul.f32 -1.442695, %v734_v6  ;;  %vm1220_vm6 = vweird.f32 %v6275_v60  ;;  %v4718_v10 = vmul.f32 -1.442695, %v727_v52  ;;  %v678_v6 = vpop.permute.xlu1 %677 }
 0x102   : > { %v1219_v46 = vadd.f32 %v6324_v40, %v1218_v59  ;;  %v5146_v58 = vpop.eup %5145  ;;  %v732_v35 = vsub.f32 %v5896_v1, %v716_v45  ;;  %vm1222_vm7 = vmor %vm1220_vm6, %vm1221_vm5  ;;  %v1227_v62 = vor.u32 1.1754944e-38, %v1226_v38  ;;  %v1231_v0 = vmul.f32 %v6366_v14, %v6321_v15 }
 0x103   : > { %v6384_v55 = vpop.eup %5147  ;;  %5155 = vrcp.f32 %v6361_v5  ;;  %vm1225_vm8 = vcmp.eq.f32.partialorder %v1224_v50, 8.507059e+37  ;;  %v6388_v60 = vadd.f32 1.0, %v5142_v51  ;;  %v802_v52 = vmul.f32 %v6375_v18, %v739_v28  ;;  %v698_v50 = vpop.permute.xlu0 %697 }
 0x104   : > { %v1223_v19 = vsel %vm1222_vm7, %v6324_v40, %v1219_v46  ;;  %5157 = vpow2.f32 %v4720_v32  ;;  %v6393_v38 = vadd.f32 1.0, %v5146_v58  ;;  %v1232_v8 = vsub.f32 1.0, %v1231_v0  ;;  %v751_v51 = vpop.permute.xlu2 %750 }
 0x105   : > { %9202 = vst [vmem:[#allocation35_spill] sm:$0xff] %v6388_v60  ;;  %v1228_v45 = vsel %vm1225_vm8, %v1227_v62, %v1223_v19  ;;  %v6391_v59 = vpop.eup %5149  ;;  %5159 = vpow2.f32 %v4725_v53  ;;  %v6396_v5 = vadd.f32 1.0, %v5144_v44  ;;  %v4723_v40 = vmul.f32 -1.442695, %v732_v35 }
 0x106   : > { %9203 = vst [vmem:[#allocation36_spill] sm:$0xff] %v6391_v59  ;;  %4752 = vmatmul.msk.f32.gmra.mxu1 %vm2058_vm2, %v1228_v45  ;;  %v5152_v4 = vpop.eup %5151  ;;  %5161 = vpow2.f32 %v4718_v10  ;;  %v1246_v32 = vmul.f32 %v6027_v25, %v5968_v24  ;;  %v1233_v46 = vmul.f32 %v6366_v14, %v1232_v8  ;;  %vm1236_vm9 = vweird.f32 %v6366_v14 }
 0x107   : > { %v5154_v28 = vpop.eup %5153  ;;  %v1239_v53 = vand.u32 2147483647, %v6321_v15  ;;  %v1241_v58 = vand.u32 2147483648, %v6321_v15  ;;  %5163 = vrcp.f32 %v6388_v60  ;;  %v818_v44 = vsub.f32 %v5858_v37, %v802_v52 }
 0x108   : > { %v714_v10 = vmul.f32 %v6061_v57, %v678_v6  ;;  %5165 = vrcp.f32 %v6393_v38  ;;  %v719_v62 = vmul.f32 %v6061_v57, %v698_v50  ;;  %v1234_v8 = vadd.f32 %v6366_v14, %v1233_v46 }
 0x109   : > { %v6407_v35 = vpop.eup %5155  ;;  %vm1235_vm10 = vweird.f32 %v6321_v15  ;;  %5167 = vrcp.f32 %v6396_v5  ;;  %v6414_v19 = vadd.f32 1.0, %v5152_v4  ;;  %v1242_v45 = vor.u32 1.1754944e-38, %v1241_v58 }
 0x10a   : > { %9204 = vst [vmem:[#allocation37_spill] sm:$0xff] %v6407_v35  ;;  %v5158_v0 = vpop.eup %5157  ;;  %vm1237_vm11 = vmor %vm1235_vm10, %vm1236_vm9  ;;  %v1247_v37 = vsub.f32 1.0, %v1246_v32  ;;  %v6416_v6 = vadd.f32 1.0, %v5154_v28  ;;  %5169 = vpow2.f32 %v4723_v40  ;;  %vm1240_vm12 = vcmp.eq.f32.partialorder %v1239_v53, 8.507059e+37  ;;  %v690_v28 = vpop.permute.xlu1 %689 }
 0x10b   : > { %9205 = vst [vmem:[#allocation38_spill] sm:$0xff] %v6414_v19  ;;  %v5160_v52 = vpop.eup %5159  ;;  %v1238_v35 = vsel %vm1237_vm11, %v6366_v14, %v1234_v8  ;;  %v4728_v59 = vmul.f32 -1.442695, %v818_v44  ;;  %v730_v46 = vsub.f32 %v6223_v23, %v714_v10  ;;  %v6421_v60 = vadd.f32 1.0, %v5158_v0 }
 0x10c   : > { %v5162_v50 = vpop.eup %5161  ;;  %v1243_v15 = vsel %vm1240_vm12, %v1242_v45, %v1238_v35  ;;  %v1248_v34 = vmul.f32 %v6027_v25, %v1247_v37  ;;  %v735_v4 = vsub.f32 %v5998_v20, %v719_v62  ;;  %v805_v32 = vmul.f32 %v6375_v18, %v751_v51  ;;  %v759_v8 = vpop.permute.xlu2 %758 }
 0x10d   : > { %vm1251_vm13 = vweird.f32 %v6027_v25  ;;  %v6427_v14 = vpop.eup %5163  ;;  %5171 = vrcp.f32 %v6414_v19  ;;  %v6430_v40 = vadd.f32 1.0, %v5160_v52  ;;  %v1256_v58 = vand.u32 2147483648, %v5968_v24 }
 0x10e   : > { %4753 = vmatmul.msk.f32.gmra.mxu1 %vm2058_vm2, %v1243_v15  ;;  %v1249_v53 = vadd.f32 %v6027_v25, %v1248_v34  ;;  %v6434_v44 = vpop.eup %5165  ;;  %5173 = vrcp.f32 %v6416_v6  ;;  %v6437_v51 = vadd.f32 1.0, %v5162_v50  ;;  %vm1250_vm14 = vweird.f32 %v5968_v24 }
 0x10f   : > { %v1254_v10 = vand.u32 2147483647, %v5968_v24  ;;  %v6441_v35 = vpop.eup %5167  ;;  %5175 = vpow2.f32 %v4728_v59  ;;  %v4721_v62 = vmul.f32 -1.442695, %v730_v46  ;;  %vm6445_vm15 = vmor %vm1250_vm14, %vm1251_vm13  ;;  %v4726_v45 = vmul.f32 -1.442695, %v735_v4 }
 0x110   : > { %v5170_v0 = vpop.eup %5169  ;;  %5177 = vrcp.f32 %v6421_v60  ;;  %v821_v37 = vsub.f32 %v5921_v3, %v805_v32  ;;  %v1253_v24 = vsel %vm6445_vm15, %v6027_v25, %v1249_v53  ;;  %v1257_v59 = vor.u32 1.1754944e-38, %v1256_v58 }
 0x111   : > { %5179 = vrcp.f32 %v6430_v40  ;;  %v1636_v52 = vmul.f32 %v6434_v44, %v6393_v38  ;;  %v717_v50 = vmul.f32 %v6061_v57, %v690_v28  ;;  %v807_v46 = vmul.f32 %v6375_v18, %v759_v8  ;;  %v743_v28 = vpop.permute.xlu0 %742 }
 0x112   : > { %5181 = vrcp.f32 %v6437_v51  ;;  %vm1255_vm0 = vcmp.eq.f32.partialorder %v1254_v10, 8.507059e+37  ;;  %v6464_v25 = vadd.f32 1.0, %v5170_v0  ;;  %v4731_v53 = vmul.f32 -1.442695, %v821_v37  ;;  %v702_v37 = vpop.permute.xlu1 %701 }
 0x113   : > { %v6460_v15 = vpop.eup %5171  ;;  %5183 = vpow2.f32 %v4721_v62  ;;  %v1258_v3 = vsel %vm1255_vm0, %v1257_v59, %v1253_v24  ;;  %v1637_v4 = vsub.f32 1.0, %v1636_v52  ;;  %v1646_v58 = vand.u32 2147483648, %v6393_v38 }
 0x114   : > { %9208 = vst [vmem:[#allocation39_spill] sm:$0xff] %v6460_v15  ;;  %v6462_v32 = vpop.eup %5173  ;;  %5185 = vpow2.f32 %v4726_v45  ;;  %vm1641_vm1 = vweird.f32 %v6434_v44  ;;  %v1644_v10 = vand.u32 2147483647, %v6393_v38  ;;  %v1261_v62 = vmul.f32 %v6068_v13, %v5987_v42 }
 0x115   : > { %v5176_v34 = vpop.eup %5175  ;;  %v1638_v8 = vmul.f32 %v6434_v44, %v1637_v4  ;;  %v733_v0 = vsub.f32 %v5915_v7, %v717_v50  ;;  %v823_v45 = vsub.f32 %v6025_v17, %v807_v46  ;;  %vm1640_vm3 = vweird.f32 %v6393_v38 }
 0x116   : > { %4754 = vmatmul.msk.f32.gmra.mxu1 %vm2058_vm2, %v1258_v3  ;;  %v6473_v24 = vpop.eup %5177  ;;  %vm1265_vm4 = vweird.f32 %v5987_v42  ;;  %v1262_v3 = vsub.f32 1.0, %v1261_v62  ;;  %vm1266_vm5 = vweird.f32 %v6068_v13  ;;  %v1269_v4 = vand.u32 2147483647, %v5987_v42  ;;  %vm1642_vm6 = vmor %vm1640_vm3, %vm1641_vm1 }
 0x117   : > { %v6479_v59 = vpop.eup %5179  ;;  %v1639_v52 = vadd.f32 %v6434_v44, %v1638_v8  ;;  %v6486_v19 = vadd.f32 1.0, %v5176_v34  ;;  %v803_v17 = vmul.f32 %v6375_v18, %v743_v28  ;;  %v1647_v38 = vor.u32 1.1754944e-38, %v1646_v58  ;;  %vm6499_vm8 = vmor %vm1265_vm4, %vm1266_vm5 }
 0x118   : > { %v6484_v15 = vpop.eup %5181  ;;  %v1271_v50 = vand.u32 2147483648, %v5987_v42  ;;  %5187 = vpow2.f32 %v4731_v53  ;;  %vm1645_vm7 = vcmp.eq.f32.partialorder %v1644_v10, 8.507059e+37  ;;  %v1263_v62 = vmul.f32 %v6068_v13, %v1262_v3 }
 0x119   : > { %v5184_v46 = vpop.eup %5183  ;;  %v1643_v8 = vsel %vm1642_vm6, %v6434_v44, %v1639_v52  ;;  %5189 = vrcp.f32 %v6464_v25  ;;  %v4724_v34 = vmul.f32 -1.442695, %v733_v0  ;;  %v4733_v53 = vmul.f32 -1.442695, %v823_v45 }
 0x11a   : > { %v5186_v7 = vpop.eup %5185  ;;  %v1648_v20 = vsel %vm1645_vm7, %v1647_v38, %v1643_v8  ;;  %v1272_v28 = vor.u32 1.1754944e-38, %v1271_v50  ;;  %v1264_v44 = vadd.f32 %v6068_v13, %v1263_v62  ;;  %vm1270_vm9 = vcmp.eq.f32.partialorder %v1269_v4, 8.507059e+37  ;;  %v771_v50 = vpop.permute.xlu2 %770 }
 0x11b   : > { %4780 = vmatmul.msk.f32.vlgmr.msrb.gmra.mxu3 %vm2058_vm2, %v1648_v20  ;;  %v1651_v10 = vmul.f32 %v6462_v32, %v6416_v6  ;;  %5191 = vrcp.f32 %v6486_v19  ;;  %v6508_v0 = vadd.f32 1.0, %v5184_v46  ;;  %v819_v42 = vsub.f32 %v5877_v49, %v803_v17 }
 0x11c   : > { %v6511_v52 = vadd.f32 1.0, %v5186_v7  ;;  %v720_v3 = vmul.f32 %v6061_v57, %v702_v37  ;;  %v1268_v20 = vsel %vm6499_vm8, %v6068_v13, %v1264_v44  ;;  %5193 = vpow2.f32 %v4724_v34  ;;  %v763_v13 = vpop.permute.xlu0 %762  ;;  %v747_v37 = vpop.permute.xlu1 %746 }
 0x11d   : > { %v1652_v45 = vsub.f32 1.0, %v1651_v10  ;;  %v1273_v4 = vsel %vm1270_vm9, %v1272_v28, %v1268_v20  ;;  %5195 = vpow2.f32 %v4733_v53  ;;  %vm1656_vm10 = vweird.f32 %v6462_v32 }
 0x11e   : > { %v5188_v38 = vpop.eup %5187  ;;  %4755 = vmatmul.msk.f32.gmra.mxu1 %vm2058_vm2, %v1273_v4  ;;  %v1659_v49 = vand.u32 2147483647, %v6416_v6  ;;  %5197 = vrcp.f32 %v6508_v0  ;;  %v4729_v57 = vmul.f32 -1.442695, %v819_v42  ;;  %v1661_v17 = vand.u32 2147483648, %v6416_v6 }
 0x11f   : > { %v1653_v46 = vmul.f32 %v6462_v32, %v1652_v45  ;;  %v6521_v7 = vpop.eup %5189  ;;  %v1276_v8 = vmul.f32 %v6102_v43, %v6042_v27  ;;  %5199 = vrcp.f32 %v6511_v52  ;;  %v736_v62 = vsub.f32 %v6052_v48, %v720_v3 }
 0x120   : > { %vm1655_vm11 = vweird.f32 %v6416_v6  ;;  %v6533_v28 = vadd.f32 1.0, %v5188_v38  ;;  %v810_v53 = vmul.f32 %v6375_v18, %v771_v50  ;;  %v1662_v44 = vor.u32 1.1754944e-38, %v1661_v17 }
 0x121   : > { %v1654_v34 = vadd.f32 %v6462_v32, %v1653_v46  ;;  %v6531_v58 = vpop.eup %5191  ;;  %vm1657_vm12 = vmor %vm1655_vm11, %vm1656_vm10  ;;  %v1277_v10 = vsub.f32 1.0, %v1276_v8  ;;  %v808_v42 = vmul.f32 %v6375_v18, %v763_v13  ;;  %vm1660_vm13 = vcmp.eq.f32.partialorder %v1659_v49, 8.507059e+37 }
 0x122   : > { %v1286_v3 = vand.u32 2147483648, %v6042_v27  ;;  %v5194_v45 = vpop.eup %5193  ;;  %vm1281_vm14 = vweird.f32 %v6102_v43  ;;  %v1284_v38 = vand.u32 2147483647, %v6042_v27  ;;  %5201 = vpow2.f32 %v4729_v57 }
 0x123   : > { %v1658_v20 = vsel %vm1657_vm12, %v6462_v32, %v1654_v34  ;;  %v1278_v4 = vmul.f32 %v6102_v43, %v1277_v10  ;;  %v5196_v50 = vpop.eup %5195  ;;  %v4727_v46 = vmul.f32 -1.442695, %v736_v62  ;;  %5203 = vrcp.f32 %v6533_v28 }
 0x124   : > { %v1663_v6 = vsel %vm1660_vm13, %v1662_v44, %v1658_v20  ;;  %v6545_v17 = vpop.eup %5197  ;;  %vm1280_vm15 = vweird.f32 %v6042_v27  ;;  %v1666_v49 = vmul.f32 %v6484_v15, %v6437_v51  ;;  %v6554_v8 = vadd.f32 1.0, %v5194_v45  ;;  %v783_v20 = vpop.permute.xlu2 %782 }
 0x125   : > { %4781 = vmatmul.msk.f32.gmra.mxu3 %vm2058_vm2, %v1663_v6  ;;  %v1279_v32 = vadd.f32 %v6102_v43, %v1278_v4  ;;  %v6552_v13 = vpop.eup %5199  ;;  %v826_v57 = vsub.f32 %v6168_v29, %v810_v53  ;;  %v824_v62 = vsub.f32 %v6074_v11, %v808_v42  ;;  %vm1282_vm0 = vmor %vm1280_vm15, %vm1281_vm14  ;;  %v1287_v34 = vor.u32 1.1754944e-38, %v1286_v3  ;;  %v755_v29 = vpop.permute.xlu1 %754 }
 0x126   : > { %v6560_v44 = vadd.f32 1.0, %v5196_v50  ;;  %vm1285_vm1 = vcmp.eq.f32.partialorder %v1284_v38, 8.507059e+37  ;;  %v1667_v27 = vsub.f32 1.0, %v1666_v49  ;;  %5205 = vpow2.f32 %v4727_v46 }
 0x127   : > { %v1283_v10 = vsel %vm1282_vm0, %v6102_v43, %v1279_v32  ;;  %v804_v6 = vmul.f32 %v6375_v18, %v747_v37  ;;  %vm1671_vm3 = vweird.f32 %v6484_v15  ;;  %v1674_v53 = vand.u32 2147483647, %v6437_v51 }
 0x128   : > { %v1288_v45 = vsel %vm1285_vm1, %v1287_v34, %v1283_v10  ;;  %v1668_v11 = vmul.f32 %v6484_v15, %v1667_v27  ;;  %v1676_v42 = vand.u32 2147483648, %v6437_v51  ;;  %v5202_v3 = vpop.eup %5201  ;;  %5207 = vrcp.f32 %v6554_v8 }
 0x129   : > { %4756 = vmatmul.msk.f32.gmra.mxu1 %vm2058_vm2, %v1288_v45  ;;  %v4736_v43 = vmul.f32 -1.442695, %v826_v57  ;;  %v4734_v4 = vmul.f32 -1.442695, %v824_v62  ;;  %v1291_v37 = vmul.f32 %v6132_v36, %v6071_v2  ;;  %v6572_v38 = vpop.eup %5203  ;;  %5209 = vrcp.f32 %v6560_v44 }
 0x12a   : > { %v813_v50 = vmul.f32 %v6375_v18, %v783_v20  ;;  %v1669_v46 = vadd.f32 %v6484_v15, %v1668_v11  ;;  %vm1670_vm4 = vweird.f32 %v6437_v51  ;;  %v820_v32 = vsub.f32 %v5900_v9, %v804_v6 }
 0x12b   : > { %v806_v49 = vmul.f32 %v6375_v18, %v755_v29  ;;  %vm1672_vm5 = vmor %vm1670_vm4, %vm1671_vm3  ;;  %v1677_v57 = vor.u32 1.1754944e-38, %v1676_v42  ;;  %v1292_v62 = vsub.f32 1.0, %v1291_v37  ;;  %vm1675_vm6 = vcmp.eq.f32.partialorder %v1674_v53, 8.507059e+37 }
 0x12c   : > { %v1673_v34 = vsel %vm1672_vm5, %v6484_v15, %v1669_v46  ;;  %v1301_v10 = vand.u32 2147483648, %v6071_v2  ;;  %v1681_v27 = vmul.f32 %v6384_v55, %v6334_v41  ;;  %v5206_v20 = vpop.eup %5205  ;;  %vm1296_vm7 = vweird.f32 %v6132_v36 }
 0x12d   : > { %v1678_v45 = vsel %vm1675_vm6, %v1677_v57, %v1673_v34  ;;  %v1293_v51 = vmul.f32 %v6132_v36, %v1292_v62  ;;  %v1299_v9 = vand.u32 2147483647, %v6071_v2  ;;  %v6589_v6 = vadd.f32 1.0, %v5202_v3 }
 0x12e   : > { %5211 = vpow2.f32 %v4736_v43  ;;  %4782 = vmatmul.msk.f32.gmra.mxu3 %vm2058_vm2, %v1678_v45  ;;  %v1682_v15 = vsub.f32 1.0, %v1681_v27  ;;  %v6592_v29 = vpop.eup %5207  ;;  %v829_v11 = vsub.f32 %v5896_v1, %v813_v50  ;;  %vm1295_vm8 = vweird.f32 %v6071_v2  ;;  %v775_v43 = vpop.permute.xlu0 %774 }
 0x12f   : > { %5213 = vpow2.f32 %v4734_v4  ;;  %v1294_v53 = vadd.f32 %v6132_v36, %v1293_v51  ;;  %v6597_v42 = vpop.eup %5209  ;;  %v4730_v37 = vmul.f32 -1.442695, %v820_v32  ;;  %vm1297_vm9 = vmor %vm1295_vm8, %vm1296_vm7  ;;  %v1302_v46 = vor.u32 1.1754944e-38, %v1301_v10 }
 0x130   : > { %v1683_v3 = vmul.f32 %v6384_v55, %v1682_v15  ;;  %vm1686_vm10 = vweird.f32 %v6384_v55  ;;  %v822_v57 = vsub.f32 %v5972_v33, %v806_v49  ;;  %vm1300_vm11 = vcmp.eq.f32.partialorder %v1299_v9, 8.507059e+37 }
 0x131   : > { %v1298_v4 = vsel %vm1297_vm9, %v6132_v36, %v1294_v53  ;;  %v1689_v1 = vand.u32 2147483647, %v6334_v41  ;;  %vm1685_vm12 = vweird.f32 %v6334_v41  ;;  %v1691_v32 = vand.u32 2147483648, %v6334_v41 }
 0x132   : > { %v1303_v50 = vsel %vm1300_vm11, %v1302_v46, %v1298_v4  ;;  %v1684_v2 = vadd.f32 %v6384_v55, %v1683_v3  ;;  %5215 = vrcp.f32 %v6589_v6  ;;  %vm6609_vm13 = vmor %vm1685_vm12, %vm1686_vm10  ;;  %v1306_v33 = vmul.f32 %v6162_v30, %v6104_v16 }
 0x133   : > { %4757 = vmatmul.msk.f32.gmra.mxu1 %vm2058_vm2, %v1303_v50  ;;  %v6615_v34 = vadd.f32 1.0, %v5206_v20  ;;  %v6618_v10 = vmul.f32 %v6375_v18, %v775_v43  ;;  %v1692_v27 = vor.u32 1.1754944e-38, %v1691_v32  ;;  %5217 = vpow2.f32 %v4730_v37 }
 0x134   : > { %v5212_v49 = vpop.eup %5211  ;;  %v1688_v41 = vsel %vm6609_vm13, %v6384_v55, %v1684_v2  ;;  %vm1690_vm14 = vcmp.eq.f32.partialorder %v1689_v1, 8.507059e+37  ;;  %v1307_v51 = vsub.f32 1.0, %v1306_v33  ;;  %v1696_v9 = vmul.f32 %v6473_v24, %v6421_v60  ;;  %v6644_v2 = vld [vmem:[%s9095_s4] ss:$0 sm:$0xff] }
 0x135   : > { %v5214_v45 = vpop.eup %5213  ;;  %v4739_v15 = vmul.f32 -1.442695, %v829_v11  ;;  %v4732_v53 = vmul.f32 -1.442695, %v822_v57  ;;  %v1693_v46 = vsel %vm1690_vm14, %v1692_v27, %v1688_v41  ;;  %v1316_v20 = vand.u32 2147483648, %v6104_v16 }
 0x136   : > { %4783 = vmatmul.msk.f32.gmra.mxu3 %vm2058_vm2, %v1693_v46  ;;  %v1308_v3 = vmul.f32 %v6162_v30, %v1307_v51  ;;  %vm1311_vm15 = vweird.f32 %v6162_v30  ;;  %v1314_v55 = vand.u32 2147483647, %v6104_v16  ;;  %v1697_v43 = vsub.f32 1.0, %v1696_v9 }
 0x137   : > { %v2268_v36 = vpop.f32.mrf.mxu1  ;;  %5219 = vrcp.f32 %v6615_v34  ;;  %vm1310_vm0 = vweird.f32 %v6104_v16  ;;  %v1706_v37 = vand.u32 2147483648, %v6421_v60  ;;  %v1321_v11 = vmul.f32 %v6229_v22, %v6172_v56 }
 0x138   : > { %v6635_v57 = vpop.eup %5215  ;;  %v1309_v4 = vadd.f32 %v6162_v30, %v1308_v3  ;;  %v1698_v1 = vmul.f32 %v6473_v24, %v1697_v43  ;;  %vm1701_vm1 = vweird.f32 %v6473_v24  ;;  %v1704_v50 = vand.u32 2147483647, %v6421_v60  ;;  %vm1312_vm3 = vmor %vm1310_vm0, %vm1311_vm15 }
 0x139   : > { %v6646_v16 = vadd.f32 1.0, %v5212_v49  ;;  %5221 = vpow2.f32 %v4732_v53  ;;  %v1317_v32 = vor.u32 1.1754944e-38, %v1316_v20  ;;  %v1322_v62 = vsub.f32 1.0, %v1321_v11  ;;  %v5218_v33 = vpop.eup %5217 }
 0x13a   : > { %v1313_v41 = vsel %vm1312_vm3, %v6162_v30, %v1309_v4  ;;  %vm1315_vm4 = vcmp.eq.f32.partialorder %v1314_v55, 8.507059e+37  ;;  %v1699_v27 = vadd.f32 %v6473_v24, %v1698_v1  ;;  %vm1700_vm5 = vweird.f32 %v6421_v60  ;;  %v767_v1 = vpop.permute.xlu1 %766 }
 0x13b   : > { %5223 = vpow2.f32 %v4739_v15  ;;  %v1318_v51 = vsel %vm1315_vm4, %v1317_v32, %v1313_v41  ;;  %vm1702_vm6 = vmor %vm1700_vm5, %vm1701_vm1  ;;  %v1707_v49 = vor.u32 1.1754944e-38, %v1706_v37  ;;  %v1323_v9 = vmul.f32 %v6229_v22, %v1322_v62 }
 0x13c   : > { %4758 = vmatmul.msk.f32.gmra.mxu1 %vm2058_vm2, %v1318_v51  ;;  %v1703_v53 = vsel %vm1702_vm6, %v6473_v24, %v1699_v27  ;;  %vm1705_vm7 = vcmp.eq.f32.partialorder %v1704_v50, 8.507059e+37  ;;  %vm1326_vm8 = vweird.f32 %v6229_v22  ;;  %v2269_v30 = vadd.f32 %v6644_v2, %v2268_v36 }
 0x13d   : > { %v6660_v20 = vpop.eup %5219  ;;  %v6662_v60 = vadd.f32 1.0, %v5218_v33  ;;  %v1708_v15 = vsel %vm1705_vm7, %v1707_v49, %v1703_v53  ;;  %v1324_v3 = vadd.f32 %v6229_v22, %v1323_v9  ;;  %v1331_v55 = vand.u32 2147483648, %v6172_v56 }
 0x13e   : > { %4784 = vmatmul.msk.f32.gmra.mxu3 %vm2058_vm2, %v1708_v15  ;;  %vm1325_vm9 = vweird.f32 %v6172_v56  ;;  %v1329_v24 = vand.u32 2147483647, %v6172_v56  ;;  %v4808_v43 = vmul.f32 -1.442695, %v2269_v30  ;;  %v1711_v36 = vmul.f32 %v6545_v17, %v6508_v0 }
 0x13f   : > { %v5222_v37 = vpop.eup %5221  ;;  %5225 = vrcp.f32 %v6646_v16  ;;  %v6672_v11 = vadd.f32 1.0, %v5214_v45  ;;  %v827_v4 = vsub.f32 %v6223_v23, %v6618_v10  ;;  %vm6678_vm10 = vmor %vm1325_vm9, %vm1326_vm8  ;;  %v1719_v62 = vand.u32 2147483647, %v6508_v0 }
 0x140   : > { %v2271_v46 = vpop.f32.mrf.mxu1  ;;  %v1328_v56 = vsel %vm6678_vm10, %v6229_v22, %v1324_v3  ;;  %5227 = vpow2.f32 %v4808_v43  ;;  %v1712_v32 = vsub.f32 1.0, %v1711_v36  ;;  %v1332_v33 = vor.u32 1.1754944e-38, %v1331_v55 }
 0x141   : > { %v6686_v45 = vpop.eup %5223  ;;  %5229 = vrcp.f32 %v6662_v60  ;;  %v1721_v41 = vand.u32 2147483648, %v6508_v0  ;;  %v1336_v27 = vmul.f32 %v6145_v21, %v6082_v12  ;;  %v6693_v51 = vmul.f32 %v6375_v18, %v767_v1 }
 0x142   : > { %vm1330_vm11 = vcmp.eq.f32.partialorder %v1329_v24, 8.507059e+37  ;;  %v1713_v22 = vmul.f32 %v6545_v17, %v1712_v32  ;;  %vm1716_vm12 = vweird.f32 %v6545_v17  ;;  %v6697_v49 = vadd.f32 1.0, %v5222_v37  ;;  %v2461_v24 = vld [vmem:[%s9096_s5 + $0x8] sm:$0xff] }
 0x143   : > { %v1333_v9 = vsel %vm1330_vm11, %v1332_v33, %v1328_v56  ;;  %vm1715_vm13 = vweird.f32 %v6508_v0  ;;  %v1337_v53 = vsub.f32 1.0, %v1336_v27  ;;  %vm6702_vm14 = vcmp.eq.f32.partialorder %v1719_v62, 8.507059e+37  ;;  %v2460_v0 = vld [vmem:[%s9096_s5] sm:$0xff]  ;;  %3889 = vmatpush.msrb.mxu0 %v2461_v24  ;;  %4945 = vmatpush.msra.mxu2 %v2461_v24 }
 0x144   : > { %4759 = vmatmul.msk.f32.gmra.mxu1 %vm2058_vm2, %v1333_v9  ;;  %v1714_v30 = vadd.f32 %v6545_v17, %v1713_v22  ;;  %v2272_v3 = vadd.f32 %v6644_v2, %v2271_v46  ;;  %v1726_v55 = vmul.f32 %v6441_v35, %v6396_v5  ;;  %vm6717_vm15 = vmor %vm1715_vm13, %vm1716_vm12  ;;  %v1722_v37 = vor.u32 1.1754944e-38, %v1721_v41  ;;  %4946 = vmatpush.msra.mxu3 %v2461_v24 }
 0x145   : > { %v6715_v43 = vpop.eup %5225  ;;  %v1338_v46 = vmul.f32 %v6145_v21, %v1337_v53  ;;  %vm1341_vm0 = vweird.f32 %v6145_v21  ;;  %v1346_v1 = vand.u32 2147483648, %v6082_v12  ;;  %v1344_v32 = vand.u32 2147483647, %v6082_v12  ;;  %3890 = vmatpush.msrb.mxu0 %v2460_v0  ;;  %4947 = vmatpush.msra.mxu2 %v2460_v0 }
 0x146   : > { %v5228_v50 = vpop.eup %5227  ;;  %v1718_v56 = vsel %vm6717_vm15, %v6545_v17, %v1714_v30  ;;  %v4809_v62 = vmul.f32 -1.442695, %v2272_v3  ;;  %v1727_v33 = vsub.f32 1.0, %v1726_v55  ;;  %vm1340_vm1 = vweird.f32 %v6082_v12  ;;  %v9219_v30 = vld [vmem:[#allocation9_spill] sm:$0xff]  ;;  %4948 = vmatpush.msra.mxu3 %v2460_v0 }
 0x147   : > { %v6728_v41 = vpop.eup %5229  ;;  %v1723_v22 = vsel %vm6702_vm14, %v1722_v37, %v1718_v56  ;;  %v1339_v9 = vadd.f32 %v6145_v21, %v1338_v46  ;;  %vm1731_vm3 = vweird.f32 %v6441_v35  ;;  %v6735_v17 = vadd.f32 1.0, %v5228_v50  ;;  %vm1342_vm4 = vmor %vm1340_vm1, %vm1341_vm0 }
 0x148   : > { %4785 = vmatmul.msk.f32.gmra.mxu3 %vm2058_vm2, %v1723_v22  ;;  %5231 = vpow2.f32 %v4809_v62  ;;  %v1728_v53 = vmul.f32 %v6441_v35, %v1727_v33  ;;  %v1351_v15 = vmul.f32 %v9219_v30, %v5948_v63  ;;  %v825_v12 = vsub.f32 %v6121_v61, %v6693_v51 }
 0x149   : > { %v1343_v3 = vsel %vm1342_vm4, %v6145_v21, %v1339_v9  ;;  %v1347_v55 = vor.u32 1.1754944e-38, %v1346_v1  ;;  %v1736_v24 = vand.u32 2147483648, %v6396_v5  ;;  %vm1345_vm5 = vcmp.eq.f32.partialorder %v1344_v32, 8.507059e+37 }
 0x14a   : > { %v1729_v36 = vadd.f32 %v6441_v35, %v1728_v53  ;;  %vm1730_vm6 = vweird.f32 %v6396_v5  ;;  %v1734_v37 = vand.u32 2147483647, %v6396_v5  ;;  %5233 = vrcp.f32 %v6697_v49 }
 0x14b   : > { %v2274_v27 = vpop.f32.mrf.mxu1  ;;  %v1348_v46 = vsel %vm1345_vm5, %v1347_v55, %v1343_v3  ;;  %vm6753_vm7 = vmor %vm1730_vm6, %vm1731_vm3  ;;  %v1352_v21 = vsub.f32 1.0, %v1351_v15  ;;  %v1359_v1 = vand.u32 2147483647, %v5948_v63  ;;  %5235 = vrcp.f32 %v6735_v17 }
 0x14c   : > { %4760 = vmatmul.msk.f32.gmra.mxu1 %vm2058_vm2, %v1348_v46  ;;  %v1733_v5 = vsel %vm6753_vm7, %v6441_v35, %v1729_v36  ;;  %v2275_v0 = vadd.f32 %v6644_v2, %v2274_v27  ;;  %v1741_v56 = vmul.f32 %v6521_v7, %v6464_v25  ;;  %v1737_v32 = vor.u32 1.1754944e-38, %v1736_v24  ;;  %v9226_v24 = vld [vmem:[#allocation12_spill] sm:$0xff] }
 0x14d   : > { %v1353_v62 = vmul.f32 %v9219_v30, %v1352_v21  ;;  %vm1356_vm8 = vweird.f32 %v9219_v30  ;;  %v1361_v33 = vand.u32 2147483648, %v5948_v63  ;;  %vm1735_vm9 = vcmp.eq.f32.partialorder %v1734_v37, 8.507059e+37  ;;  %v9227_v36 = vld [vmem:[#allocation16_spill] sm:$0xff] }
 0x14e   : > { %v5232_v22 = vpop.eup %5231  ;;  %vm1355_vm10 = vweird.f32 %v5948_v63  ;;  %v4810_v9 = vmul.f32 -1.442695, %v2275_v0  ;;  %v1742_v53 = vsub.f32 1.0, %v1741_v56  ;;  %v1738_v35 = vsel %vm1735_vm9, %v1737_v32, %v1733_v5 }
 0x14f   : > { %v6770_v15 = vadd.f32 1.0, %v5232_v22  ;;  %v1354_v27 = vadd.f32 %v9219_v30, %v1353_v62  ;;  %vm6773_vm11 = vcmp.eq.f32.partialorder %v1359_v1, 8.507059e+37  ;;  %vm6778_vm12 = vmor %vm1355_vm10, %vm1356_vm8  ;;  %vm1746_vm13 = vweird.f32 %v6521_v7 }
 0x150   : > { %4786 = vmatmul.msk.f32.gmra.mxu3 %vm2058_vm2, %v1738_v35  ;;  %5237 = vpow2.f32 %v4810_v9  ;;  %v1743_v63 = vmul.f32 %v6521_v7, %v1742_v53  ;;  %v1366_v37 = vmul.f32 %v9227_v36, %v9226_v24  ;;  %v6786_v50 = vpop.eup %5233  ;;  %v1362_v1 = vor.u32 1.1754944e-38, %v1361_v33 }
 0x151   : > { %v1358_v21 = vsel %vm6778_vm12, %v9219_v30, %v1354_v27  ;;  %v1749_v5 = vand.u32 2147483647, %v6464_v25  ;;  %v1751_v0 = vand.u32 2147483648, %v6464_v25  ;;  %v6793_v56 = vpop.eup %5235  ;;  %vm1745_vm14 = vweird.f32 %v6464_v25 }
 0x152   : > { %v1744_v32 = vadd.f32 %v6521_v7, %v1743_v63  ;;  %v1367_v62 = vsub.f32 1.0, %v1366_v37  ;;  %vm1370_vm15 = vweird.f32 %v9226_v24  ;;  %5239 = vrcp.f32 %v6770_v15  ;;  %vm6803_vm0 = vmor %vm1745_vm14, %vm1746_vm13 }
 0x153   : > { %v1363_v22 = vsel %vm6773_vm11, %v1362_v1, %v1358_v21  ;;  %v1756_v9 = vmul.f32 %v6592_v29, %v6554_v8  ;;  %vm1371_vm1 = vweird.f32 %v9227_v36  ;;  %v1374_v35 = vand.u32 2147483647, %v9226_v24 }
 0x154   : > { %v2277_v46 = vpop.f32.mrf.mxu1  ;;  %4761 = vmatmul.msk.f32.gmra.mxu1 %vm2058_vm2, %v1363_v22  ;;  %v1748_v25 = vsel %vm6803_vm0, %v6521_v7, %v1744_v32  ;;  %v1368_v53 = vmul.f32 %v9227_v36, %v1367_v62  ;;  %vm1750_vm3 = vcmp.eq.f32.partialorder %v1749_v5, 8.507059e+37  ;;  %v1752_v27 = vor.u32 1.1754944e-38, %v1751_v0  ;;  %vm6823_vm5 = vmor %vm1370_vm15, %vm1371_vm1  ;;  %v9232_v0 = vld [vmem:[#allocation11_spill] sm:$0xff] }
 0x155   : > { %v2278_v33 = vadd.f32 %v6644_v2, %v2277_v46  ;;  %v1376_v3 = vand.u32 2147483648, %v9226_v24  ;;  %v1757_v46 = vsub.f32 1.0, %v1756_v9  ;;  %vm1760_vm4 = vweird.f32 %v6554_v8  ;;  %v9233_v32 = vld [vmem:[#allocation15_spill] sm:$0xff] }
 0x156   : > { %v5238_v63 = vpop.eup %5237  ;;  %v1369_v37 = vadd.f32 %v9227_v36, %v1368_v53  ;;  %v1764_v21 = vand.u32 2147483647, %v6554_v8  ;;  %v1753_v7 = vsel %vm1750_vm3, %v1752_v27, %v1748_v25  ;;  %vm1761_vm6 = vweird.f32 %v6592_v29 }
 0x157   : > { %v4811_v55 = vmul.f32 -1.442695, %v2278_v33  ;;  %v1766_v5 = vand.u32 2147483648, %v6554_v8  ;;  %v1381_v62 = vmul.f32 %v9233_v32, %v9232_v0  ;;  %v6831_v22 = vadd.f32 1.0, %v5238_v63  ;;  %vm6853_vm10 = vmor %vm1760_vm4, %vm1761_vm6 }
 0x158   : > { %4787 = vmatmul.msk.f32.gmra.mxu3 %vm2058_vm2, %v1753_v7  ;;  %v1373_v30 = vsel %vm6823_vm5, %v9227_v36, %v1369_v37  ;;  %vm1375_vm7 = vcmp.eq.f32.partialorder %v1374_v35, 8.507059e+37  ;;  %v1758_v24 = vmul.f32 %v6592_v29, %v1757_v46  ;;  %v6838_v33 = vpop.eup %5239  ;;  %v1377_v9 = vor.u32 1.1754944e-38, %v1376_v3 }
 0x159   : > { %5241 = vpow2.f32 %v4811_v55  ;;  %v1382_v25 = vsub.f32 1.0, %v1381_v62  ;;  %vm1385_vm8 = vweird.f32 %v9232_v0  ;;  %vm6842_vm9 = vcmp.eq.f32.partialorder %v1764_v21, 8.507059e+37 }
 0x15a   : > { %v1759_v53 = vadd.f32 %v6592_v29, %v1758_v24  ;;  %v1391_v63 = vand.u32 2147483648, %v9232_v0  ;;  %v2720_v36 = vmul.f32 %v6793_v56, %v6735_v17  ;;  %v1378_v37 = vsel %vm1375_vm7, %v1377_v9, %v1373_v30 }
 0x15b   : > { %v1767_v55 = vor.u32 1.1754944e-38, %v1766_v5  ;;  %v1383_v46 = vmul.f32 %v9233_v32, %v1382_v25  ;;  %vm1386_vm11 = vweird.f32 %v9233_v32  ;;  %5243 = vrcp.f32 %v6831_v22 }
 0x15c   : > { %4762 = vmatmul.msk.f32.gmra.mxu1 %vm2058_vm2, %v1378_v37  ;;  %v1763_v21 = vsel %vm6853_vm10, %v6592_v29, %v1759_v53  ;;  %v1389_v7 = vand.u32 2147483647, %v9232_v0  ;;  %v2721_v8 = vsub.f32 1.0, %v2720_v36  ;;  %vm2724_vm12 = vweird.f32 %v6735_v17  ;;  %vm6871_vm14 = vmor %vm1385_vm8, %vm1386_vm11 }
 0x15d   : > { %v1384_v1 = vadd.f32 %v9233_v32, %v1383_v46  ;;  %vm2725_vm13 = vweird.f32 %v6793_v56  ;;  %v2730_v5 = vand.u32 2147483648, %v6735_v17  ;;  %v1392_v30 = vor.u32 1.1754944e-38, %v1391_v63 }
 0x15e   : > { %v2722_v29 = vmul.f32 %v6793_v56, %v2721_v8  ;;  %v2728_v24 = vand.u32 2147483647, %v6735_v17  ;;  %v1768_v53 = vsel %vm6842_vm9, %v1767_v55, %v1763_v21  ;;  %vm3682_vm15 = vcmask 130048   ;;  %vm2726_vm1 = vmor %vm2724_vm12, %vm2725_vm13  ;;  %v9240_v21 = vld [vmem:[#allocation10_spill] sm:$0xff] }
 0x15f   : > { %v2280_v35 = vpop.f32.mrf.mxu1  ;;  %v5242_v25 = vpop.eup %5241  ;;  %v1388_v36 = vsel %vm6871_vm14, %v9233_v32, %v1384_v1  ;;  %v1771_v0 = vmul.f32 %v6479_v59, %v6430_v40  ;;  %v2731_v37 = vor.u32 1.1754944e-38, %v2730_v5  ;;  %vm1775_vm0 = vweird.f32 %v6430_v40  ;;  %v9241_v8 = vld [vmem:[#allocation14_spill] sm:$0xff] }
 0x160   : > { %v2281_v9 = vadd.f32 %v6644_v2, %v2280_v35  ;;  %4788 = vmatmul.msk.f32.gmra.mxu3 %vm2058_vm2, %v1768_v53  ;;  %v2723_v63 = vadd.f32 %v6793_v56, %v2722_v29  ;;  %vm1776_vm3 = vweird.f32 %v6479_v59  ;;  %v1779_v32 = vand.u32 2147483647, %v6430_v40 }
 0x161   : > { %v1772_v27 = vsub.f32 1.0, %v1771_v0  ;;  %v1781_v35 = vand.u32 2147483648, %v6430_v40  ;;  %v6895_v55 = vpop.eup %5243  ;;  %vm1390_vm4 = vcmp.eq.f32.partialorder %v1389_v7, 8.507059e+37  ;;  %vm2729_vm5 = vcmp.eq.f32.partialorder %v2728_v24, 8.507059e+37  ;;  %vm6909_vm6 = vmor %vm1775_vm0, %vm1776_vm3 }
 0x162   : > { %v4812_v3 = vmul.f32 -1.442695, %v2281_v9  ;;  %v2727_v46 = vsel %vm2726_vm1, %v6793_v56, %v2723_v63  ;;  %v1396_v1 = vmul.f32 %v9241_v8, %v9240_v21  ;;  %v6900_v5 = vadd.f32 1.0, %v5242_v25 }
 0x163   : > { %v1393_v17 = vsel %vm1390_vm4, %v1392_v30, %v1388_v36  ;;  %v2732_v62 = vsel %vm2729_vm5, %v2731_v37, %v2727_v46  ;;  %v1773_v29 = vmul.f32 %v6479_v59, %v1772_v27  ;;  %vm6913_vm7 = vcmp.eq.f32.partialorder %v1779_v32, 8.507059e+37 }
 0x164   : > { %4763 = vmatmul.msk.f32.gmra.mxu1 %vm2058_vm2, %v1393_v17  ;;  %4872 = vmatmul.msk.f32.vlgmr.msrb.gmra.mxu0 %vm3682_vm15, %v2732_v62  ;;  %5245 = vpow2.f32 %v4812_v3  ;;  %v1782_v30 = vor.u32 1.1754944e-38, %v1781_v35  ;;  %v1397_v24 = vsub.f32 1.0, %v1396_v1  ;;  %v1404_v53 = vand.u32 2147483647, %v9240_v21 }
 0x165   : > { %v1774_v25 = vadd.f32 %v6479_v59, %v1773_v29  ;;  %v1406_v36 = vand.u32 2147483648, %v9240_v21  ;;  %v2735_v40 = vmul.f32 %v6838_v33, %v6770_v15  ;;  %vm1400_vm8 = vweird.f32 %v9240_v21 }
 0x166   : > { %v1398_v0 = vmul.f32 %v9241_v8, %v1397_v24  ;;  %vm1401_vm9 = vweird.f32 %v9241_v8  ;;  %vm2739_vm10 = vweird.f32 %v6770_v15  ;;  %v2745_v3 = vand.u32 2147483648, %v6770_v15 }
 0x167   : > { %v1778_v63 = vsel %vm6909_vm6, %v6479_v59, %v1774_v25  ;;  %v2736_v37 = vsub.f32 1.0, %v2735_v40  ;;  %vm2740_vm11 = vweird.f32 %v6838_v33  ;;  %v1786_v46 = vmul.f32 %v6552_v13, %v6511_v52  ;;  %vm1402_vm12 = vmor %vm1400_vm8, %vm1401_vm9 }
 0x168   : > { %v1783_v32 = vsel %vm6913_vm7, %v1782_v30, %v1778_v63  ;;  %v1399_v35 = vadd.f32 %v9241_v8, %v1398_v0  ;;  %vm1405_vm13 = vcmp.eq.f32.partialorder %v1404_v53, 8.507059e+37  ;;  %v1407_v59 = vor.u32 1.1754944e-38, %v1406_v36  ;;  %vm2741_vm0 = vmor %vm2739_vm10, %vm2740_vm11  ;;  %v9246_v53 = vld [vmem:[#allocation21_spill] sm:$0xff] }
 0x169   : > { %4789 = vmatmul.msk.f32.gmra.mxu3 %vm2058_vm2, %v1783_v32  ;;  %v2737_v21 = vmul.f32 %v6838_v33, %v2736_v37  ;;  %v2743_v1 = vand.u32 2147483647, %v6770_v15  ;;  %v2746_v29 = vor.u32 1.1754944e-38, %v2745_v3  ;;  %v1787_v7 = vsub.f32 1.0, %v1786_v46 }
 0x16a   : > { %v2283_v9 = vpop.f32.mrf.mxu1  ;;  %v5246_v17 = vpop.eup %5245  ;;  %v1403_v62 = vsel %vm1402_vm12, %v9241_v8, %v1399_v35  ;;  %vm1790_vm14 = vweird.f32 %v6511_v52  ;;  %vm1791_vm1 = vweird.f32 %v6552_v13  ;;  %v1796_v8 = vand.u32 2147483648, %v6511_v52 }
 0x16b   : > { %v2284_v27 = vadd.f32 %v6644_v2, %v2283_v9  ;;  %v1408_v30 = vsel %vm1405_vm13, %v1407_v59, %v1403_v62  ;;  %v2738_v24 = vadd.f32 %v6838_v33, %v2737_v21  ;;  %v1794_v9 = vand.u32 2147483647, %v6511_v52  ;;  %vm1792_vm4 = vmor %vm1790_vm14, %vm1791_vm1 }
 0x16c   : > { %4764 = vmatmul.msk.f32.gmra.mxu1 %vm2058_vm2, %v1408_v30  ;;  %v1788_v25 = vmul.f32 %v6552_v13, %v1787_v7  ;;  %v1411_v36 = vmul.f32 %v9246_v53, %v6201_v39  ;;  %5247 = vrcp.f32 %v6900_v5  ;;  %v6955_v0 = vadd.f32 1.0, %v5246_v17 }
 0x16d   : > { %v4813_v56 = vmul.f32 -1.442695, %v2284_v27  ;;  %v2742_v63 = vsel %vm2741_vm0, %v6838_v33, %v2738_v24  ;;  %vm2744_vm3 = vcmp.eq.f32.partialorder %v2743_v1, 8.507059e+37  ;;  %vm1795_vm5 = vcmp.eq.f32.partialorder %v1794_v9, 8.507059e+37 }
 0x16e   : > { %v2747_v37 = vsel %vm2744_vm3, %v2746_v29, %v2742_v63  ;;  %v1789_v15 = vadd.f32 %v6552_v13, %v1788_v25  ;;  %v1412_v3 = vsub.f32 1.0, %v1411_v36  ;;  %v1797_v27 = vor.u32 1.1754944e-38, %v1796_v8 }
 0x16f   : > { %5249 = vpow2.f32 %v4813_v56  ;;  %4873 = vmatmul.msk.f32.gmra.mxu0 %vm3682_vm15, %v2747_v37  ;;  %v1421_v32 = vand.u32 2147483648, %v6201_v39  ;;  %v2750_v35 = vmul.f32 %v6895_v55, %v6831_v22  ;;  %vm1416_vm6 = vweird.f32 %v9246_v53  ;;  %v9247_v37 = vld [vmem:[#allocation19_spill] sm:$0xff] }
 0x170   : > { %v1793_v33 = vsel %vm1792_vm4, %v6552_v13, %v1789_v15  ;;  %v1413_v46 = vmul.f32 %v9246_v53, %v1412_v3  ;;  %v1419_v59 = vand.u32 2147483647, %v6201_v39  ;;  %5251 = vrcp.f32 %v6955_v0 }
 0x171   : > { %v1798_v21 = vsel %vm1795_vm5, %v1797_v27, %v1793_v33  ;;  %v2751_v52 = vsub.f32 1.0, %v2750_v35  ;;  %v2758_v1 = vand.u32 2147483647, %v6831_v22  ;;  %vm1415_vm7 = vweird.f32 %v6201_v39 }
 0x172   : > { %v2286_v40 = vpop.f32.mrf.mxu1  ;;  %4790 = vmatmul.msk.f32.gmra.mxu3 %vm2058_vm2, %v1798_v21  ;;  %v1414_v17 = vadd.f32 %v9246_v53, %v1413_v46  ;;  %v2760_v13 = vand.u32 2147483648, %v6831_v22  ;;  %v6976_v29 = vpop.eup %5247  ;;  %vm1417_vm8 = vmor %vm1415_vm7, %vm1416_vm6  ;;  %v1422_v56 = vor.u32 1.1754944e-38, %v1421_v32  ;;  %vm2755_vm9 = vweird.f32 %v6895_v55 }
 0x173   : > { %v2287_v62 = vadd.f32 %v6644_v2, %v2286_v40  ;;  %v2752_v7 = vmul.f32 %v6895_v55, %v2751_v52  ;;  %v1801_v30 = vmul.f32 %v6660_v20, %v6615_v34  ;;  %vm1420_vm10 = vcmp.eq.f32.partialorder %v1419_v59, 8.507059e+37 }
 0x174   : > { %v1418_v9 = vsel %vm1417_vm8, %v9246_v53, %v1414_v17  ;;  %vm2754_vm11 = vweird.f32 %v6831_v22  ;;  %vm2759_vm12 = vcmp.eq.f32.partialorder %v2758_v1, 8.507059e+37  ;;  %v2761_v40 = vor.u32 1.1754944e-38, %v2760_v13 }
 0x175   : > { %v5250_v24 = vpop.eup %5249  ;;  %v4814_v39 = vmul.f32 -1.442695, %v2287_v62  ;;  %v1423_v25 = vsel %vm1420_vm10, %v1422_v56, %v1418_v9  ;;  %v2753_v8 = vadd.f32 %v6895_v55, %v2752_v7  ;;  %v1802_v36 = vsub.f32 1.0, %v1801_v30  ;;  %vm2756_vm13 = vmor %vm2754_vm11, %vm2755_vm9 }
 0x176   : > { %4765 = vmatmul.msk.f32.gmra.mxu1 %vm2058_vm2, %v1423_v25  ;;  %vm1806_vm14 = vweird.f32 %v6660_v20  ;;  %v1811_v63 = vand.u32 2147483648, %v6615_v34  ;;  %v1426_v53 = vmul.f32 %v6267_v47, %v9247_v37  ;;  %v6990_v3 = vpop.eup %5251  ;;  %v1809_v32 = vand.u32 2147483647, %v6615_v34 }
 0x177   : > { %v2757_v22 = vsel %vm2756_vm13, %v6895_v55, %v2753_v8  ;;  %5253 = vpow2.f32 %v4814_v39  ;;  %v1803_v27 = vmul.f32 %v6660_v20, %v1802_v36  ;;  %v6995_v35 = vadd.f32 1.0, %v5250_v24 }
 0x178   : > { %v2762_v33 = vsel %vm2759_vm12, %v2761_v40, %v2757_v22  ;;  %vm1805_vm0 = vweird.f32 %v6615_v34  ;;  %v1427_v46 = vsub.f32 1.0, %v1426_v53  ;;  %vm1430_vm1 = vweird.f32 %v9247_v37 }
 0x179   : > { %4874 = vmatmul.msk.f32.gmra.mxu0 %vm3682_vm15, %v2762_v33  ;;  %v1804_v59 = vadd.f32 %v6660_v20, %v1803_v27  ;;  %v1436_v21 = vand.u32 2147483648, %v9247_v37  ;;  %v2765_v55 = vmul.f32 %v6976_v29, %v6900_v5  ;;  %vm1807_vm3 = vmor %vm1805_vm0, %vm1806_vm14  ;;  %v1812_v52 = vor.u32 1.1754944e-38, %v1811_v63 }
 0x17a   : > { %v1428_v1 = vmul.f32 %v6267_v47, %v1427_v46  ;;  %vm1431_vm4 = vweird.f32 %v6267_v47  ;;  %v1434_v34 = vand.u32 2147483647, %v9247_v37  ;;  %vm1810_vm5 = vcmp.eq.f32.partialorder %v1809_v32, 8.507059e+37 }
 0x17b   : > { %v2289_v15 = vpop.f32.mrf.mxu1  ;;  %v1808_v17 = vsel %vm1807_vm3, %v6660_v20, %v1804_v59  ;;  %v2766_v13 = vsub.f32 1.0, %v2765_v55  ;;  %v2773_v62 = vand.u32 2147483647, %v6900_v5  ;;  %vm2770_vm6 = vweird.f32 %v6976_v29  ;;  %vm1432_vm7 = vmor %vm1430_vm1, %vm1431_vm4 }
 0x17c   : > { %v1813_v56 = vsel %vm1810_vm5, %v1812_v52, %v1808_v17  ;;  %v1429_v7 = vadd.f32 %v6267_v47, %v1428_v1  ;;  %v2775_v30 = vand.u32 2147483648, %v6900_v5  ;;  %v1437_v9 = vor.u32 1.1754944e-38, %v1436_v21 }
 0x17d   : > { %v5254_v24 = vpop.eup %5253  ;;  %4791 = vmatmul.msk.f32.gmra.mxu3 %vm2058_vm2, %v1813_v56  ;;  %v2767_v20 = vmul.f32 %v6976_v29, %v2766_v13  ;;  %v2290_v39 = vadd.f32 %v6644_v2, %v2289_v15  ;;  %v1816_v25 = vmul.f32 %v6531_v58, %v6486_v19  ;;  %5255 = vrcp.f32 %v6995_v35 }
 0x17e   : > { %v1433_v8 = vsel %vm1432_vm7, %v6267_v47, %v1429_v7  ;;  %vm1435_vm8 = vcmp.eq.f32.partialorder %v1434_v34, 8.507059e+37  ;;  %vm2769_vm9 = vweird.f32 %v6900_v5  ;;  %vm2774_vm10 = vcmp.eq.f32.partialorder %v2773_v62, 8.507059e+37 }
 0x17f   : > { %v1438_v40 = vsel %vm1435_vm8, %v1437_v9, %v1433_v8  ;;  %v2768_v63 = vadd.f32 %v6976_v29, %v2767_v20  ;;  %v4815_v37 = vmul.f32 -1.442695, %v2290_v39  ;;  %v7025_v53 = vadd.f32 1.0, %v5254_v24  ;;  %vm2771_vm11 = vmor %vm2769_vm9, %vm2770_vm6 }
 0x180   : > { %4766 = vmatmul.msk.f32.gmra.mxu1 %vm2058_vm2, %v1438_v40  ;;  %v2776_v15 = vor.u32 1.1754944e-38, %v2775_v30  ;;  %v1817_v22 = vsub.f32 1.0, %v1816_v25  ;;  %v1441_v47 = vmul.f32 %v6314_v31, %v6269_v26  ;;  %vm1820_vm12 = vweird.f32 %v6486_v19 }
 0x181   : > { %v2772_v5 = vsel %vm2771_vm11, %v6976_v29, %v2768_v63  ;;  %v1824_v27 = vand.u32 2147483647, %v6486_v19  ;;  %v1826_v32 = vand.u32 2147483648, %v6486_v19  ;;  %5257 = vpow2.f32 %v4815_v37 }
 0x182   : > { %v2777_v33 = vsel %vm2774_vm10, %v2776_v15, %v2772_v5  ;;  %v1818_v46 = vmul.f32 %v6531_v58, %v1817_v22  ;;  %vm1821_vm13 = vweird.f32 %v6531_v58  ;;  %v1442_v59 = vsub.f32 1.0, %v1441_v47 }
 0x183   : > { %v2292_v36 = vpop.f32.mrf.mxu1  ;;  %4875 = vmatmul.msk.f32.gmra.mxu0 %vm3682_vm15, %v2777_v33  ;;  %vm1445_vm14 = vweird.f32 %v6269_v26  ;;  %vm1446_vm0 = vweird.f32 %v6314_v31  ;;  %v2780_v29 = vmul.f32 %v6990_v3, %v6955_v0  ;;  %v7043_v21 = vpop.eup %5255  ;;  %v1449_v52 = vand.u32 2147483647, %v6269_v26  ;;  %vm1822_vm1 = vmor %vm1820_vm12, %vm1821_vm13 }
 0x184   : > { %v1819_v55 = vadd.f32 %v6531_v58, %v1818_v46  ;;  %v1451_v1 = vand.u32 2147483648, %v6269_v26  ;;  %v2788_v34 = vand.u32 2147483647, %v6955_v0  ;;  %vm1825_vm3 = vcmp.eq.f32.partialorder %v1824_v27, 8.507059e+37  ;;  %vm1447_vm5 = vmor %vm1445_vm14, %vm1446_vm0 }
 0x185   : > { %v1827_v17 = vor.u32 1.1754944e-38, %v1826_v32  ;;  %v1443_v13 = vmul.f32 %v6314_v31, %v1442_v59  ;;  %v2781_v62 = vsub.f32 1.0, %v2780_v29  ;;  %vm2785_vm4 = vweird.f32 %v6990_v3 }
 0x186   : > { %v1823_v56 = vsel %vm1822_vm1, %v6531_v58, %v1819_v55  ;;  %v2790_v7 = vand.u32 2147483648, %v6955_v0  ;;  %v2293_v30 = vadd.f32 %v6644_v2, %v2292_v36  ;;  %v1831_v19 = vmul.f32 %v6635_v57, %v6589_v6 }
 0x187   : > { %v1828_v24 = vsel %vm1825_vm3, %v1827_v17, %v1823_v56  ;;  %v1444_v9 = vadd.f32 %v6314_v31, %v1443_v13  ;;  %v2782_v20 = vmul.f32 %v6990_v3, %v2781_v62  ;;  %v5258_v39 = vpop.eup %5257  ;;  %vm1450_vm6 = vcmp.eq.f32.partialorder %v1449_v52, 8.507059e+37 }
 0x188   : > { %4792 = vmatmul.msk.f32.gmra.mxu3 %vm2058_vm2, %v1828_v24  ;;  %v1452_v58 = vor.u32 1.1754944e-38, %v1451_v1  ;;  %vm2784_vm7 = vweird.f32 %v6955_v0  ;;  %vm7066_vm8 = vcmp.eq.f32.partialorder %v2788_v34, 8.507059e+37  ;;  %v4816_v63 = vmul.f32 -1.442695, %v2293_v30 }
 0x189   : > { %v1448_v36 = vsel %vm1447_vm5, %v6314_v31, %v1444_v9  ;;  %v2783_v40 = vadd.f32 %v6990_v3, %v2782_v20  ;;  %v1832_v37 = vsub.f32 1.0, %v1831_v19  ;;  %vm2786_vm9 = vmor %vm2784_vm7, %vm2785_vm4  ;;  %v2791_v26 = vor.u32 1.1754944e-38, %v2790_v7  ;;  %v9250_v31 = vld [vmem:[#allocation29_spill] sm:$0xff] }
 0x18a   : > { %v1453_v15 = vsel %vm1450_vm6, %v1452_v58, %v1448_v36  ;;  %v1839_v22 = vand.u32 2147483647, %v6589_v6  ;;  %v1841_v0 = vand.u32 2147483648, %v6589_v6  ;;  %vm1836_vm10 = vweird.f32 %v6635_v57 }
 0x18b   : > { %v2295_v8 = vpop.f32.mrf.mxu1  ;;  %4767 = vmatmul.msk.f32.gmra.mxu1 %vm2058_vm2, %v1453_v15  ;;  %v2787_v47 = vsel %vm2786_vm9, %v6990_v3, %v2783_v40  ;;  %v1833_v5 = vmul.f32 %v6635_v57, %v1832_v37  ;;  %v1456_v27 = vmul.f32 %v6356_v54, %v9250_v31  ;;  %5259 = vrcp.f32 %v7025_v53  ;;  %v9253_v15 = vld [vmem:[#allocation35_spill] sm:$0xff] }
 0x18c   : > { %v7083_v32 = vadd.f32 1.0, %v5258_v39  ;;  %v2792_v33 = vsel %vm7066_vm8, %v2791_v26, %v2787_v47  ;;  %vm1835_vm11 = vweird.f32 %v6589_v6  ;;  %5261 = vpow2.f32 %v4816_v63 }
 0x18d   : > { %4876 = vmatmul.msk.f32.gmra.mxu0 %vm3682_vm15, %v2792_v33  ;;  %v1834_v3 = vadd.f32 %v6635_v57, %v1833_v5  ;;  %vm1840_vm12 = vcmp.eq.f32.partialorder %v1839_v22, 8.507059e+37  ;;  %v1457_v46 = vsub.f32 1.0, %v1456_v27  ;;  %vm1837_vm13 = vmor %vm1835_vm11, %vm1836_vm10  ;;  %v1842_v59 = vor.u32 1.1754944e-38, %v1841_v0 }
 0x18e   : > { %vm1461_vm14 = vweird.f32 %v6356_v54  ;;  %v1466_v29 = vand.u32 2147483648, %v9250_v31  ;;  %v2795_v55 = vmul.f32 %v7043_v21, %v6995_v35  ;;  %v1464_v1 = vand.u32 2147483647, %v9250_v31 }
 0x18f   : > { %v1838_v52 = vsel %vm1837_vm13, %v6635_v57, %v1834_v3  ;;  %v1458_v6 = vmul.f32 %v6356_v54, %v1457_v46  ;;  %v2803_v34 = vand.u32 2147483647, %v6995_v35  ;;  %5263 = vrcp.f32 %v7083_v32 }
 0x190   : > { %v1843_v17 = vsel %vm1840_vm12, %v1842_v59, %v1838_v52  ;;  %v2796_v13 = vsub.f32 1.0, %v2795_v55  ;;  %v2805_v62 = vand.u32 2147483648, %v6995_v35  ;;  %vm1460_vm0 = vweird.f32 %v9250_v31 }
 0x191   : > { %4793 = vmatmul.msk.f32.gmra.mxu3 %vm2058_vm2, %v1843_v17  ;;  %v1459_v56 = vadd.f32 %v6356_v54, %v1458_v6  ;;  %vm2799_vm1 = vweird.f32 %v6995_v35  ;;  %v1846_v57 = vmul.f32 %v6728_v41, %v6662_v60  ;;  %v7106_v7 = vpop.eup %5259  ;;  %vm1462_vm3 = vmor %vm1460_vm0, %vm1461_vm14  ;;  %v1467_v30 = vor.u32 1.1754944e-38, %v1466_v29 }
 0x192   : > { %v2797_v24 = vmul.f32 %v7043_v21, %v2796_v13  ;;  %vm2800_vm4 = vweird.f32 %v7043_v21  ;;  %v2296_v9 = vadd.f32 %v6644_v2, %v2295_v8  ;;  %v5262_v19 = vpop.eup %5261  ;;  %vm1465_vm5 = vcmp.eq.f32.partialorder %v1464_v1, 8.507059e+37 }
 0x193   : > { %v2298_v20 = vpop.f32.mrf.mxu1  ;;  %v1463_v39 = vsel %vm1462_vm3, %v6356_v54, %v1459_v56  ;;  %vm7114_vm6 = vcmp.eq.f32.partialorder %v2803_v34, 8.507059e+37  ;;  %v1847_v25 = vsub.f32 1.0, %v1846_v57  ;;  %v2806_v63 = vor.u32 1.1754944e-38, %v2805_v62  ;;  %vm2801_vm7 = vmor %vm2799_vm1, %vm2800_vm4 }
 0x194   : > { %v1468_v36 = vsel %vm1465_vm5, %v1467_v30, %v1463_v39  ;;  %v2798_v40 = vadd.f32 %v7043_v21, %v2797_v24  ;;  %v1854_v37 = vand.u32 2147483647, %v6662_v60  ;;  %vm1851_vm8 = vweird.f32 %v6728_v41 }
 0x195   : > { %4768 = vmatmul.msk.f32.gmra.mxu1 %vm2058_vm2, %v1468_v36  ;;  %v1848_v8 = vmul.f32 %v6728_v41, %v1847_v25  ;;  %v1856_v54 = vand.u32 2147483648, %v6662_v60  ;;  %v1471_v26 = vmul.f32 %v6427_v14, %v9253_v15  ;;  %v7128_v22 = vpop.eup %5263  ;;  %v7130_v0 = vadd.f32 1.0, %v5262_v19  ;;  %v9256_v19 = vld [vmem:[#allocation22_spill] sm:$0xff] }
 0x196   : > { %v2802_v47 = vsel %vm2801_vm7, %v7043_v21, %v2798_v40  ;;  %v4817_v5 = vmul.f32 -1.442695, %v2296_v9  ;;  %vm1850_vm9 = vweird.f32 %v6662_v60  ;;  %vm1855_vm10 = vcmp.eq.f32.partialorder %v1854_v37, 8.507059e+37 }
 0x197   : > { %v2807_v35 = vsel %vm7114_vm6, %v2806_v63, %v2802_v47  ;;  %v1849_v31 = vadd.f32 %v6728_v41, %v1848_v8  ;;  %v1472_v27 = vsub.f32 1.0, %v1471_v26  ;;  %vm1852_vm11 = vmor %vm1850_vm9, %vm1851_vm8  ;;  %v1857_v33 = vor.u32 1.1754944e-38, %v1856_v54 }
 0x198   : > { %4877 = vmatmul.msk.f32.gmra.mxu0 %vm3682_vm15, %v2807_v35  ;;  %vm1476_vm12 = vweird.f32 %v6427_v14  ;;  %v1481_v3 = vand.u32 2147483648, %v9253_v15  ;;  %v2810_v21 = vmul.f32 %v7106_v7, %v7025_v53  ;;  %v1479_v59 = vand.u32 2147483647, %v9253_v15 }
 0x199   : > { %v1853_v60 = vsel %vm1852_vm11, %v6728_v41, %v1849_v31  ;;  %v1473_v46 = vmul.f32 %v6427_v14, %v1472_v27  ;;  %v2818_v29 = vand.u32 2147483647, %v7025_v53  ;;  %v7149_v55 = vmul.f32 -1.442695, %v825_v12 }
 0x19a   : > { %5265 = vrcp.f32 %v7130_v0  ;;  %v1858_v52 = vsel %vm1855_vm10, %v1857_v33, %v1853_v60  ;;  %v2811_v6 = vsub.f32 1.0, %v2810_v21  ;;  %vm1475_vm13 = vweird.f32 %v9253_v15 }
 0x19b   : > { %5267 = vpow2.f32 %v4817_v5  ;;  %4794 = vmatmul.msk.f32.gmra.mxu3 %vm2058_vm2, %v1858_v52  ;;  %v1474_v41 = vadd.f32 %v6427_v14, %v1473_v46  ;;  %v2820_v1 = vand.u32 2147483648, %v7025_v53  ;;  %vm1477_vm14 = vmor %vm1475_vm13, %vm1476_vm12  ;;  %v1482_v34 = vor.u32 1.1754944e-38, %v1481_v3  ;;  %v7162_v12 = vpop.f32.mrf.mxu1 }
 0x19c   : > { %v2812_v61 = vmul.f32 %v7106_v7, %v2811_v6  ;;  %vm2815_vm0 = vweird.f32 %v7106_v7  ;;  %v1861_v51 = vmul.f32 %v6572_v38, %v6533_v28  ;;  %vm1480_vm1 = vcmp.eq.f32.partialorder %v1479_v59, 8.507059e+37 }
 0x19d   : > { %v1478_v17 = vsel %vm1477_vm14, %v6427_v14, %v1474_v41  ;;  %vm2814_vm3 = vweird.f32 %v7025_v53  ;;  %vm7166_vm4 = vcmp.eq.f32.partialorder %v2818_v29, 8.507059e+37  ;;  %v2299_v57 = vadd.f32 %v6644_v2, %v2298_v20  ;;  %v9257_v53 = vld [vmem:[#allocation27_spill] sm:$0xff] }
 0x19e   : > { %v1483_v62 = vsel %vm1480_vm1, %v1482_v34, %v1478_v17  ;;  %v2813_v56 = vadd.f32 %v7106_v7, %v2812_v61  ;;  %v1862_v30 = vsub.f32 1.0, %v1861_v51  ;;  %vm2816_vm5 = vmor %vm2814_vm3, %vm2815_vm0  ;;  %v2821_v24 = vor.u32 1.1754944e-38, %v2820_v1  ;;  %v7187_v63 = vpop.f32.mrf.mxu3  ;;  %v7230_v61 = vld [vmem:[%s9095_s4] ss:$0 sm:$0xff] }
 0x19f   : > { %4769 = vmatmul.msk.f32.gmra.mxu1 %vm2058_vm2, %v1483_v62  ;;  %v1869_v9 = vand.u32 2147483647, %v6533_v28  ;;  %v1871_v14 = vand.u32 2147483648, %v6533_v28  ;;  %v1486_v39 = vmul.f32 %v9257_v53, %v9256_v19  ;;  %vm1865_vm6 = vweird.f32 %v6533_v28 }
 0x1a0   : > { %v7177_v58 = vpop.eup %5265  ;;  %v2817_v25 = vsel %vm2816_vm5, %v7106_v7, %v2813_v56  ;;  %v1863_v36 = vmul.f32 %v6572_v38, %v1862_v30  ;;  %vm1866_vm7 = vweird.f32 %v6572_v38  ;;  %vm1490_vm8 = vweird.f32 %v9256_v19 }
 0x1a1   : > { %v5268_v2 = vpop.eup %5267  ;;  %v2822_v20 = vsel %vm7166_vm4, %v2821_v24, %v2817_v25  ;;  %v1487_v40 = vsub.f32 1.0, %v1486_v39  ;;  %vm1491_vm9 = vweird.f32 %v9257_v53  ;;  %v1494_v37 = vand.u32 2147483647, %v9256_v19  ;;  %vm1867_vm10 = vmor %vm1865_vm6, %vm1866_vm7 }
 0x1a2   : > { %4878 = vmatmul.msk.f32.gmra.mxu0 %vm3682_vm15, %v2822_v20  ;;  %v1864_v7 = vadd.f32 %v6572_v38, %v1863_v36  ;;  %v1496_v28 = vand.u32 2147483648, %v9256_v19  ;;  %v2825_v8 = vmul.f32 %v7128_v22, %v7083_v32  ;;  %v4818_v54 = vmul.f32 -1.442695, %v2299_v57  ;;  %vm7197_vm12 = vmor %vm1490_vm8, %vm1491_vm9  ;;  %v795_v36 = vpop.permute.xlu2 %794 }
 0x1a3   : > { %vm1870_vm11 = vcmp.eq.f32.partialorder %v1869_v9, 8.507059e+37  ;;  %v1872_v15 = vor.u32 1.1754944e-38, %v1871_v14  ;;  %v1488_v26 = vmul.f32 %v9257_v53, %v1487_v40  ;;  %v2833_v27 = vand.u32 2147483647, %v7083_v32 }
 0x1a4   : > { %v1868_v47 = vsel %vm1867_vm10, %v6572_v38, %v1864_v7  ;;  %v1497_v35 = vor.u32 1.1754944e-38, %v1496_v28  ;;  %v2826_v31 = vsub.f32 1.0, %v2825_v8  ;;  %vm1495_vm13 = vcmp.eq.f32.partialorder %v1494_v37, 8.507059e+37 }
 0x1a5   : > { %v1873_v33 = vsel %vm1870_vm11, %v1872_v15, %v1868_v47  ;;  %v1489_v3 = vadd.f32 %v9257_v53, %v1488_v26  ;;  %v2835_v21 = vand.u32 2147483648, %v7083_v32  ;;  %5269 = vrcp.f32 %v6672_v11 }
 0x1a6   : > { %4795 = vmatmul.msk.f32.gmra.mxu3 %vm2058_vm2, %v1873_v33  ;;  %v2827_v38 = vmul.f32 %v7128_v22, %v2826_v31  ;;  %vm2830_vm14 = vweird.f32 %v7128_v22  ;;  %v1876_v60 = vmul.f32 %v6786_v50, %v6697_v49  ;;  %v7210_v46 = vpop.f32.mrf.mxu1  ;;  %v4737_v59 = vmul.f32 -1.442695, %v827_v4  ;;  %v9260_v4 = vld [vmem:[#allocation25_spill] sm:$0xff] }
 0x1a7   : > { %5271 = vpow2.f32 %v7149_v55  ;;  %v7216_v29 = vadd.f32 1.0, %v5268_v2  ;;  %v1493_v52 = vsel %vm7197_vm12, %v9257_v53, %v1489_v3  ;;  %vm2829_vm0 = vweird.f32 %v7083_v32  ;;  %v9261_v55 = vld [vmem:[#allocation31_spill] sm:$0xff] }
 0x1a8   : > { %5273 = vpow2.f32 %v4818_v54  ;;  %v1498_v6 = vsel %vm1495_vm13, %v1497_v35, %v1493_v52  ;;  %v2828_v41 = vadd.f32 %v7128_v22, %v2827_v38  ;;  %vm2831_vm1 = vmor %vm2829_vm0, %vm2830_vm14  ;;  %vm2834_vm3 = vcmp.eq.f32.partialorder %v2833_v27, 8.507059e+37 }
 0x1a9   : > { %4770 = vmatmul.msk.f32.gmra.mxu1 %vm2058_vm2, %v1498_v6  ;;  %v2836_v23 = vor.u32 1.1754944e-38, %v2835_v21  ;;  %v1877_v10 = vsub.f32 1.0, %v1876_v60  ;;  %v1501_v1 = vmul.f32 %v9261_v55, %v9260_v4  ;;  %v2302_v51 = vadd.f32 %v7230_v61, %v7162_v12  ;;  %v787_v60 = vpop.permute.xlu0 %786  ;;  %v9266_v6 = vld [vmem:[#allocation13_spill] sm:$0xff] }
 0x1aa   : > { %v2832_v34 = vsel %vm2831_vm1, %v7128_v22, %v2828_v41  ;;  %v1884_v32 = vand.u32 2147483647, %v6697_v49  ;;  %v1886_v17 = vand.u32 2147483648, %v6697_v49  ;;  %vm1881_vm4 = vweird.f32 %v6786_v50  ;;  %v7239_v22 = vpop.f32.mrf.mxu3  ;;  %v9267_v41 = vld [vmem:[#allocation17_spill] sm:$0xff] }
 0x1ab   : > { %v2837_v13 = vsel %vm2834_vm3, %v2836_v23, %v2832_v34  ;;  %v1878_v62 = vmul.f32 %v6786_v50, %v1877_v10  ;;  %vm1505_vm5 = vweird.f32 %v9260_v4  ;;  %v7241_v56 = vpop.eup %5269  ;;  %v1502_v57 = vsub.f32 1.0, %v1501_v1 }
 0x1ac   : > { %4879 = vmatmul.msk.f32.gmra.mxu0 %vm3682_vm15, %v2837_v13  ;;  %vm1506_vm6 = vweird.f32 %v9261_v55  ;;  %v1509_v12 = vand.u32 2147483647, %v9260_v4  ;;  %v1511_v30 = vand.u32 2147483648, %v9260_v4  ;;  %5275 = vrcp.f32 %v7216_v29 }
 0x1ad   : > { %v5272_v24 = vpop.eup %5271  ;;  %v1879_v9 = vadd.f32 %v6786_v50, %v1878_v62  ;;  %vm1880_vm7 = vweird.f32 %v6697_v49  ;;  %v2840_v14 = vmul.f32 %v7177_v58, %v7130_v0  ;;  %v4819_v53 = vmul.f32 -1.442695, %v2302_v51  ;;  %vm7260_vm10 = vmor %vm1505_vm5, %vm1506_vm6 }
 0x1ae   : > { %v5274_v19 = vpop.eup %5273  ;;  %vm1882_vm8 = vmor %vm1880_vm7, %vm1881_vm4  ;;  %vm1885_vm9 = vcmp.eq.f32.partialorder %v1884_v32, 8.507059e+37  ;;  %v1887_v39 = vor.u32 1.1754944e-38, %v1886_v17  ;;  %v1503_v25 = vmul.f32 %v9261_v55, %v1502_v57  ;;  %vm7264_vm11 = vcmp.eq.f32.partialorder %v1509_v12, 8.507059e+37 }
 0x1af   : > { %v1883_v2 = vsel %vm1882_vm8, %v6786_v50, %v1879_v9  ;;  %v1512_v40 = vor.u32 1.1754944e-38, %v1511_v30  ;;  %v2841_v7 = vsub.f32 1.0, %v2840_v14  ;;  %v2848_v8 = vand.u32 2147483647, %v7130_v0 }
 0x1b0   : > { %v1888_v37 = vsel %vm1885_vm9, %v1887_v39, %v1883_v2  ;;  %v1504_v28 = vadd.f32 %v9261_v55, %v1503_v25  ;;  %v2850_v50 = vand.u32 2147483648, %v7130_v0  ;;  %v7271_v54 = vpop.f32.mrf.mxu1  ;;  %5277 = vpow2.f32 %v4737_v59 }
 0x1b1   : > { %4796 = vmatmul.msk.f32.gmra.mxu3 %vm2058_vm2, %v1888_v37  ;;  %v2842_v15 = vmul.f32 %v7177_v58, %v2841_v7  ;;  %vm2845_vm12 = vweird.f32 %v7177_v58  ;;  %v7277_v26 = vmul.f32 %v6375_v18, %v795_v36  ;;  %v7279_v47 = vadd.f32 1.0, %v5274_v19 }
 0x1b2   : > { %v1508_v5 = vsel %vm7260_vm10, %v9261_v55, %v1504_v28  ;;  %v1891_v35 = vmul.f32 %v6597_v42, %v6560_v44  ;;  %v7286_v31 = vpop.eup %5275  ;;  %5279 = vpow2.f32 %v4819_v53  ;;  %vm2844_vm13 = vweird.f32 %v7130_v0  ;;  %v7300_v0 = vpop.f32.mrf.mxu3 }
 0x1b3   : > { %v1513_v27 = vsel %vm7264_vm11, %v1512_v40, %v1508_v5  ;;  %v2843_v33 = vadd.f32 %v7177_v58, %v2842_v15  ;;  %vm2846_vm14 = vmor %vm2844_vm13, %vm2845_vm12  ;;  %vm2849_vm0 = vcmp.eq.f32.partialorder %v2848_v8, 8.507059e+37  ;;  %v2851_v3 = vor.u32 1.1754944e-38, %v2850_v50  ;;  %v779_v5 = vpop.permute.xlu1 %778 }
 0x1b4   : > { %4771 = vmatmul.msk.f32.gmra.mxu1 %vm2058_vm2, %v1513_v27  ;;  %v2305_v21 = vadd.f32 %v7230_v61, %v7210_v46  ;;  %v1892_v38 = vsub.f32 1.0, %v1891_v35  ;;  %vm1896_vm1 = vweird.f32 %v6597_v42  ;;  %v1901_v52 = vand.u32 2147483648, %v6560_v44 }
 0x1b5   : > { %v2847_v59 = vsel %vm2846_vm14, %v7177_v58, %v2843_v33  ;;  %v1516_v23 = vmul.f32 %v9267_v41, %v9266_v6  ;;  %v1899_v55 = vand.u32 2147483647, %v6560_v44  ;;  %vm1520_vm3 = vweird.f32 %v9266_v6  ;;  %v9271_v33 = vld [vmem:[#allocation33_spill] sm:$0xff] }
 0x1b6   : > { %v2852_v10 = vsel %vm2849_vm0, %v2851_v3, %v2847_v59  ;;  %v1893_v4 = vmul.f32 %v6597_v42, %v1892_v38  ;;  %v7305_v46 = vpop.eup %5277  ;;  %vm1521_vm4 = vweird.f32 %v9267_v41  ;;  %v1524_v1 = vand.u32 2147483647, %v9266_v6 }
 0x1b7   : > { %4880 = vmatmul.msk.f32.gmra.mxu0 %vm3682_vm15, %v2852_v10  ;;  %v1517_v58 = vsub.f32 1.0, %v1516_v23  ;;  %v1526_v34 = vand.u32 2147483648, %v9266_v6  ;;  %v7312_v51 = vmul.f32 %v6375_v18, %v787_v60  ;;  %vm1895_vm5 = vweird.f32 %v6560_v44  ;;  %vm7329_vm8 = vmor %vm1520_vm3, %vm1521_vm4 }
 0x1b8   : > { %v1894_v32 = vadd.f32 %v6597_v42, %v1893_v4  ;;  %v2855_v17 = vmul.f32 %v7286_v31, %v7216_v29  ;;  %v5280_v13 = vpop.eup %5279  ;;  %v7318_v62 = vadd.f32 1.0, %v5272_v24  ;;  %5281 = vrcp.f32 %v7279_v47  ;;  %vm1897_vm6 = vmor %vm1895_vm5, %vm1896_vm1 }
 0x1b9   : > { %v1902_v57 = vor.u32 1.1754944e-38, %v1901_v52  ;;  %v1518_v12 = vmul.f32 %v9267_v41, %v1517_v58  ;;  %vm1900_vm7 = vcmp.eq.f32.partialorder %v1899_v55, 8.507059e+37  ;;  %v1527_v24 = vor.u32 1.1754944e-38, %v1526_v34  ;;  %v7333_v14 = vpop.f32.mrf.mxu1 }
 0x1ba   : > { %v1898_v30 = vsel %vm1897_vm6, %v6597_v42, %v1894_v32  ;;  %v2856_v9 = vsub.f32 1.0, %v2855_v17  ;;  %v4820_v19 = vmul.f32 -1.442695, %v2305_v21  ;;  %vm1525_vm9 = vcmp.eq.f32.partialorder %v1524_v1, 8.507059e+37  ;;  %v7359_v15 = vpop.f32.mrf.mxu3 }
 0x1bb   : > { %v1903_v53 = vsel %vm1900_vm7, %v1902_v57, %v1898_v30  ;;  %v1519_v39 = vadd.f32 %v9267_v41, %v1518_v12  ;;  %vm2860_vm10 = vweird.f32 %v7286_v31  ;;  %v2863_v25 = vand.u32 2147483647, %v7216_v29 }
 0x1bc   : > { %4797 = vmatmul.msk.f32.gmra.mxu3 %vm2058_vm2, %v1903_v53  ;;  %v2857_v42 = vmul.f32 %v7286_v31, %v2856_v9  ;;  %v2865_v36 = vand.u32 2147483648, %v7216_v29  ;;  %v7342_v2 = vadd.f32 1.0, %v6686_v45  ;;  %5283 = vrcp.f32 %v7318_v62  ;;  %v9275_v53 = vld [vmem:[#allocation5_spill] sm:$0xff] }
 0x1bd   : > { %v1523_v49 = vsel %vm7329_vm8, %v9267_v41, %v1519_v39  ;;  %v1906_v20 = vmul.f32 %v7241_v56, %v6672_v11  ;;  %v7350_v40 = vadd.f32 1.0, %v5280_v13  ;;  %vm2859_vm11 = vweird.f32 %v7216_v29  ;;  %v9270_v29 = vld [vmem:[#allocation28_spill] sm:$0xff] }
 0x1be   : > { %v1528_v7 = vsel %vm1525_vm9, %v1527_v24, %v1523_v49  ;;  %v2858_v37 = vadd.f32 %v7286_v31, %v2857_v42  ;;  %v7354_v28 = vpop.eup %5281  ;;  %5285 = vpow2.f32 %v4820_v19  ;;  %vm2861_vm12 = vmor %vm2859_vm11, %vm2860_vm10  ;;  %v2866_v45 = vor.u32 1.1754944e-38, %v2865_v36 }
 0x1bf   : > { %4772 = vmatmul.msk.f32.gmra.mxu1 %vm2058_vm2, %v1528_v7  ;;  %v2308_v8 = vadd.f32 %v7230_v61, %v7271_v54  ;;  %v1907_v50 = vsub.f32 1.0, %v1906_v20  ;;  %vm2864_vm13 = vcmp.eq.f32.partialorder %v2863_v25, 8.507059e+37  ;;  %v1916_v27 = vand.u32 2147483648, %v6672_v11 }
 0x1c0   : > { %v2862_v35 = vsel %vm2861_vm12, %v7286_v31, %v2858_v37  ;;  %v1531_v3 = vmul.f32 %v9271_v33, %v9270_v29  ;;  %vm1911_vm14 = vweird.f32 %v7241_v56  ;;  %v1914_v60 = vand.u32 2147483647, %v6672_v11 }
 0x1c1   : > { %v2867_v21 = vsel %vm2864_vm13, %v2866_v45, %v2862_v35  ;;  %v1908_v38 = vmul.f32 %v7241_v56, %v1907_v50  ;;  %vm1535_vm0 = vweird.f32 %v9270_v29  ;;  %vm1536_vm1 = vweird.f32 %v9271_v33  ;;  %v7382_v55 = vpop.f32.mrf.mxu1  ;;  %v9276_v50 = vld [vmem:[#allocation32_spill] sm:$0xff] }
 0x1c2   : > { %4881 = vmatmul.msk.f32.gmra.mxu0 %vm3682_vm15, %v2867_v21  ;;  %v1532_v54 = vsub.f32 1.0, %v1531_v3  ;;  %v1539_v31 = vand.u32 2147483647, %v9270_v29  ;;  %v7372_v59 = vpop.eup %5283  ;;  %v812_v52 = vmul.f32 %v6375_v18, %v779_v5  ;;  %vm1910_vm3 = vweird.f32 %v6672_v11  ;;  %vm7389_vm6 = vmor %vm1535_vm0, %vm1536_vm1  ;;  %v7412_v36 = vpop.f32.mrf.mxu3  ;;  %v9277_v5 = vld [vmem:[#allocation36_spill] sm:$0xff]  ;;  %v9280_v11 = vld [vmem:[#allocation6_spill] sm:$0xff] }
 0x1c3   : > { %v1909_v6 = vadd.f32 %v7241_v56, %v1908_v38  ;;  %v1541_v41 = vand.u32 2147483648, %v9270_v29  ;;  %5287 = vrcp.f32 %v7350_v40  ;;  %vm1912_vm4 = vmor %vm1910_vm3, %vm1911_vm14  ;;  %v1917_v23 = vor.u32 1.1754944e-38, %v1916_v27 }
 0x1c4   : > { %v1533_v10 = vmul.f32 %v9271_v33, %v1532_v54  ;;  %v2870_v4 = vmul.f32 %v7354_v28, %v7279_v47  ;;  %v5286_v58 = vpop.eup %5285  ;;  %v4821_v1 = vmul.f32 -1.442695, %v2308_v8  ;;  %vm1915_vm5 = vcmp.eq.f32.partialorder %v1914_v60, 8.507059e+37 }
 0x1c5   : > { %v1913_v34 = vsel %vm1912_vm4, %v7241_v56, %v1909_v6  ;;  %v1542_v32 = vor.u32 1.1754944e-38, %v1541_v41  ;;  %vm1540_vm7 = vcmp.eq.f32.partialorder %v1539_v31, 8.507059e+37  ;;  %v7395_v12 = vadd.f32 1.0, %v7305_v46  ;;  %v9274_v56 = vld [vmem:[#allocation8_spill] sm:$0xff] }
 0x1c6   : > { %v1918_v17 = vsel %vm1915_vm5, %v1917_v23, %v1913_v34  ;;  %v1534_v13 = vadd.f32 %v9271_v33, %v1533_v10  ;;  %v2871_v57 = vsub.f32 1.0, %v2870_v4  ;;  %v832_v30 = vsub.f32 %v9274_v56, %v7277_v26 }
 0x1c7   : > { %4798 = vmatmul.msk.f32.gmra.mxu3 %vm2058_vm2, %v1918_v17  ;;  %v2878_v44 = vand.u32 2147483647, %v7279_v47  ;;  %v2880_v24 = vand.u32 2147483648, %v7279_v47  ;;  %vm2875_vm8 = vweird.f32 %v7354_v28  ;;  %v1921_v46 = vmul.f32 %v7372_v59, %v7318_v62 }
 0x1c8   : > { %v1538_v9 = vsel %vm7389_vm6, %v9271_v33, %v1534_v13  ;;  %v2872_v19 = vmul.f32 %v7354_v28, %v2871_v57  ;;  %v828_v39 = vsub.f32 %v9275_v53, %v812_v52  ;;  %v7410_v42 = vadd.f32 1.0, %v5286_v58 }
 0x1c9   : > { %5289 = vpow2.f32 %v4821_v1  ;;  %v1543_v25 = vsel %vm1540_vm7, %v1542_v32, %v1538_v9  ;;  %v7414_v49 = vpop.eup %5287  ;;  %vm2874_vm9 = vweird.f32 %v7279_v47  ;;  %v2311_v7 = vadd.f32 %v7230_v61, %v7333_v14  ;;  %v7434_v38 = vpop.f32.mrf.mxu1 }
 0x1ca   : > { %4773 = vmatmul.msk.f32.gmra.mxu1 %vm2058_vm2, %v1543_v25  ;;  %v2873_v20 = vadd.f32 %v7354_v28, %v2872_v19  ;;  %v1922_v37 = vsub.f32 1.0, %v1921_v46  ;;  %vm2876_vm10 = vmor %vm2874_vm9, %vm2875_vm8  ;;  %vm2879_vm11 = vcmp.eq.f32.partialorder %v2878_v44, 8.507059e+37  ;;  %v2881_v45 = vor.u32 1.1754944e-38, %v2880_v24  ;;  %v9282_v25 = vld [vmem:[#allocation23_spill] sm:$0xff] }
 0x1cb   : > { %v1931_v8 = vand.u32 2147483648, %v7318_v62  ;;  %v1546_v35 = vmul.f32 %v9277_v5, %v9276_v50  ;;  %vm1926_vm12 = vweird.f32 %v7372_v59  ;;  %v1929_v47 = vand.u32 2147483647, %v7318_v62  ;;  %v7458_v13 = vpop.f32.mrf.mxu3 }
 0x1cc   : > { %v2877_v27 = vsel %vm2876_vm10, %v7354_v28, %v2873_v20  ;;  %v1923_v29 = vmul.f32 %v7372_v59, %v1922_v37  ;;  %v4738_v33 = vmul.f32 -1.442695, %v828_v39  ;;  %vm1550_vm13 = vweird.f32 %v9276_v50  ;;  %v791_v39 = vpop.permute.xlu1 %790 }
 0x1cd   : > { %v2882_v3 = vsel %vm2879_vm11, %v2881_v45, %v2877_v27  ;;  %v1547_v14 = vsub.f32 1.0, %v1546_v35  ;;  %vm1925_vm14 = vweird.f32 %v7318_v62  ;;  %vm1551_vm0 = vweird.f32 %v9277_v5 }
 0x1ce   : > { %4882 = vmatmul.msk.f32.gmra.mxu0 %vm3682_vm15, %v2882_v3  ;;  %v1924_v21 = vadd.f32 %v7372_v59, %v1923_v29  ;;  %v1554_v28 = vand.u32 2147483647, %v9276_v50  ;;  %vm1927_vm1 = vmor %vm1925_vm14, %vm1926_vm12  ;;  %v1932_v54 = vor.u32 1.1754944e-38, %v1931_v8  ;;  %v1556_v52 = vand.u32 2147483648, %v9276_v50 }
 0x1cf   : > { %v5290_v60 = vpop.eup %5289  ;;  %v1548_v31 = vmul.f32 %v9277_v5, %v1547_v14  ;;  %v2885_v6 = vmul.f32 %v7414_v49, %v7350_v40  ;;  %5291 = vrcp.f32 %v7410_v42  ;;  %v4822_v41 = vmul.f32 -1.442695, %v2311_v7  ;;  %vm7444_vm4 = vmor %vm1550_vm13, %vm1551_vm0 }
 0x1d0   : > { %v1928_v62 = vsel %vm1927_vm1, %v7372_v59, %v1924_v21  ;;  %vm1930_vm3 = vcmp.eq.f32.partialorder %v1929_v47, 8.507059e+37  ;;  %vm1555_vm5 = vcmp.eq.f32.partialorder %v1554_v28, 8.507059e+37  ;;  %v1557_v58 = vor.u32 1.1754944e-38, %v1556_v52 }
 0x1d1   : > { %v1933_v10 = vsel %vm1930_vm3, %v1932_v54, %v1928_v62  ;;  %v1549_v4 = vadd.f32 %v9277_v5, %v1548_v31  ;;  %5293 = vpow2.f32 %v4738_v33  ;;  %v2886_v1 = vsub.f32 1.0, %v2885_v6 }
 0x1d2   : > { %4799 = vmatmul.msk.f32.gmra.mxu3 %vm2058_vm2, %v1933_v10  ;;  %v2893_v34 = vand.u32 2147483647, %v7350_v40  ;;  %v2895_v59 = vand.u32 2147483648, %v7350_v40  ;;  %5295 = vrcp.f32 %v7342_v2  ;;  %v830_v32 = vsub.f32 %v9280_v11, %v7312_v51 }
 0x1d3   : > { %v1553_v17 = vsel %vm7444_vm4, %v9277_v5, %v1549_v4  ;;  %5297 = vrcp.f32 %v7395_v12  ;;  %v2887_v44 = vmul.f32 %v7414_v49, %v2886_v1  ;;  %vm2890_vm6 = vweird.f32 %v7414_v49 }
 0x1d4   : > { %v1558_v57 = vsel %vm1555_vm5, %v1557_v58, %v1553_v17  ;;  %v4742_v24 = vmul.f32 -1.442695, %v832_v30  ;;  %v7466_v9 = vadd.f32 1.0, %v5290_v60  ;;  %5299 = vpow2.f32 %v4822_v41  ;;  %v9281_v30 = vld [vmem:[#allocation18_spill] sm:$0xff]  ;;  %v7516_v41 = vpop.f32.mrf.mxu3  ;;  %v9285_v17 = vld [vmem:[#allocation7_spill] sm:$0xff] }
 0x1d5   : > { %4774 = vmatmul.msk.f32.gmra.mxu1 %vm2058_vm2, %v1558_v57  ;;  %v1936_v51 = vmul.f32 %v6715_v43, %v6646_v16  ;;  %v7471_v19 = vpop.eup %5291  ;;  %v2888_v46 = vadd.f32 %v7414_v49, %v2887_v44  ;;  %vm2889_vm7 = vweird.f32 %v7350_v40  ;;  %vm2894_vm8 = vcmp.eq.f32.partialorder %v2893_v34, 8.507059e+37  ;;  %v7483_v40 = vpop.f32.mrf.mxu1 }
 0x1d6   : > { %v2896_v53 = vor.u32 1.1754944e-38, %v2895_v59  ;;  %vm2891_vm9 = vmor %vm2889_vm7, %vm2890_vm6  ;;  %vm1941_vm10 = vweird.f32 %v6715_v43  ;;  %v1944_v56 = vand.u32 2147483647, %v6646_v16  ;;  %v1561_v20 = vmul.f32 %v9282_v25, %v9281_v30 }
 0x1d7   : > { %v1937_v26 = vsub.f32 1.0, %v1936_v51  ;;  %v5294_v7 = vpop.eup %5293  ;;  %v2892_v37 = vsel %vm2891_vm9, %v7414_v49, %v2888_v46  ;;  %v1946_v45 = vand.u32 2147483648, %v6646_v16  ;;  %vm1565_vm11 = vweird.f32 %v9281_v30 }
 0x1d8   : > { %vm1566_vm12 = vweird.f32 %v9282_v25  ;;  %v7485_v8 = vpop.eup %5295  ;;  %v2897_v50 = vsel %vm2894_vm8, %v2896_v53, %v2892_v37  ;;  %v1562_v35 = vsub.f32 1.0, %v1561_v20  ;;  %v1569_v27 = vand.u32 2147483647, %v9281_v30 }
 0x1d9   : > { %v1938_v5 = vmul.f32 %v6715_v43, %v1937_v26  ;;  %v7489_v29 = vpop.eup %5297  ;;  %v815_v49 = vmul.f32 %v6375_v18, %v791_v39  ;;  %4883 = vmatmul.msk.f32.gmra.mxu0 %vm3682_vm15, %v2897_v50  ;;  %vm1940_vm13 = vweird.f32 %v6646_v16  ;;  %v1571_v47 = vand.u32 2147483648, %v9281_v30  ;;  %vm7510_vm0 = vmor %vm1565_vm11, %vm1566_vm12  ;;  %v9286_v26 = vld [vmem:[#allocation34_spill] sm:$0xff] }
 0x1da   : > { %v2900_v33 = vmul.f32 %v7471_v19, %v7410_v42  ;;  %v5300_v3 = vpop.eup %5299  ;;  %v7497_v14 = vadd.f32 1.0, %v5294_v7  ;;  %v2314_v21 = vadd.f32 %v7230_v61, %v7382_v55  ;;  %vm1942_vm14 = vmor %vm1940_vm13, %vm1941_vm10  ;;  %v1563_v60 = vmul.f32 %v9282_v25, %v1562_v35 }
 0x1db   : > { %v1939_v28 = vadd.f32 %v6715_v43, %v1938_v5  ;;  %5301 = vrcp.f32 %v7466_v9  ;;  %v1947_v16 = vor.u32 1.1754944e-38, %v1946_v45  ;;  %v1572_v31 = vor.u32 1.1754944e-38, %v1571_v47 }
 0x1dc   : > { %v2901_v55 = vsub.f32 1.0, %v2900_v33  ;;  %vm1945_vm1 = vcmp.eq.f32.partialorder %v1944_v56, 8.507059e+37  ;;  %v1564_v6 = vadd.f32 %v9282_v25, %v1563_v60  ;;  %vm1570_vm3 = vcmp.eq.f32.partialorder %v1569_v27, 8.507059e+37  ;;  %v9287_v56 = vld [vmem:[#allocation37_spill] sm:$0xff]  ;;  %v7560_v47 = vpop.f32.mrf.mxu3 }
 0x1dd   : > { %v1943_v52 = vsel %vm1942_vm14, %v6715_v43, %v1939_v28  ;;  %vm2905_vm4 = vweird.f32 %v7471_v19  ;;  %v2908_v10 = vand.u32 2147483647, %v7410_v42  ;;  %v4740_v4 = vmul.f32 -1.442695, %v830_v32  ;;  %v7540_v53 = vpop.f32.mrf.mxu1 }
 0x1de   : > { %v1948_v62 = vsel %vm1945_vm1, %v1947_v16, %v1943_v52  ;;  %v2902_v23 = vmul.f32 %v7471_v19, %v2901_v55  ;;  %v4823_v58 = vmul.f32 -1.442695, %v2314_v21  ;;  %v1568_v43 = vsel %vm7510_vm0, %v9282_v25, %v1564_v6 }
 0x1df   : > { %4800 = vmatmul.msk.f32.gmra.mxu3 %vm2058_vm2, %v1948_v62  ;;  %v2910_v1 = vand.u32 2147483648, %v7410_v42  ;;  %v1573_v34 = vsel %vm1570_vm3, %v1572_v31, %v1568_v43  ;;  %vm2904_vm5 = vweird.f32 %v7410_v42  ;;  %v1951_v11 = vmul.f32 %v7489_v29, %v7395_v12  ;;  %v799_v43 = vpop.permute.xlu0 %798 }
 0x1e0   : > { %v2903_v59 = vadd.f32 %v7471_v19, %v2902_v23  ;;  %5303 = vpow2.f32 %v4742_v24  ;;  %v831_v32 = vsub.f32 %v9285_v17, %v815_v49  ;;  %v7531_v57 = vadd.f32 1.0, %v5300_v3  ;;  %4775 = vmatmul.msk.f32.gmra.mxu1 %vm2058_vm2, %v1573_v34  ;;  %vm2906_vm6 = vmor %vm2904_vm5, %vm2905_vm4 }
 0x1e1   : > { %v2911_v44 = vor.u32 1.1754944e-38, %v2910_v1  ;;  %v7536_v51 = vpop.eup %5301  ;;  %5305 = vrcp.f32 %v7497_v14  ;;  %vm2909_vm7 = vcmp.eq.f32.partialorder %v2908_v10, 8.507059e+37  ;;  %v1952_v46 = vsub.f32 1.0, %v1951_v11 }
 0x1e2   : > { %v2907_v42 = vsel %vm2906_vm6, %v7471_v19, %v2903_v59  ;;  %5307 = vpow2.f32 %v4740_v4  ;;  %v1961_v39 = vand.u32 2147483648, %v7395_v12  ;;  %v1576_v30 = vmul.f32 %v9287_v56, %v9286_v26 }
 0x1e3   : > { %v2912_v24 = vsel %vm2909_vm7, %v2911_v44, %v2907_v42  ;;  %5309 = vpow2.f32 %v4823_v58  ;;  %v1953_v25 = vmul.f32 %v7489_v29, %v1952_v46  ;;  %vm1956_vm8 = vweird.f32 %v7489_v29  ;;  %v9289_v44 = vld [vmem:[#allocation39_spill] sm:$0xff] }
 0x1e4   : > { %4884 = vmatmul.msk.f32.gmra.mxu0 %vm3682_vm15, %v2912_v24  ;;  %v1959_v19 = vand.u32 2147483647, %v7395_v12  ;;  %v4741_v20 = vmul.f32 -1.442695, %v831_v32  ;;  %5311 = vrcp.f32 %v7531_v57  ;;  %v1577_v7 = vsub.f32 1.0, %v1576_v30  ;;  %v9288_v32 = vld [vmem:[#allocation38_spill] sm:$0xff] }
 0x1e5   : > { %v1954_v37 = vadd.f32 %v7489_v29, %v1953_v25  ;;  %vm1955_vm9 = vweird.f32 %v7395_v12  ;;  %v1586_v45 = vand.u32 2147483648, %v9286_v26  ;;  %v2915_v50 = vmul.f32 %v7536_v51, %v7466_v9  ;;  %v7583_v58 = vpop.f32.mrf.mxu1 }
 0x1e6   : > { %v7555_v5 = vpop.eup %5303  ;;  %vm1957_vm10 = vmor %vm1955_vm9, %vm1956_vm8  ;;  %v1962_v35 = vor.u32 1.1754944e-38, %v1961_v39  ;;  %v1578_v27 = vmul.f32 %v9287_v56, %v1577_v7  ;;  %vm1581_vm11 = vweird.f32 %v9287_v56  ;;  %v1584_v49 = vand.u32 2147483647, %v9286_v26  ;;  %v7613_v7 = vpop.f32.mrf.mxu3 }
 0x1e7   : > { %v7562_v33 = vpop.eup %5305  ;;  %v2317_v12 = vadd.f32 %v7230_v61, %v7434_v38  ;;  %v1958_v3 = vsel %vm1957_vm10, %v7489_v29, %v1954_v37  ;;  %vm1960_vm12 = vcmp.eq.f32.partialorder %v1959_v19, 8.507059e+37  ;;  %v2916_v21 = vsub.f32 1.0, %v2915_v50 }
 0x1e8   : > { %v5308_v28 = vpop.eup %5307  ;;  %v1963_v60 = vsel %vm1960_vm12, %v1962_v35, %v1958_v3  ;;  %v1579_v16 = vadd.f32 %v9287_v56, %v1578_v27  ;;  %vm1580_vm13 = vweird.f32 %v9286_v26  ;;  %v2925_v54 = vand.u32 2147483648, %v7466_v9 }
 0x1e9   : > { %v5310_v31 = vpop.eup %5309  ;;  %4801 = vmatmul.msk.f32.gmra.mxu3 %vm2058_vm2, %v1963_v60  ;;  %vm1582_vm14 = vmor %vm1580_vm13, %vm1581_vm11  ;;  %v1587_v55 = vor.u32 1.1754944e-38, %v1586_v45  ;;  %v2917_v38 = vmul.f32 %v7536_v51, %v2916_v21  ;;  %vm2920_vm0 = vweird.f32 %v7536_v51  ;;  %v2923_v29 = vand.u32 2147483647, %v7466_v9 }
 0x1ea   : > { %v7576_v52 = vpop.eup %5311  ;;  %5313 = vpow2.f32 %v4741_v20  ;;  %v1583_v6 = vsel %vm1582_vm14, %v9287_v56, %v1579_v16  ;;  %vm1585_vm1 = vcmp.eq.f32.partialorder %v1584_v49, 8.507059e+37  ;;  %v1966_v62 = vmul.f32 %v7562_v33, %v7497_v14  ;;  %v7605_v56 = vpop.f32.mrf.mxu0 }
 0x1eb   : > { %v4824_v23 = vmul.f32 -1.442695, %v2317_v12  ;;  %v1588_v10 = vsel %vm1585_vm1, %v1587_v55, %v1583_v6  ;;  %v2918_v4 = vadd.f32 %v7536_v51, %v2917_v38  ;;  %vm2919_vm3 = vweird.f32 %v7466_v9 }
 0x1ec   : > { %v7585_v1 = vadd.f32 1.0, %v5310_v31  ;;  %4776 = vmatmul.msk.f32.gmra.mxu1 %vm2058_vm2, %v1588_v10  ;;  %vm2921_vm4 = vmor %vm2919_vm3, %vm2920_vm0  ;;  %v2926_v34 = vor.u32 1.1754944e-38, %v2925_v54  ;;  %v2320_v59 = vadd.f32 %v7230_v61, %v7483_v40  ;;  %v1967_v11 = vsub.f32 1.0, %v1966_v62  ;;  %v9290_v10 = vld [vmem:[#allocation20_spill] sm:$0xff] }
 0x1ed   : > { %v2922_v17 = vsel %vm2921_vm4, %v7536_v51, %v2918_v4  ;;  %vm2924_vm5 = vcmp.eq.f32.partialorder %v2923_v29, 8.507059e+37  ;;  %v1976_v9 = vand.u32 2147483648, %v7497_v14  ;;  %v1591_v42 = vmul.f32 %v9289_v44, %v9288_v32  ;;  %v7631_v54 = vpop.f32.mrf.mxu1  ;;  %v9291_v4 = vld [vmem:[#allocation26_spill] sm:$0xff] }
 0x1ee   : > { %v2927_v46 = vsel %vm2924_vm5, %v2926_v34, %v2922_v17  ;;  %v1968_v24 = vmul.f32 %v7562_v33, %v1967_v11  ;;  %vm1971_vm6 = vweird.f32 %v7562_v33  ;;  %v1974_v39 = vand.u32 2147483647, %v7497_v14 }
 0x1ef   : > { %v7599_v26 = vadd.f32 1.0, %v5308_v28  ;;  %v7602_v40 = vmul.f32 %v6375_v18, %v799_v43  ;;  %5315 = vpow2.f32 %v4824_v23  ;;  %4885 = vmatmul.msk.f32.gmra.mxu0 %vm3682_vm15, %v2927_v46  ;;  %v1592_v51 = vsub.f32 1.0, %v1591_v42 }
 0x1f0   : > { %v7607_v30 = vpop.eup %5313  ;;  %v1969_v25 = vadd.f32 %v7562_v33, %v1968_v24  ;;  %vm1970_vm7 = vweird.f32 %v7497_v14  ;;  %v1599_v19 = vand.u32 2147483647, %v9288_v32  ;;  %v1601_v20 = vand.u32 2147483648, %v9288_v32 }
 0x1f1   : > { %vm1972_vm8 = vmor %vm1970_vm7, %vm1971_vm6  ;;  %v1977_v18 = vor.u32 1.1754944e-38, %v1976_v9  ;;  %v1593_v37 = vmul.f32 %v9289_v44, %v1592_v51  ;;  %vm1596_vm9 = vweird.f32 %v9289_v44  ;;  %v2930_v45 = vmul.f32 %v7576_v52, %v7531_v57 }
 0x1f2   : > { %5317 = vrcp.f32 %v7585_v1  ;;  %v4825_v50 = vmul.f32 -1.442695, %v2320_v59  ;;  %v1973_v14 = vsel %vm1972_vm8, %v7562_v33, %v1969_v25  ;;  %vm1975_vm10 = vcmp.eq.f32.partialorder %v1974_v39, 8.507059e+37 }
 0x1f3   : > { %v1978_v35 = vsel %vm1975_vm10, %v1977_v18, %v1973_v14  ;;  %v1594_v27 = vadd.f32 %v9289_v44, %v1593_v37  ;;  %vm1595_vm11 = vweird.f32 %v9288_v32  ;;  %v2931_v49 = vsub.f32 1.0, %v2930_v45 }
 0x1f4   : > { %4802 = vmatmul.msk.f32.gmra.mxu3 %vm2058_vm2, %v1978_v35  ;;  %vm1597_vm12 = vmor %vm1595_vm11, %vm1596_vm9  ;;  %vm1600_vm13 = vcmp.eq.f32.partialorder %v1599_v19, 8.507059e+37  ;;  %v1602_v12 = vor.u32 1.1754944e-38, %v1601_v20  ;;  %v2938_v3 = vand.u32 2147483647, %v7531_v57  ;;  %v2940_v21 = vand.u32 2147483648, %v7531_v57 }
 0x1f5   : > { %v5316_v28 = vpop.eup %5315  ;;  %v1598_v60 = vsel %vm1597_vm12, %v9289_v44, %v1594_v27  ;;  %v2932_v33 = vmul.f32 %v7576_v52, %v2931_v49  ;;  %vm2935_vm14 = vweird.f32 %v7576_v52  ;;  %v1981_v16 = vmul.f32 %v7485_v8, %v7342_v2  ;;  %v7657_v44 = vpop.f32.mrf.mxu3 }
 0x1f6   : > { %v7634_v31 = vadd.f32 1.0, %v7555_v5  ;;  %5319 = vrcp.f32 %v7599_v26  ;;  %v833_v55 = vsub.f32 %v6052_v48, %v7602_v40  ;;  %v1603_v38 = vsel %vm1600_vm13, %v1602_v12, %v1598_v60 }
 0x1f7   : > { %5321 = vpow2.f32 %v4825_v50  ;;  %4777 = vmatmul.msk.f32.gmra.mxu1 %vm2058_vm2, %v1603_v38  ;;  %v2933_v29 = vadd.f32 %v7576_v52, %v2932_v33  ;;  %vm2934_vm0 = vweird.f32 %v7531_v57  ;;  %v1982_v6 = vsub.f32 1.0, %v1981_v16  ;;  %v7651_v57 = vpop.f32.mrf.mxu0  ;;  %v9292_v38 = vld [vmem:[#allocation24_spill] sm:$0xff] }
 0x1f8   : > { %v7642_v62 = vpop.eup %5317  ;;  %vm2936_vm1 = vmor %vm2934_vm0, %vm2935_vm14  ;;  %vm2939_vm3 = vcmp.eq.f32.partialorder %v2938_v3, 8.507059e+37  ;;  %v2941_v5 = vor.u32 1.1754944e-38, %v2940_v21  ;;  %v1991_v23 = vand.u32 2147483648, %v7342_v2  ;;  %v1606_v43 = vmul.f32 %v9291_v4, %v9290_v10 }
 0x1f9   : > { %v2937_v48 = vsel %vm2936_vm1, %v7576_v52, %v2933_v29  ;;  %v1983_v34 = vmul.f32 %v7485_v8, %v1982_v6  ;;  %vm1986_vm4 = vweird.f32 %v7485_v8  ;;  %v1989_v59 = vand.u32 2147483647, %v7342_v2  ;;  %v9293_v29 = vld [vmem:[#allocation30_spill] sm:$0xff] }
 0x1fa   : > { %v7653_v11 = vadd.f32 1.0, %v5316_v28  ;;  %v2942_v17 = vsel %vm2939_vm3, %v2941_v5, %v2937_v48  ;;  %v2323_v9 = vadd.f32 %v7230_v61, %v7540_v53  ;;  %v1607_v32 = vsub.f32 1.0, %v1606_v43 }
 0x1fb   : > { %4886 = vmatmul.msk.f32.gmra.mxu0 %vm3682_vm15, %v2942_v17  ;;  %v1984_v52 = vadd.f32 %v7485_v8, %v1983_v34  ;;  %vm1985_vm5 = vweird.f32 %v7342_v2  ;;  %v1992_v42 = vor.u32 1.1754944e-38, %v1991_v23  ;;  %vm1611_vm6 = vweird.f32 %v9291_v4 }
 0x1fc   : > { %v7663_v46 = vpop.eup %5319  ;;  %vm1987_vm7 = vmor %vm1985_vm5, %vm1986_vm4  ;;  %v1608_v24 = vmul.f32 %v9291_v4, %v1607_v32  ;;  %v1614_v39 = vand.u32 2147483647, %v9290_v10  ;;  %v1616_v53 = vand.u32 2147483648, %v9290_v10  ;;  %v2945_v40 = vmul.f32 %v7642_v62, %v7585_v1 }
 0x1fd   : > { %v5322_v51 = vpop.eup %5321  ;;  %5323 = vrcp.f32 %v7634_v31  ;;  %v4743_v25 = vmul.f32 -1.442695, %v833_v55  ;;  %v1988_v2 = vsel %vm1987_vm7, %v7485_v8, %v1984_v52  ;;  %vm1990_vm8 = vcmp.eq.f32.partialorder %v1989_v59, 8.507059e+37  ;;  %v7681_v8 = vpop.f32.mrf.mxu1 }
 0x1fe   : > { %v7673_v19 = vadd.f32 1.0, %v7607_v30  ;;  %v1993_v20 = vsel %vm1990_vm8, %v1992_v42, %v1988_v2  ;;  %v1609_v18 = vadd.f32 %v9291_v4, %v1608_v24  ;;  %vm1610_vm9 = vweird.f32 %v9290_v10  ;;  %v7704_v5 = vpop.f32.mrf.mxu3 }
 0x1ff   : > { %5325 = vrcp.f32 %v7653_v11  ;;  %v4826_v37 = vmul.f32 -1.442695, %v2323_v9  ;;  %4803 = vmatmul.msk.f32.gmra.mxu3 %vm2058_vm2, %v1993_v20  ;;  %vm1612_vm10 = vmor %vm1610_vm9, %vm1611_vm6  ;;  %v1617_v45 = vor.u32 1.1754944e-38, %v1616_v53  ;;  %v2946_v50 = vsub.f32 1.0, %v2945_v40  ;;  %v7700_v33 = vpop.f32.mrf.mxu0 }
 0x200   : > { %v1613_v30 = vsel %vm1612_vm10, %v9291_v4, %v1609_v18  ;;  %vm1615_vm11 = vcmp.eq.f32.partialorder %v1614_v39, 8.507059e+37  ;;  %v2953_v14 = vand.u32 2147483647, %v7585_v1  ;;  %v2955_v35 = vand.u32 2147483648, %v7585_v1 }
 0x201   : > { %5327 = vpow2.f32 %v4743_v25  ;;  %v1618_v27 = vsel %vm1615_vm11, %v1617_v45, %v1613_v30  ;;  %v2947_v49 = vmul.f32 %v7642_v62, %v2946_v50  ;;  %vm2950_vm12 = vweird.f32 %v7642_v62  ;;  %v7739_v25 = vld [vmem:[%s9097_s6] ss:$0 sm:$0xff] }
 0x202   : > { %5329 = vrcp.f32 %v7673_v19  ;;  %v7689_v12 = vadd.f32 1.0, %v5322_v51  ;;  %4778 = vmatmul.msk.f32.gmra.mxu1 %vm2058_vm2, %v1618_v27  ;;  %v1996_v3 = vmul.f32 %v7663_v46, %v7599_v26  ;;  %vm2949_vm13 = vweird.f32 %v7585_v1 }
 0x203   : > { %v7694_v21 = vpop.eup %5323  ;;  %5331 = vpow2.f32 %v4826_v37  ;;  %v2948_v28 = vadd.f32 %v7642_v62, %v2947_v49  ;;  %v2326_v60 = vadd.f32 %v7230_v61, %v7583_v58  ;;  %vm2951_vm14 = vmor %vm2949_vm13, %vm2950_vm12  ;;  %vm2954_vm0 = vcmp.eq.f32.partialorder %v2953_v14, 8.507059e+37 }
 0x204   : > { %v2956_v16 = vor.u32 1.1754944e-38, %v2955_v35  ;;  %v1997_v55 = vsub.f32 1.0, %v1996_v3  ;;  %v1621_v6 = vmul.f32 %v9293_v29, %v9292_v38  ;;  %vm2001_vm1 = vweird.f32 %v7663_v46 }
 0x205   : > { %v7706_v23 = vpop.eup %5325  ;;  %v2952_v10 = vsel %vm2951_vm14, %v7642_v62, %v2948_v28  ;;  %v2004_v1 = vand.u32 2147483647, %v7599_v26  ;;  %v2006_v58 = vand.u32 2147483648, %v7599_v26  ;;  %v1629_v34 = vand.u32 2147483647, %v9292_v38  ;;  %v7728_v39 = vpop.f32.mrf.mxu1 }
 0x206   : > { %v2957_v4 = vsel %vm2954_vm0, %v2956_v16, %v2952_v10  ;;  %v1998_v43 = vmul.f32 %v7663_v46, %v1997_v55  ;;  %v1622_v48 = vsub.f32 1.0, %v1621_v6  ;;  %5333 = vrcp.f32 %v7689_v12  ;;  %v7764_v28 = vld [vmem:[%s9098_s7] sm:$0xf]  ;;  %v7773_v16 = vpop.f32.mrf.mxu3 }
 0x207   : > { %v5328_v59 = vpop.eup %5327  ;;  %4887 = vmatmul.msk.f32.gmra.mxu0 %vm3682_vm15, %v2957_v4  ;;  %vm2000_vm3 = vweird.f32 %v7599_v26  ;;  %v1631_v62 = vand.u32 2147483648, %v9292_v38  ;;  %vm1626_vm4 = vweird.f32 %v9293_v29  ;;  %v2960_v52 = vmul.f32 %v7706_v23, %v7653_v11  ;;  %v7745_v37 = vpop.f32.mrf.mxu0 }
 0x208   : > { %v7718_v17 = vpop.eup %5329  ;;  %v1999_v9 = vadd.f32 %v7663_v46, %v1998_v43  ;;  %v1623_v32 = vmul.f32 %v9293_v29, %v1622_v48  ;;  %v4827_v24 = vmul.f32 -1.442695, %v2326_v60  ;;  %vm2002_vm5 = vmor %vm2000_vm3, %vm2001_vm1  ;;  %vm2005_vm6 = vcmp.eq.f32.partialorder %v2004_v1, 8.507059e+37 }
 0x209   : > { %v5332_v42 = vpop.eup %5331  ;;  %v2007_v26 = vor.u32 1.1754944e-38, %v2006_v58  ;;  %vm1625_vm7 = vweird.f32 %v9292_v38  ;;  %vm7732_vm8 = vcmp.eq.f32.partialorder %v1629_v34, 8.507059e+37  ;;  %v2961_v2 = vsub.f32 1.0, %v2960_v52 }
 0x20a   : > { %v2003_v53 = vsel %vm2002_vm5, %v7663_v46, %v1999_v9  ;;  %v1624_v40 = vadd.f32 %v9293_v29, %v1623_v32  ;;  %vm1627_vm9 = vmor %vm1625_vm7, %vm1626_vm4  ;;  %v1632_v18 = vor.u32 1.1754944e-38, %v1631_v62  ;;  %vm2965_vm10 = vweird.f32 %v7706_v23 }
 0x20b   : > { %v2008_v20 = vsel %vm2005_vm6, %v2007_v26, %v2003_v53  ;;  %v2968_v46 = vand.u32 2147483647, %v7653_v11  ;;  %v2962_v50 = vmul.f32 %v7706_v23, %v2961_v2  ;;  %v2970_v30 = vand.u32 2147483648, %v7653_v11 }
 0x20c   : > { %4804 = vmatmul.msk.f32.gmra.mxu3 %vm2058_vm2, %v2008_v20  ;;  %v1628_v45 = vsel %vm1627_vm9, %v9293_v29, %v1624_v40  ;;  %v2329_v14 = vadd.f32 %v7230_v61, %v7631_v54  ;;  %v7753_v35 = vpop.eup %5333  ;;  %v7755_v27 = vadd.f32 1.0, %v5328_v59  ;;  %5335 = vpow2.f32 %v4827_v24 }
 0x20d   : > { %v1633_v49 = vsel %vm7732_vm8, %v1632_v18, %v1628_v45  ;;  %v2011_v3 = vmul.f32 %v7718_v17, %v7673_v19  ;;  %v7766_v60 = vadd.f32 1.0, %v5332_v42  ;;  %v3893_v61 = vadd.f32 %v7739_v25, %v7605_v56  ;;  %v7785_v4 = vpop.f32.mrf.mxu1 }
 0x20e   : > { %4779 = vmatmul.msk.f32.gmra.mxu1 %vm2058_vm2, %v1633_v49  ;;  %v2963_v54 = vadd.f32 %v7706_v23, %v2962_v50  ;;  %vm2964_vm11 = vweird.f32 %v7653_v11  ;;  %vm2969_vm13 = vcmp.eq.f32.partialorder %v2968_v46, 8.507059e+37  ;;  %v2971_v55 = vor.u32 1.1754944e-38, %v2970_v30  ;;  %v7820_v18 = vpop.f32.mrf.mxu3 }
 0x20f   : > { %vm2966_vm12 = vmor %vm2964_vm11, %vm2965_vm10  ;;  %v4828_v38 = vmul.f32 -1.442695, %v2329_v14  ;;  %v2012_v29 = vsub.f32 1.0, %v2011_v3  ;;  %v2019_v10 = vand.u32 2147483647, %v7673_v19  ;;  %v2021_v1 = vand.u32 2147483648, %v7673_v19  ;;  %v7806_v24 = vpop.f32.mrf.mxu0 }
 0x210   : > { %v2967_v6 = vsel %vm2966_vm12, %v7706_v23, %v2963_v54  ;;  %v7781_v56 = vperm.slane %v7764_v28, 0  ;;  %vm2016_vm14 = vweird.f32 %v7718_v17  ;;  %vm4160_vm0 = vcmask 64512  }
 0x211   : > { %v2972_v58 = vsel %vm2969_vm13, %v2971_v55, %v2967_v6  ;;  %v2013_v11 = vmul.f32 %v7718_v17, %v2012_v29  ;;  %5337 = vrcp.f32 %v7755_v27  ;;  %vm2015_vm1 = vweird.f32 %v7673_v19  ;;  %v7802_v19 = vld [vmem:[%s9095_s4] ss:$0 sm:$0xff] }
 0x212   : > { %4888 = vmatmul.msk.f32.gmra.mxu0 %vm3682_vm15, %v2972_v58  ;;  %v4096_v23 = vmul.f32 %v7781_v56, %v3893_v61  ;;  %v5336_v43 = vpop.eup %5335  ;;  %5339 = vrcp.f32 %v7766_v60  ;;  %v2975_v34 = vmul.f32 %v7753_v35, %v7689_v12  ;;  %vm2017_vm3 = vmor %vm2015_vm1, %vm2016_vm14  ;;  %vm2020_vm4 = vcmp.eq.f32.partialorder %v2019_v10, 8.507059e+37 }
 0x213   : > { %v2014_v48 = vadd.f32 %v7718_v17, %v2013_v11  ;;  %5341 = vpow2.f32 %v4828_v38  ;;  %v2022_v59 = vor.u32 1.1754944e-38, %v2021_v1  ;;  %v3896_v32 = vadd.f32 %v7739_v25, %v7651_v57 }
 0x214   : > { %v4161_v62 = vsel %vm4160_vm0, %v4096_v23, 0.0  ;;  %v2976_v52 = vsub.f32 1.0, %v2975_v34  ;;  %v2332_v42 = vadd.f32 %v7802_v19, %v7681_v8  ;;  %v7808_v26 = vadd.f32 1.0, %v5336_v43 }
 0x215   : > { %v2018_v9 = vsel %vm2017_vm3, %v7718_v17, %v2014_v48  ;;  %4162 = vadd.xlane.f32.xlu1 %v4161_v62  ;;  %v2985_v17 = vand.u32 2147483648, %v7689_v12  ;;  %v2026_v40 = vmul.f32 %v7694_v21, %v7634_v31  ;;  %vm2980_vm5 = vweird.f32 %v7753_v35  ;;  %v7826_v49 = vpop.f32.mrf.mxu1 }
 0x216   : > { %v2023_v53 = vsel %vm2020_vm4, %v2022_v59, %v2018_v9  ;;  %v2977_v57 = vmul.f32 %v7753_v35, %v2976_v52  ;;  %v2983_v51 = vand.u32 2147483647, %v7689_v12  ;;  %v4829_v2 = vmul.f32 -1.442695, %v2332_v42 }
 0x217   : > { %4805 = vmatmul.msk.f32.gmra.mxu3 %vm2058_vm2, %v2023_v53  ;;  %v7817_v8 = vpop.eup %5337  ;;  %vm2979_vm6 = vweird.f32 %v7689_v12  ;;  %v2027_v20 = vsub.f32 1.0, %v2026_v40  ;;  %v2034_v50 = vand.u32 2147483647, %v7634_v31  ;;  %v2036_v30 = vand.u32 2147483648, %v7634_v31 }
 0x218   : > { %v5340_v46 = vpop.eup %5339  ;;  %v2978_v45 = vadd.f32 %v7753_v35, %v2977_v57  ;;  %v4097_v14 = vmul.f32 %v7781_v56, %v3896_v32  ;;  %5343 = vrcp.f32 %v7808_v26  ;;  %vm2981_vm7 = vmor %vm2979_vm6, %vm2980_vm5  ;;  %v2986_v12 = vor.u32 1.1754944e-38, %v2985_v17  ;;  %v7860_v17 = vpop.f32.mrf.mxu3 }
 0x219   : > { %v5342_v3 = vpop.eup %5341  ;;  %v2028_v61 = vmul.f32 %v7694_v21, %v2027_v20  ;;  %vm2031_vm8 = vweird.f32 %v7694_v21  ;;  %vm2984_vm9 = vcmp.eq.f32.partialorder %v2983_v51, 8.507059e+37  ;;  %5345 = vpow2.f32 %v4829_v2 }
 0x21a   : > { %v2982_v54 = vsel %vm2981_vm7, %v7753_v35, %v2978_v45  ;;  %v4164_v55 = vsel %vm4160_vm0, %v4097_v14, 0.0  ;;  %vm2030_vm10 = vweird.f32 %v7634_v31  ;;  %v2990_v6 = vmul.f32 %v5340_v46, %v7766_v60  ;;  %v7841_v35 = vpop.f32.mrf.mxu0 }
 0x21b   : > { %v2987_v38 = vsel %vm2984_vm9, %v2986_v12, %v2982_v54  ;;  %v2029_v29 = vadd.f32 %v7694_v21, %v2028_v61  ;;  %4165 = vadd.xlane.f32.xlu2 %v4164_v55  ;;  %v7838_v10 = vadd.f32 1.0, %v5342_v3  ;;  %vm2032_vm11 = vmor %vm2030_vm10, %vm2031_vm8  ;;  %vm2035_vm12 = vcmp.eq.f32.partialorder %v2034_v50, 8.507059e+37 }
 0x21c   : > { %4889 = vmatmul.msk.f32.gmra.mxu0 %vm3682_vm15, %v2987_v38  ;;  %v2037_v1 = vor.u32 1.1754944e-38, %v2036_v30  ;;  %v2991_v11 = vsub.f32 1.0, %v2990_v6  ;;  %v3000_v23 = vand.u32 2147483648, %v7766_v60  ;;  %v2335_v31 = vadd.f32 %v7802_v19, %v7728_v39 }
 0x21d   : > { %v2033_v58 = vsel %vm2032_vm11, %v7694_v21, %v2029_v29  ;;  %v3899_v48 = vadd.f32 %v7739_v25, %v7700_v33  ;;  %v2041_v34 = vmul.f32 %v7817_v8, %v7755_v27  ;;  %vm2995_vm13 = vweird.f32 %v5340_v46  ;;  %v7857_v52 = vpop.f32.mrf.mxu1 }
 0x21e   : > { %v2038_v43 = vsel %vm2035_vm12, %v2037_v1, %v2033_v58  ;;  %v7851_v59 = vpop.eup %5343  ;;  %v2992_v62 = vmul.f32 %v5340_v46, %v2991_v11  ;;  %v2998_v21 = vand.u32 2147483647, %v7766_v60  ;;  %v4830_v9 = vmul.f32 -1.442695, %v2335_v31 }
 0x21f   : > { %4806 = vmatmul.msk.f32.gmra.mxu3 %vm2058_vm2, %v2038_v43  ;;  %v5346_v32 = vpop.eup %5345  ;;  %5347 = vrcp.f32 %v7838_v10  ;;  %vm2994_vm14 = vweird.f32 %v7766_v60  ;;  %v2042_v39 = vsub.f32 1.0, %v2041_v34  ;;  %v3001_v42 = vor.u32 1.1754944e-38, %v3000_v23 }
 0x220   : > { %v2993_v33 = vadd.f32 %v5340_v46, %v2992_v62  ;;  %5349 = vpow2.f32 %v4830_v9  ;;  %v2051_v53 = vand.u32 2147483648, %v7755_v27  ;;  %vm2996_vm1 = vmor %vm2994_vm14, %vm2995_vm13  ;;  %vm2046_vm3 = vweird.f32 %v7817_v8  ;;  %v7898_v34 = vpop.f32.mrf.mxu3 }
 0x221   : > { %v2043_v40 = vmul.f32 %v7817_v8, %v2042_v39  ;;  %v2049_v57 = vand.u32 2147483647, %v7755_v27  ;;  %v4098_v51 = vmul.f32 %v7781_v56, %v3899_v48  ;;  %v7866_v60 = vadd.f32 1.0, %v5346_v32 }
 0x222   : > { %v2997_v2 = vsel %vm2996_vm1, %v5340_v46, %v2993_v33  ;;  %vm2999_vm4 = vcmp.eq.f32.partialorder %v2998_v21, 8.507059e+37  ;;  %vm2045_vm5 = vweird.f32 %v7755_v27  ;;  %v3005_v30 = vmul.f32 %v7851_v59, %v7808_v26  ;;  %v7873_v14 = vpop.f32.mrf.mxu0 }
 0x223   : > { %v3002_v20 = vsel %vm2999_vm4, %v3001_v42, %v2997_v2  ;;  %v2044_v45 = vadd.f32 %v7817_v8, %v2043_v40  ;;  %v4167_v50 = vsel %vm4160_vm0, %v4098_v51, 0.0  ;;  %vm2047_vm6 = vmor %vm2045_vm5, %vm2046_vm3  ;;  %v2052_v3 = vor.u32 1.1754944e-38, %v2051_v53 }
 0x224   : > { %4890 = vmatmul.msk.f32.gmra.mxu0 %vm3682_vm15, %v3002_v20  ;;  %4168 = vadd.xlane.f32.xlu0 %v4167_v50  ;;  %v3902_v46 = vadd.f32 %v7739_v25, %v7745_v37  ;;  %vm2050_vm7 = vcmp.eq.f32.partialorder %v2049_v57, 8.507059e+37  ;;  %v3006_v61 = vsub.f32 1.0, %v3005_v30  ;;  %5351 = vrcp.f32 %v7866_v60 }
 0x225   : > { %v5348_v12 = vpop.eup %5347  ;;  %v2048_v27 = vsel %vm2047_vm6, %v7817_v8, %v2044_v45  ;;  %v3015_v38 = vand.u32 2147483648, %v7808_v26  ;;  %v2338_v29 = vadd.f32 %v7802_v19, %v7785_v4  ;;  %vm3010_vm8 = vweird.f32 %v7851_v59 }
 0x226   : > { %v5350_v54 = vpop.eup %5349  ;;  %v2053_v55 = vsel %vm2050_vm7, %v2052_v3, %v2048_v27  ;;  %v3007_v37 = vmul.f32 %v7851_v59, %v3006_v61  ;;  %v3013_v8 = vand.u32 2147483647, %v7808_v26  ;;  %v7889_v1 = vpop.f32.mrf.mxu1  ;;  %v4099_v11 = vmul.f32 %v7781_v56, %v3902_v46 }
 0x227   : > { %v7883_v6 = vadd.f32 1.0, %v5350_v54  ;;  %4807 = vmatmul.msk.f32.gmra.mxu3 %vm2058_vm2, %v2053_v55  ;;  %v4831_v58 = vmul.f32 -1.442695, %v2338_v29  ;;  %v3905_v23 = vadd.f32 %v7739_v25, %v7806_v24  ;;  %vm3009_vm9 = vweird.f32 %v7808_v26 }
 0x228   : > { %v3008_v4 = vadd.f32 %v7851_v59, %v3007_v37  ;;  %v3020_v31 = vmul.f32 %v5348_v12, %v7838_v10  ;;  %vm3011_vm2 = vmor %vm3009_vm9, %vm3010_vm8  ;;  %v3016_v43 = vor.u32 1.1754944e-38, %v3015_v38  ;;  %v4170_v48 = vsel %vm4160_vm0, %v4099_v11, 0.0 }
 0x229   : > { %5353 = vpow2.f32 %v4831_v58  ;;  %vm3014_vm10 = vcmp.eq.f32.partialorder %v3013_v8, 8.507059e+37  ;;  %4171 = vadd.xlane.f32.xlu2 %v4170_v48  ;;  %v3030_v26 = vand.u32 2147483648, %v7838_v10  ;;  %v2341_v32 = vadd.f32 %v7802_v19, %v7826_v49  ;;  %v7922_v38 = vpop.f32.mrf.mxu3 }
 0x22a   : > { %5355 = vrcp.f32 %v7883_v6  ;;  %v3012_v62 = vsel %vm3011_vm2, %v7851_v59, %v3008_v4  ;;  %v3021_v24 = vsub.f32 1.0, %v3020_v31  ;;  %v5352_v21 = vpop.eup %5351  ;;  %v4100_v39 = vmul.f32 %v7781_v56, %v3905_v23  ;;  %v3913_v33 = vpop.f32.mrf.mxu0 }
 0x22b   : > { %v3017_v9 = vsel %vm3014_vm10, %v3016_v43, %v3012_v62  ;;  %vm3025_vm11 = vweird.f32 %v5348_v12  ;;  %v3028_v53 = vand.u32 2147483647, %v7838_v10  ;;  %v4832_v59 = vmul.f32 -1.442695, %v2341_v32 }
 0x22c   : > { %4891 = vmatmul.msk.f32.gmra.mxu0 %vm3682_vm15, %v3017_v9  ;;  %v3022_v42 = vmul.f32 %v5348_v12, %v3021_v24  ;;  %v4173_v40 = vsel %vm4160_vm0, %v4100_v39, 0.0  ;;  %vm3024_vm12 = vweird.f32 %v7838_v10  ;;  %v3035_v51 = vmul.f32 %v5352_v21, %v7866_v60 }
 0x22d   : > { %4174 = vadd.xlane.f32.xlu1 %v4173_v40  ;;  %vm3026_vm13 = vmor %vm3024_vm12, %vm3025_vm11  ;;  %v3031_v49 = vor.u32 1.1754944e-38, %v3030_v26  ;;  %5357 = vpow2.f32 %v4832_v59  ;;  %v3908_v20 = vadd.f32 %v7739_v25, %v7841_v35  ;;  %vm3029_vm14 = vcmp.eq.f32.partialorder %v3028_v53, 8.507059e+37 }
 0x22e   : > { %v3023_v57 = vadd.f32 %v5348_v12, %v3022_v42  ;;  %v3036_v3 = vsub.f32 1.0, %v3035_v51  ;;  %v2344_v10 = vadd.f32 %v7802_v19, %v7857_v52  ;;  %vm3040_vm1 = vweird.f32 %v5352_v21 }
 0x22f   : > { %v5354_v2 = vpop.eup %5353  ;;  %v3045_v54 = vand.u32 2147483648, %v7866_v60  ;;  %v4101_v35 = vmul.f32 %v7781_v56, %v3908_v20  ;;  %vm3039_vm3 = vweird.f32 %v7866_v60  ;;  %v3043_v29 = vand.u32 2147483647, %v7866_v60 }
 0x230   : > { %v7913_v45 = vpop.eup %5355  ;;  %v7915_v50 = vadd.f32 1.0, %v5354_v2  ;;  %v3027_v30 = vsel %vm3026_vm13, %v5348_v12, %v3023_v57  ;;  %v3037_v61 = vmul.f32 %v5352_v21, %v3036_v3  ;;  %v4833_v55 = vmul.f32 -1.442695, %v2344_v10  ;;  %vm7929_vm4 = vmor %vm3039_vm3, %vm3040_vm1 }
 0x231   : > { %v2349_v46 = vpop.f32.mrf.mxu1  ;;  %v3032_v27 = vsel %vm3029_vm14, %v3031_v49, %v3027_v30  ;;  %v3050_v52 = vmul.f32 %v7913_v45, %v7883_v6  ;;  %v4176_v58 = vsel %vm4160_vm0, %v4101_v35, 0.0  ;;  %v3911_v11 = vadd.f32 %v7739_v25, %v7873_v14 }
 0x232   : > { %5359 = vrcp.f32 %v7915_v50  ;;  %v3038_v12 = vadd.f32 %v5352_v21, %v3037_v61  ;;  %4177 = vadd.xlane.f32.xlu2 %v4176_v58  ;;  %v3046_v43 = vor.u32 1.1754944e-38, %v3045_v54  ;;  %v2347_v48 = vadd.f32 %v7802_v19, %v7889_v1 }
 0x233   : > { %v5358_v37 = vpop.eup %5357  ;;  %5361 = vpow2.f32 %v4833_v55  ;;  %v3051_v31 = vsub.f32 1.0, %v3050_v52  ;;  %vm3044_vm5 = vcmp.eq.f32.partialorder %v3043_v29, 8.507059e+37  ;;  %v4102_v26 = vmul.f32 %v7781_v56, %v3911_v11 }
 0x234   : > { %4892 = vmatmul.msk.f32.gmra.mxu0 %vm3682_vm15, %v3032_v27  ;;  %v3916_v23 = vpop.f32.mrf.mxu0  ;;  %v7936_v4 = vadd.f32 1.0, %v5358_v37  ;;  %v3042_v60 = vsel %vm7929_vm4, %v5352_v21, %v3038_v12  ;;  %v4834_v9 = vmul.f32 -1.442695, %v2347_v48  ;;  %vm3055_vm6 = vweird.f32 %v7913_v45  ;;  %v7964_v49 = vpop.f32.mrf.mxu3 }
 0x235   : > { %v3052_v24 = vmul.f32 %v7913_v45, %v3051_v31  ;;  %v3047_v14 = vsel %vm3044_vm5, %v3046_v43, %v3042_v60  ;;  %v3914_v21 = vadd.f32 %v7739_v25, %v3913_v33  ;;  %v3060_v53 = vand.u32 2147483648, %v7883_v6 }
 0x236   : > { %5363 = vrcp.f32 %v7936_v4  ;;  %v4179_v59 = vsel %vm4160_vm0, %v4102_v26, 0.0  ;;  %vm3054_vm7 = vweird.f32 %v7883_v6  ;;  %v3058_v57 = vand.u32 2147483647, %v7883_v6 }
 0x237   : > { %v3053_v32 = vadd.f32 %v7913_v45, %v3052_v24  ;;  %5365 = vpow2.f32 %v4834_v9  ;;  %4180 = vadd.xlane.f32.xlu0 %v4179_v59  ;;  %vm7959_vm8 = vmor %vm3054_vm7, %vm3055_vm6  ;;  %v2350_v2 = vadd.f32 %v7802_v19, %v2349_v46  ;;  %v4103_v3 = vmul.f32 %v7781_v56, %v3914_v21 }
 0x238   : > { %v7942_v62 = vpop.eup %5359  ;;  %v3061_v27 = vor.u32 1.1754944e-38, %v3060_v53  ;;  %vm3059_vm9 = vcmp.eq.f32.partialorder %v3058_v57, 8.507059e+37  ;;  %v3917_v54 = vadd.f32 %v7739_v25, %v3916_v23  ;;  %vm3069_vm10 = vweird.f32 %v7915_v50 }
 0x239   : > { %v3065_v1 = vmul.f32 %v7942_v62, %v7915_v50  ;;  %v5362_v42 = vpop.eup %5361  ;;  %v3057_v30 = vsel %vm7959_vm8, %v7913_v45, %v3053_v32  ;;  %v4835_v10 = vmul.f32 -1.442695, %v2350_v2  ;;  %v4182_v46 = vsel %vm4160_vm0, %v4103_v3, 0.0 }
 0x23a   : > { %v7955_v40 = vadd.f32 1.0, %v5362_v42  ;;  %v3062_v35 = vsel %vm3059_vm9, %v3061_v27, %v3057_v30  ;;  %4183 = vadd.xlane.f32.xlu1 %v4182_v46  ;;  %vm3070_vm2 = vweird.f32 %v7942_v62  ;;  %v3075_v52 = vand.u32 2147483648, %v7915_v50 }
 0x23b   : > { %v3066_v33 = vsub.f32 1.0, %v3065_v1  ;;  %v3073_v58 = vand.u32 2147483647, %v7915_v50  ;;  %v4104_v23 = vmul.f32 %v7781_v56, %v3917_v54  ;;  %vm7991_vm11 = vmor %vm3069_vm10, %vm3070_vm2  ;;  %vm3084_vm14 = vweird.f32 %v7936_v4 }
 0x23c   : > { %v2352_v39 = vpop.f32.mrf.mxu1  ;;  %4893 = vmatmul.msk.f32.gmra.mxu0 %vm3682_vm15, %v3047_v14  ;;  %v7966_v20 = vpop.eup %5363  ;;  %5367 = vrcp.f32 %v7955_v40  ;;  %v3076_v50 = vor.u32 1.1754944e-38, %v3075_v52  ;;  %v3090_v57 = vand.u32 2147483648, %v7936_v4  ;;  %v3088_v2 = vand.u32 2147483647, %v7936_v4 }
 0x23d   : > { %v3067_v6 = vmul.f32 %v7942_v62, %v3066_v33  ;;  %v5366_v55 = vpop.eup %5365  ;;  %5369 = vpow2.f32 %v4835_v10  ;;  %v3080_v12 = vmul.f32 %v7966_v20, %v7936_v4  ;;  %v2353_v11 = vadd.f32 %v7802_v19, %v2352_v39 }
 0x23e   : > { %v7978_v45 = vadd.f32 1.0, %v5366_v55  ;;  %v4185_v14 = vsel %vm4160_vm0, %v4104_v23, 0.0  ;;  %vm3074_vm12 = vcmp.eq.f32.partialorder %v3073_v58, 8.507059e+37  ;;  %vm3085_vm13 = vweird.f32 %v7966_v20 }
 0x23f   : > { %v3919_v61 = vpop.f32.mrf.mxu0  ;;  %v3068_v29 = vadd.f32 %v7942_v62, %v3067_v6  ;;  %v3081_v37 = vsub.f32 1.0, %v3080_v12  ;;  %v4836_v24 = vmul.f32 -1.442695, %v2353_v11  ;;  %4186 = vadd.xlane.f32.xlu2 %v4185_v14  ;;  %v8001_v32 = vpop.f32.mrf.mxu3  ;;  %vm8015_vm1 = vmor %vm3084_vm14, %vm3085_vm13  ;;  %v3091_v54 = vor.u32 1.1754944e-38, %v3090_v57 }
 0x240   : > { %5371 = vrcp.f32 %v7978_v45  ;;  %v3920_v26 = vadd.f32 %v7739_v25, %v3919_v61  ;;  %vm3089_vm3 = vcmp.eq.f32.partialorder %v3088_v2, 8.507059e+37  ;;  %vm3099_vm5 = vweird.f32 %v7955_v40 }
 0x241   : > { %v3082_v43 = vmul.f32 %v7966_v20, %v3081_v37  ;;  %v3072_v48 = vsel %vm7991_vm11, %v7942_v62, %v3068_v29  ;;  %5373 = vpow2.f32 %v4836_v24  ;;  %v3103_v14 = vand.u32 2147483647, %v7955_v40 }
 0x242   : > { %v7984_v8 = vpop.eup %5367  ;;  %v3077_v62 = vsel %vm3074_vm12, %v3076_v50, %v3072_v48  ;;  %v4105_v30 = vmul.f32 %v7781_v56, %v3920_v26  ;;  %vm3114_vm12 = vweird.f32 %v7978_v45 }
 0x243   : > { %v5370_v9 = vpop.eup %5369  ;;  %v3095_v21 = vmul.f32 %v7984_v8, %v7955_v40  ;;  %v3083_v39 = vadd.f32 %v7966_v20, %v3082_v43  ;;  %vm3100_vm4 = vweird.f32 %v7984_v8  ;;  %vm3104_vm8 = vcmp.eq.f32.partialorder %v3103_v14, 8.507059e+37 }
 0x244   : > { %4894 = vmatmul.msk.f32.gmra.mxu0 %vm3682_vm15, %v3062_v35  ;;  %v8005_v1 = vadd.f32 1.0, %v5370_v9  ;;  %v4188_v10 = vsel %vm4160_vm0, %v4105_v30, 0.0  ;;  %vm8044_vm6 = vmor %vm3099_vm5, %vm3100_vm4 }
 0x245   : > { %v3096_v42 = vsub.f32 1.0, %v3095_v21  ;;  %v3087_v6 = vsel %vm8015_vm1, %v7966_v20, %v3083_v39  ;;  %4189 = vadd.xlane.f32.xlu0 %v4188_v10 }
 0x246   : > { %v8009_v59 = vpop.eup %5371  ;;  %5375 = vrcp.f32 %v8005_v1  ;;  %v3092_v12 = vsel %vm3089_vm3, %v3091_v54, %v3087_v6  ;;  %vm3129_vm9 = vweird.f32 %v8005_v1  ;;  %v3120_v54 = vand.u32 2147483648, %v7978_v45 }
 0x247   : > { %v2355_v60 = vpop.f32.mrf.mxu1  ;;  %v3097_v27 = vmul.f32 %v7984_v8, %v3096_v42  ;;  %v3110_v46 = vmul.f32 %v8009_v59, %v7978_v45  ;;  %v5374_v55 = vpop.eup %5373  ;;  %vm3115_vm10 = vweird.f32 %v8009_v59 }
 0x248   : > { %v2356_v33 = vadd.f32 %v7802_v19, %v2355_v60  ;;  %v8030_v29 = vadd.f32 1.0, %v5374_v55  ;;  %v3105_v60 = vand.u32 2147483648, %v7955_v40  ;;  %v3135_v40 = vand.u32 2147483648, %v8005_v1  ;;  %vm8078_vm13 = vmor %vm3114_vm12, %vm3115_vm10 }
 0x249   : > { %v3098_v20 = vadd.f32 %v7984_v8, %v3097_v27  ;;  %v3111_v37 = vsub.f32 1.0, %v3110_v46  ;;  %v3121_v24 = vor.u32 1.1754944e-38, %v3120_v54 }
 0x24a   : > { %v4837_v3 = vmul.f32 -1.442695, %v2356_v33  ;;  %v8034_v52 = vpop.f32.mrf.mxu3  ;;  %v3106_v57 = vor.u32 1.1754944e-38, %v3105_v60  ;;  %v3136_v30 = vor.u32 1.1754944e-38, %v3135_v40  ;;  %vm3144_vm1 = vweird.f32 %v8030_v29 }
 0x24b   : > { %v3922_v53 = vpop.f32.mrf.mxu0  ;;  %v3102_v21 = vsel %vm8044_vm6, %v7984_v8, %v3098_v20  ;;  %v3112_v39 = vmul.f32 %v8009_v59, %v3111_v37  ;;  %v3118_v20 = vand.u32 2147483647, %v7978_v45 }
 0x24c   : > { %4895 = vmatmul.msk.f32.gmra.mxu0 %vm3682_vm15, %v3077_v62  ;;  %v3923_v61 = vadd.f32 %v7739_v25, %v3922_v53  ;;  %5377 = vpow2.f32 %v4837_v3  ;;  %v5376_v35 = vpop.eup %5375  ;;  %v3133_v53 = vand.u32 2147483647, %v8005_v1  ;;  %v3107_v8 = vsel %vm3104_vm8, %v3106_v57, %v3102_v21 }
 0x24d   : > { %5379 = vrcp.f32 %v8030_v29  ;;  %v3125_v23 = vmul.f32 %v5376_v35, %v8005_v1  ;;  %vm3130_vm7 = vweird.f32 %v5376_v35  ;;  %v3113_v27 = vadd.f32 %v8009_v59, %v3112_v39 }
 0x24e   : > { %v4106_v11 = vmul.f32 %v7781_v56, %v3923_v61  ;;  %vm3131_vm2 = vmor %vm3129_vm9, %vm3130_vm7  ;;  %vm3134_vm11 = vcmp.eq.f32.partialorder %v3133_v53, 8.507059e+37  ;;  %vm3119_vm3 = vcmp.eq.f32.partialorder %v3118_v20, 8.507059e+37 }
 0x24f   : > { %v3126_v50 = vsub.f32 1.0, %v3125_v23  ;;  %v3117_v45 = vsel %vm8078_vm13, %v8009_v59, %v3113_v27 }
 0x250   : > { %v4191_v43 = vsel %vm4160_vm0, %v4106_v11, 0.0  ;;  %v3122_v21 = vsel %vm3119_vm3, %v3121_v24, %v3117_v45 }
 0x251   : > { %4192 = vadd.xlane.f32.xlu1 %v4191_v43  ;;  %v3127_v42 = vmul.f32 %v5376_v35, %v3126_v50 }
 0x252   : > { %v2358_v4 = vpop.f32.mrf.mxu1  ;;  %v5378_v26 = vpop.eup %5377 }
 0x253   : > { %v2359_v58 = vadd.f32 %v7802_v19, %v2358_v4  ;;  %v8054_v62 = vadd.f32 1.0, %v5378_v26  ;;  %v5380_v51 = vpop.eup %5379  ;;  %v3128_v2 = vadd.f32 %v5376_v35, %v3127_v42 }
 0x254   : > { %4896 = vmatmul.msk.f32.gmra.mxu0 %vm3682_vm15, %v3092_v12  ;;  %v3140_v3 = vmul.f32 %v5380_v51, %v8030_v29  ;;  %vm3145_vm14 = vweird.f32 %v5380_v51 }
 0x255   : > { %v4838_v31 = vmul.f32 -1.442695, %v2359_v58  ;;  %v3132_v10 = vsel %vm3131_vm2, %v5376_v35, %v3128_v2  ;;  %v8066_v4 = vpop.f32.mrf.mxu3  ;;  %v3150_v35 = vand.u32 2147483648, %v8030_v29  ;;  %vm3146_vm4 = vmor %vm3144_vm1, %vm3145_vm14  ;;  %v3165_v57 = vand.u32 2147483648, %v8054_v62 }
 0x256   : > { %v3925_v48 = vpop.f32.mrf.mxu0  ;;  %v3137_v1 = vsel %vm3134_vm11, %v3136_v30, %v3132_v10  ;;  %v3141_v12 = vsub.f32 1.0, %v3140_v3  ;;  %vm3159_vm7 = vweird.f32 %v8054_v62 }
 0x257   : > { %v3926_v9 = vadd.f32 %v7739_v25, %v3925_v48  ;;  %5381 = vpow2.f32 %v4838_v31  ;;  %4899 = vmatmul.msk.f32.vlgmr.msra.gmra.mxu2 %vm3682_vm15, %v3137_v1  ;;  %v3148_v31 = vand.u32 2147483647, %v8030_v29  ;;  %v3151_v50 = vor.u32 1.1754944e-38, %v3150_v35 }
 0x258   : > { %5383 = vrcp.f32 %v8054_v62  ;;  %v3142_v60 = vmul.f32 %v5380_v51, %v3141_v12  ;;  %v3166_v3 = vor.u32 1.1754944e-38, %v3165_v57 }
 0x259   : > { %v4107_v33 = vmul.f32 %v7781_v56, %v3926_v9  ;;  %vm3149_vm5 = vcmp.eq.f32.partialorder %v3148_v31, 8.507059e+37 }
 0x25a   : > { %v3143_v14 = vadd.f32 %v5380_v51, %v3142_v60 }
 0x25b   : > { %v4194_v6 = vsel %vm4160_vm0, %v4107_v33, 0.0  ;;  %v3163_v33 = vand.u32 2147483647, %v8054_v62 }
 0x25c   : > { %4195 = vadd.xlane.f32.xlu2 %v4194_v6  ;;  %4897 = vmatmul.msk.f32.gmra.mxu0 %vm3682_vm15, %v3107_v8  ;;  %v3147_v39 = vsel %vm3146_vm4, %v5380_v51, %v3143_v14 }
 0x25d   : > { %v2361_v61 = vpop.f32.mrf.mxu1  ;;  %v5382_v46 = vpop.eup %5381  ;;  %v3152_v42 = vsel %vm3149_vm5, %v3151_v50, %v3147_v39  ;;  %vm3164_vm9 = vcmp.eq.f32.partialorder %v3163_v33, 8.507059e+37 }
 0x25e   : > { %v2362_v55 = vadd.f32 %v7802_v19, %v2361_v61  ;;  %v8072_v37 = vadd.f32 1.0, %v5382_v46  ;;  %v5384_v43 = vpop.eup %5383 }
 0x25f   : > { %v3155_v9 = vmul.f32 %v5384_v43, %v8054_v62  ;;  %vm3160_vm6 = vweird.f32 %v5384_v43  ;;  %4900 = vmatmul.msk.f32.gmra.mxu2 %vm3682_vm15, %v3152_v42 }
 0x260   : > { %v4839_v11 = vmul.f32 -1.442695, %v2362_v55  ;;  %5385 = vrcp.f32 %v8072_v37  ;;  %vm3161_vm8 = vmor %vm3159_vm7, %vm3160_vm6  ;;  %v3180_v35 = vand.u32 2147483648, %v8072_v37  ;;  %vm3174_vm10 = vweird.f32 %v8072_v37 }
 0x261   : > { %v3928_v23 = vpop.f32.mrf.mxu0  ;;  %v3156_v59 = vsub.f32 1.0, %v3155_v9 }
 0x262   : > { %v3929_v48 = vadd.f32 %v7739_v25, %v3928_v23  ;;  %5387 = vpow2.f32 %v4839_v11  ;;  %v8096_v2 = vpop.f32.mrf.mxu3  ;;  %v3178_v11 = vand.u32 2147483647, %v8072_v37  ;;  %v3181_v45 = vor.u32 1.1754944e-38, %v3180_v35 }
 0x263   : > { %v3157_v40 = vmul.f32 %v5384_v43, %v3156_v59 }
 0x264   : > { %v4108_v26 = vmul.f32 %v7781_v56, %v3929_v48  ;;  %4898 = vmatmul.msk.f32.gmra.mxu0 %vm3682_vm15, %v3122_v21  ;;  %vm3179_vm12 = vcmp.eq.f32.partialorder %v3178_v11, 8.507059e+37 }
 0x265   : > { %v3158_v51 = vadd.f32 %v5384_v43, %v3157_v40 }
 0x266   : > { %v4197_v53 = vsel %vm4160_vm0, %v4108_v26, 0.0  ;;  %v5386_v29 = vpop.eup %5385 }
 0x267   : > { %4198 = vadd.xlane.f32.xlu0 %v4197_v53  ;;  %v3170_v8 = vmul.f32 %v5386_v29, %v8072_v37  ;;  %v3162_v61 = vsel %vm3161_vm8, %v5384_v43, %v3158_v51  ;;  %vm3175_vm2 = vweird.f32 %v5386_v29 }
 0x268   : > { %v5388_v30 = vpop.eup %5387  ;;  %v3167_v55 = vsel %vm3164_vm9, %v3166_v3, %v3162_v61  ;;  %vm3176_vm11 = vmor %vm3174_vm10, %vm3175_vm2  ;;  %vm4422_vm2 = vcmask 130112  }
 0x269   : > { %v2364_v6 = vpop.f32.mrf.mxu1  ;;  %v2686_v27 = vadd.f32 1.0, %v5388_v30  ;;  %v3171_v46 = vsub.f32 1.0, %v3170_v8  ;;  %4901 = vmatmul.msk.f32.gmra.mxu2 %vm3682_vm15, %v3167_v55 }
 0x26a   : > { %v2365_v10 = vadd.f32 %v7802_v19, %v2364_v6 }
 0x26b   : > { %5389 = vrcp.f32 %v2686_v27  ;;  %v3172_v12 = vmul.f32 %v5386_v29, %v3171_v46  ;;  %v3193_v39 = vand.u32 2147483647, %v2686_v27  ;;  %v3195_v37 = vand.u32 2147483648, %v2686_v27 }
 0x26c   : > { %v4840_v54 = vmul.f32 -1.442695, %v2365_v10  ;;  %v3931_v1 = vpop.f32.mrf.mxu0  ;;  %v8108_v43 = vpop.f32.mrf.mxu3  ;;  %vm3189_vm14 = vweird.f32 %v2686_v27 }
 0x26d   : > { %v3932_v20 = vadd.f32 %v7739_v25, %v3931_v1  ;;  %v3173_v62 = vadd.f32 %v5386_v29, %v3172_v12  ;;  %vm3194_vm3 = vcmp.eq.f32.partialorder %v3193_v39, 8.507059e+37  ;;  %v4085_v39 = vrot.slane %v7764_v28, 1 }
 0x26e   : > { %5391 = vpow2.f32 %v4840_v54 }
 0x26f   : > { %v4109_v58 = vmul.f32 %v7781_v56, %v3932_v20  ;;  %v3177_v60 = vsel %vm3176_vm11, %v5386_v29, %v3173_v62  ;;  %v3196_v29 = vor.u32 1.1754944e-38, %v3195_v37 }
 0x270   : > { %v3182_v9 = vsel %vm3179_vm12, %v3181_v45, %v3177_v60 }
 0x271   : > { %v4200_v23 = vsel %vm4160_vm0, %v4109_v58, 0.0  ;;  %v5390_v31 = vpop.eup %5389  ;;  %4902 = vmatmul.msk.f32.gmra.mxu2 %vm3682_vm15, %v3182_v9 }
 0x272   : > { %4201 = vadd.xlane.f32.xlu1 %v4200_v23  ;;  %v3185_v48 = vmul.f32 %v5390_v31, %v2686_v27  ;;  %vm3190_vm13 = vweird.f32 %v5390_v31 }
 0x273   : > { %vm3191_vm1 = vmor %vm3189_vm14, %vm3190_vm13  ;;  %vm4426_vm13 = vcmask 195712  }
 0x274   : > { %v5392_v24 = vpop.eup %5391  ;;  %v2367_v14 = vpop.f32.mrf.mxu1  ;;  %v3186_v21 = vsub.f32 1.0, %v3185_v48 }
 0x275   : > { %v2687_v50 = vadd.f32 1.0, %v5392_v24  ;;  %v2368_v26 = vadd.f32 %v7802_v19, %v2367_v14 }
 0x276   : > { %v3187_v42 = vmul.f32 %v5390_v31, %v3186_v21 }
 0x277   : > { %5393 = vrcp.f32 %v2687_v50  ;;  %v4841_v59 = vmul.f32 -1.442695, %v2368_v26  ;;  %v8114_v8 = vpop.f32.mrf.mxu3  ;;  %v3210_v55 = vand.u32 2147483648, %v2687_v50  ;;  %v3208_v62 = vand.u32 2147483647, %v2687_v50 }
 0x278   : > { %v3934_v53 = vpop.f32.mrf.mxu0  ;;  %v3188_v40 = vadd.f32 %v5390_v31, %v3187_v42  ;;  %vm3204_vm5 = vweird.f32 %v2687_v50 }
 0x279   : > { %5395 = vpow2.f32 %v4841_v59  ;;  %v3935_v57 = vadd.f32 %v7739_v25, %v3934_v53  ;;  %v3211_v23 = vor.u32 1.1754944e-38, %v3210_v55  ;;  %vm3209_vm7 = vcmp.eq.f32.partialorder %v3208_v62, 8.507059e+37 }
 0x27a   : > { %v3192_v51 = vsel %vm3191_vm1, %v5390_v31, %v3188_v40  ;;  %v4417_v31 = vlaneseq }
 0x27b   : > { %v4110_v33 = vmul.f32 %v7781_v56, %v3935_v57  ;;  %v3197_v30 = vsel %vm3194_vm3, %v3196_v29, %v3192_v51  ;;  %v8145_v51 = vperm.slane %v4085_v39, 0 }
 0x27c   : > { %4903 = vmatmul.msk.f32.gmra.mxu2 %vm3682_vm15, %v3197_v30  ;;  %v8131_v21 = vand.u32 127, %v4417_v31 }
 0x27d   : > { %v5394_v6 = vpop.eup %5393  ;;  %v4203_v3 = vsel %vm4160_vm0, %v4110_v33, 0.0 }
 0x27e   : > { %4204 = vadd.xlane.f32.xlu2 %v4203_v3  ;;  %v3200_v10 = vmul.f32 %v5394_v6, %v2687_v50  ;;  %vm3205_vm4 = vweird.f32 %v5394_v6  ;;  %v8140_v57 = vadd.s32 4294967288, %v8131_v21 }
 0x27f   : > { %v5396_v61 = vpop.eup %5395  ;;  %v2370_v46 = vpop.f32.mrf.mxu1  ;;  %vm3206_vm6 = vmor %vm3204_vm5, %vm3205_vm4  ;;  %vm4430_vm4 = vcmask 261312   ;;  %vm4434_vm5 = vcmask 326912  }
 0x280   : > { %v8118_v54 = vadd.f32 1.0, %v5396_v61  ;;  %v2371_v27 = vadd.f32 %v7802_v19, %v2370_v46  ;;  %v3201_v1 = vsub.f32 1.0, %v3200_v10  ;;  %v8154_v46 = vld [vmem:[%s9097_s6] ss:$0 sm:$0xff] }
 0x282   : > { %5397 = vrcp.f32 %v8118_v54  ;;  %v4842_v12 = vmul.f32 -1.442695, %v2371_v27  ;;  %v3202_v20 = vmul.f32 %v5394_v6, %v3201_v1  ;;  %v8123_v60 = vpop.f32.mrf.mxu3  ;;  %v3225_v40 = vand.u32 2147483648, %v8118_v54 }
 0x283   : > { %v3223_v28 = vand.u32 2147483647, %v8118_v54  ;;  %vm3219_vm9 = vweird.f32 %v8118_v54 }
 0x284   : > { %5399 = vpow2.f32 %v4842_v12  ;;  %v3937_v35 = vpop.f32.mrf.mxu0  ;;  %v3203_v58 = vadd.f32 %v5394_v6, %v3202_v20 }
 0x285   : > { %v3938_v11 = vadd.f32 %v7739_v25, %v3937_v35  ;;  %v2377_v25 = vadd.f32 %v7802_v19, %v7187_v63  ;;  %vm3224_vm11 = vcmp.eq.f32.partialorder %v3223_v28, 8.507059e+37 }
 0x286   : > { %v3207_v45 = vsel %vm3206_vm6, %v5394_v6, %v3203_v58  ;;  %v2383_v6 = vadd.f32 %v7802_v19, %v7300_v0  ;;  %v3226_v0 = vor.u32 1.1754944e-38, %v3225_v40 }
 0x287   : > { %v4111_v48 = vmul.f32 %v7781_v56, %v3938_v11  ;;  %v3212_v24 = vsel %vm3209_vm7, %v3211_v23, %v3207_v45  ;;  %v2380_v56 = vadd.f32 %v7802_v19, %v7239_v22  ;;  %v4844_v33 = vmul.f32 -1.442695, %v2377_v25 }
 0x288   : > { %v5398_v14 = vpop.eup %5397  ;;  %4904 = vmatmul.msk.f32.gmra.mxu2 %vm3682_vm15, %v3212_v24  ;;  %v4163_v63 = vpop.xlane.xlu1 %4162  ;;  %v4846_v31 = vmul.f32 -1.442695, %v2383_v6  ;;  %v2386_v45 = vadd.f32 %v7802_v19, %v7359_v15  ;;  %v8187_v6 = vadd.s32 4294967272, %v8131_v21 }
 0x289   : > { %v4206_v9 = vsel %vm4160_vm0, %v4111_v48, 0.0  ;;  %v3215_v26 = vmul.f32 %v5398_v14, %v8118_v54  ;;  %vm3220_vm8 = vweird.f32 %v5398_v14  ;;  %v4845_v30 = vmul.f32 -1.442695, %v2380_v56 }
 0x28a   : > { %v5400_v50 = vpop.eup %5399  ;;  %4207 = vadd.xlane.f32.xlu0 %v4206_v9  ;;  %v4419_v61 = vperm.slane %v4163_v63, %v8131_v21  ;;  %vm3221_vm10 = vmor %vm3219_vm9, %vm3220_vm8  ;;  %v8169_v48 = vadd.s32 4294967280, %v8131_v21  ;;  %v4847_v56 = vmul.f32 -1.442695, %v2386_v45 }
 0x28b   : > { %v8136_v37 = vadd.f32 1.0, %v5400_v50  ;;  %v2373_v59 = vpop.f32.mrf.mxu1  ;;  %v3216_v42 = vsub.f32 1.0, %v3215_v26 }
 0x28c   : > { %v2374_v53 = vadd.f32 %v7802_v19, %v2373_v59 }
 0x28d   : > { %5401 = vrcp.f32 %v8136_v37  ;;  %v3217_v29 = vmul.f32 %v5398_v14, %v3216_v42  ;;  %v3240_v9 = vand.u32 2147483648, %v8136_v37  ;;  %v3238_v39 = vand.u32 2147483647, %v8136_v37 }
 0x28e   : > { %v4843_v22 = vmul.f32 -1.442695, %v2374_v53  ;;  %v4166_v55 = vpop.xlane.xlu2 %4165  ;;  %vm3234_vm14 = vweird.f32 %v8136_v37 }
 0x28f   : > { %v3940_v3 = vpop.f32.mrf.mxu0  ;;  %v3218_v10 = vadd.f32 %v5398_v14, %v3217_v29  ;;  %v8157_v1 = vpop.f32.mrf.mxu3  ;;  %v4421_v12 = vperm.slane %v4166_v55, %v8140_v57  ;;  %v3241_v28 = vor.u32 1.1754944e-38, %v3240_v9  ;;  %vm3239_vm3 = vcmp.eq.f32.partialorder %v3238_v39, 8.507059e+37 }
 0x290   : > { %v3941_v27 = vadd.f32 %v8154_v46, %v3940_v3  ;;  %5403 = vpow2.f32 %v4843_v22 }
 0x291   : > { %v3222_v54 = vsel %vm3221_vm10, %v5398_v14, %v3218_v10  ;;  %5405 = vpow2.f32 %v4844_v33  ;;  %v4423_v58 = vsel %vm4422_vm2, %v4421_v12, %v4419_v61  ;;  %vm4438_vm10 = vcmask 392512  }
 0x292   : > { %v4112_v20 = vmul.f32 %v8145_v51, %v3941_v27  ;;  %v3227_v62 = vsel %vm3224_vm11, %v3226_v0, %v3222_v54  ;;  %5407 = vpow2.f32 %v4845_v30  ;;  %v8197_v0 = vld [vmem:[%s9095_s4] ss:$0 sm:$0xff] }
 0x293   : > { %v5402_v35 = vpop.eup %5401  ;;  %4905 = vmatmul.msk.f32.gmra.mxu2 %vm3682_vm15, %v3227_v62  ;;  %5409 = vpow2.f32 %v4846_v31  ;;  %v2389_v12 = vadd.f32 %v8197_v0, %v7412_v36 }
 0x294   : > { %v4209_v11 = vsel %vm4160_vm0, %v4112_v20, 0.0  ;;  %v3230_v23 = vmul.f32 %v5402_v35, %v8136_v37  ;;  %vm3235_vm12 = vweird.f32 %v5402_v35 }
 0x295   : > { %4210 = vadd.xlane.f32.xlu1 %v4209_v11  ;;  %vm3236_vm1 = vmor %vm3234_vm14, %vm3235_vm12 }
 0x296   : > { %v3231_v24 = vsub.f32 1.0, %v3230_v23  ;;  %v5404_v14 = vpop.eup %5403  ;;  %v8209_v23 = vadd.s32 4294967264, %v8131_v21 }
 0x297   : > { %v5406_v26 = vpop.eup %5405  ;;  %v8172_v50 = vadd.f32 1.0, %v5404_v14  ;;  %v4169_v59 = vpop.xlane.xlu0 %4168  ;;  %v4848_v14 = vmul.f32 -1.442695, %v2389_v12 }
 0x298   : > { %v3232_v25 = vmul.f32 %v5402_v35, %v3231_v24  ;;  %v4425_v42 = vperm.slane %v4169_v59, %v8169_v48  ;;  %v5408_v40 = vpop.eup %5407  ;;  %v8180_v63 = vadd.f32 1.0, %v5406_v26 }
 0x299   : > { %5411 = vrcp.f32 %v8172_v50  ;;  %v3943_v15 = vpop.f32.mrf.mxu0  ;;  %v8189_v37 = vadd.f32 1.0, %v5408_v40  ;;  %v5410_v10 = vpop.eup %5409  ;;  %v2392_v40 = vadd.f32 %v8197_v0, %v7458_v13  ;;  %vm3249_vm7 = vweird.f32 %v8172_v50 }
 0x29a   : > { %v8176_v19 = vpop.f32.mrf.mxu3  ;;  %v3233_v53 = vadd.f32 %v5402_v35, %v3232_v25  ;;  %v3944_v29 = vadd.f32 %v8154_v46, %v3943_v15  ;;  %v4427_v33 = vsel %vm4426_vm13, %v4425_v42, %v4423_v58  ;;  %5413 = vpow2.f32 %v4847_v56 }
 0x29b   : > { %5415 = vrcp.f32 %v8180_v63  ;;  %v8203_v20 = vadd.f32 1.0, %v5410_v10  ;;  %v3255_v56 = vand.u32 2147483648, %v8172_v50  ;;  %v3253_v42 = vand.u32 2147483647, %v8172_v50 }
 0x29c   : > { %v3237_v22 = vsel %vm3236_vm1, %v5402_v35, %v3233_v53  ;;  %v4113_v30 = vmul.f32 %v8145_v51, %v3944_v29  ;;  %v4172_v55 = vpop.xlane.xlu2 %4171  ;;  %5417 = vrcp.f32 %v8189_v37  ;;  %vm3264_vm12 = vweird.f32 %v8180_v63 }
 0x29d   : > { %v3242_v3 = vsel %vm3239_vm3, %v3241_v28, %v3237_v22  ;;  %v4429_v54 = vperm.slane %v4172_v55, %v8187_v6  ;;  %5419 = vrcp.f32 %v8203_v20  ;;  %v3256_v22 = vor.u32 1.1754944e-38, %v3255_v56 }
 0x29e   : > { %4906 = vmatmul.msk.f32.gmra.mxu2 %vm3682_vm15, %v3242_v3  ;;  %v4212_v61 = vsel %vm4160_vm0, %v4113_v30, 0.0  ;;  %5421 = vpow2.f32 %v4848_v14  ;;  %v8232_v30 = vadd.s32 4294967256, %v8131_v21  ;;  %vm3254_vm9 = vcmp.eq.f32.partialorder %v3253_v42, 8.507059e+37 }
 0x29f   : > { %v5412_v27 = vpop.eup %5411  ;;  %4213 = vadd.xlane.f32.xlu2 %v4212_v61  ;;  %v4431_v11 = vsel %vm4430_vm4, %v4429_v54, %v4427_v33  ;;  %v4849_v55 = vmul.f32 -1.442695, %v2392_v40  ;;  %v3270_v14 = vand.u32 2147483648, %v8180_v63  ;;  %v3268_v56 = vand.u32 2147483647, %v8180_v63 }
 0x2a0   : > { %v5414_v62 = vpop.eup %5413  ;;  %v3245_v31 = vmul.f32 %v5412_v27, %v8172_v50  ;;  %v4175_v36 = vpop.xlane.xlu1 %4174  ;;  %vm3250_vm6 = vweird.f32 %v5412_v27  ;;  %v2395_v42 = vadd.f32 %v8197_v0, %v7516_v41  ;;  %vm9157_vm1 = vcmask 458112  }
 0x2a1   : > { %v3946_v35 = vpop.f32.mrf.mxu0  ;;  %v8213_v24 = vpop.eup %5415  ;;  %v4433_v9 = vperm.slane %v4175_v36, %v8209_v23  ;;  %v8217_v25 = vadd.f32 1.0, %v5414_v62  ;;  %vm3251_vm8 = vmor %vm3249_vm7, %vm3250_vm6  ;;  %vm3269_vm3 = vcmp.eq.f32.partialorder %v3268_v56, 8.507059e+37  ;;  %vm3279_vm7 = vweird.f32 %v8189_v37 }
 0x2a2   : > { %v8205_v58 = vpop.f32.mrf.mxu3  ;;  %v3947_v45 = vadd.f32 %v8154_v46, %v3946_v35  ;;  %v3246_v26 = vsub.f32 1.0, %v3245_v31  ;;  %v8223_v53 = vpop.eup %5417  ;;  %v3260_v28 = vmul.f32 %v8213_v24, %v8180_v63  ;;  %vm3265_vm11 = vweird.f32 %v8213_v24 }
 0x2a3   : > { %v4435_v59 = vsel %vm4434_vm5, %v4433_v9, %v4431_v11  ;;  %5423 = vrcp.f32 %v8217_v25  ;;  %v3275_v13 = vmul.f32 %v8223_v53, %v8189_v37  ;;  %v8237_v61 = vpop.eup %5419  ;;  %vm8256_vm14 = vmor %vm3264_vm12, %vm3265_vm11  ;;  %vm3280_vm6 = vweird.f32 %v8223_v53 }
 0x2a4   : > { %v4114_v39 = vmul.f32 %v8145_v51, %v3947_v45  ;;  %v3247_v15 = vmul.f32 %v5412_v27, %v3246_v26  ;;  %v3261_v3 = vsub.f32 1.0, %v3260_v28  ;;  %v5422_v9 = vpop.eup %5421  ;;  %v3290_v28 = vmul.f32 %v8237_v61, %v8203_v20 }
 0x2a5   : > { %v3276_v31 = vsub.f32 1.0, %v3275_v13  ;;  %vm3295_vm12 = vweird.f32 %v8237_v61 }
 0x2a6   : > { %v4215_v29 = vsel %vm4160_vm0, %v4114_v39, 0.0  ;;  %v3248_v33 = vadd.f32 %v5412_v27, %v3247_v15  ;;  %v3262_v50 = vmul.f32 %v8213_v24, %v3261_v3  ;;  %v8251_v15 = vadd.s32 4294967248, %v8131_v21 }
 0x2a7   : > { %4216 = vadd.xlane.f32.xlu0 %v4215_v29  ;;  %v3277_v41 = vmul.f32 %v8223_v53, %v3276_v31  ;;  %v8269_v3 = vadd.f32 1.0, %v5422_v9 }
 0x2a8   : > { %v3252_v10 = vsel %vm3251_vm8, %v5412_v27, %v3248_v33  ;;  %v4178_v27 = vpop.xlane.xlu2 %4177  ;;  %v3263_v36 = vadd.f32 %v8213_v24, %v3262_v50  ;;  %v8273_v50 = vadd.s32 4294967240, %v8131_v21  ;;  %vm9153_vm8 = vcmask 523712  }
 0x2a9   : > { %v3949_v12 = vpop.f32.mrf.mxu0  ;;  %v3257_v62 = vsel %vm3254_vm9, %v3256_v22, %v3252_v10  ;;  %v4437_v45 = vperm.slane %v4178_v27, %v8232_v30  ;;  %v8262_v33 = vpop.eup %5423  ;;  %v3285_v27 = vand.u32 2147483648, %v8189_v37  ;;  %vm8287_vm9 = vmor %vm3279_vm7, %vm3280_vm6 }
 0x2aa   : > { %v2457_v54 = vpop.f32.mrf.mxu3  ;;  %v3950_v35 = vadd.f32 %v8154_v46, %v3949_v12  ;;  %4907 = vmatmul.msk.f32.gmra.mxu2 %vm3682_vm15, %v3257_v62  ;;  %v3267_v22 = vsel %vm8256_vm14, %v8213_v24, %v3263_v36  ;;  %v4181_v10 = vpop.xlane.xlu0 %4180  ;;  %v4850_v12 = vmul.f32 -1.442695, %v2395_v42  ;;  %v3283_v36 = vand.u32 2147483647, %v8189_v37 }
 0x2ab   : > { %v2458_v11 = vadd.f32 %v8197_v0, %v2457_v54  ;;  %v4439_v40 = vsel %vm4438_vm10, %v4437_v45, %v4435_v59  ;;  %v3271_v59 = vor.u32 1.1754944e-38, %v3270_v14  ;;  %v4441_v13 = vperm.slane %v4181_v10, %v8251_v15 }
 0x2ac   : > { %v4115_v39 = vmul.f32 %v8145_v51, %v3950_v35  ;;  %v3291_v35 = vsub.f32 1.0, %v3290_v28  ;;  %v2398_v37 = vadd.f32 %v8197_v0, %v7560_v47  ;;  %vm3284_vm11 = vcmp.eq.f32.partialorder %v3283_v36, 8.507059e+37 }
 0x2ad   : > { %v4871_v26 = vmul.f32 -1.442695, %v2458_v11  ;;  %v3272_v62 = vsel %vm3269_vm3, %v3271_v59, %v3267_v22  ;;  %v3278_v11 = vadd.f32 %v8223_v53, %v3277_v41  ;;  %v4184_v14 = vpop.xlane.xlu1 %4183  ;;  %v8304_v41 = vadd.s32 4294967232, %v8131_v21 }
 0x2ae   : > { %v4218_v63 = vsel %vm4160_vm0, %v4115_v39, 0.0  ;;  %v4445_v56 = vperm.slane %v4184_v14, %v8273_v50  ;;  %v3292_v42 = vmul.f32 %v8237_v61, %v3291_v35  ;;  %v3300_v35 = vand.u32 2147483648, %v8203_v20 }
 0x2af   : > { %5425 = vpow2.f32 %v4871_v26  ;;  %4219 = vadd.xlane.f32.xlu1 %v4218_v63  ;;  %v3282_v28 = vsel %vm8287_vm9, %v8223_v53, %v3278_v11  ;;  %v3286_v63 = vor.u32 1.1754944e-38, %v3285_v27  ;;  %vm9152_vm14 = vcmask 589312  }
 0x2b0   : > { %5427 = vpow2.f32 %v4849_v55  ;;  %v4443_v55 = vsel %vm9157_vm1, %v4441_v13, %v4439_v40  ;;  %v3305_v40 = vmul.f32 %v8262_v33, %v8217_v25  ;;  %vm3294_vm3 = vweird.f32 %v8203_v20 }
 0x2b1   : > { %v3952_v54 = vpop.f32.mrf.mxu0  ;;  %5429 = vrcp.f32 %v8269_v3  ;;  %v4447_v22 = vsel %vm9153_vm8, %v4445_v56, %v4443_v55  ;;  %v3287_v13 = vsel %vm3284_vm11, %v3286_v63, %v3282_v28  ;;  %v2401_v55 = vadd.f32 %v8197_v0, %v7613_v7  ;;  %vm8324_vm6 = vmor %vm3294_vm3, %vm3295_vm12 }
 0x2b2   : > { %v3953_v24 = vadd.f32 %v8154_v46, %v3952_v54  ;;  %4908 = vmatmul.msk.f32.gmra.mxu2 %vm3682_vm15, %v3272_v62  ;;  %5431 = vpow2.f32 %v4850_v12  ;;  %v3293_v12 = vadd.f32 %v8237_v61, %v3292_v42  ;;  %v3306_v53 = vsub.f32 1.0, %v3305_v40 }
 0x2b3   : > { %v4851_v54 = vmul.f32 -1.442695, %v2398_v37  ;;  %v3298_v11 = vand.u32 2147483647, %v8203_v20  ;;  %v3301_v40 = vor.u32 1.1754944e-38, %v3300_v35  ;;  %v8338_v37 = vadd.s32 4294967224, %v8131_v21 }
 0x2b4   : > { %v4116_v45 = vmul.f32 %v8145_v51, %v3953_v24  ;;  %v4187_v24 = vpop.xlane.xlu2 %4186  ;;  %v3297_v7 = vsel %vm8324_vm6, %v8237_v61, %v3293_v12  ;;  %v4852_v28 = vmul.f32 -1.442695, %v2401_v55  ;;  %vm3310_vm9 = vweird.f32 %v8262_v33 }
 0x2b5   : > { %v5426_v31 = vpop.eup %5425  ;;  %v4449_v27 = vperm.slane %v4187_v24, %v8304_v41  ;;  %vm3299_vm7 = vcmp.eq.f32.partialorder %v3298_v11, 8.507059e+37  ;;  %vm4454_vm11 = vcmask 654912   ;;  %vm3309_vm6 = vweird.f32 %v8217_v25 }
 0x2b6   : > { %v5428_v9 = vpop.eup %5427  ;;  %v8285_v26 = vadd.f32 1.0, %v5426_v31  ;;  %v4221_v29 = vsel %vm4160_vm0, %v4116_v45, 0.0  ;;  %v3302_v63 = vsel %vm3299_vm7, %v3301_v40, %v3297_v7  ;;  %v3313_v11 = vand.u32 2147483647, %v8217_v25  ;;  %vm8358_vm7 = vmor %vm3309_vm6, %vm3310_vm9 }
 0x2b7   : > { %4222 = vadd.xlane.f32.xlu2 %v4221_v29  ;;  %v8306_v59 = vadd.f32 1.0, %v5428_v9  ;;  %v8308_v10 = vpop.eup %5429  ;;  %v4451_v20 = vsel %vm9152_vm14, %v4449_v27, %v4447_v22  ;;  %v3307_v9 = vmul.f32 %v8262_v33, %v3306_v53  ;;  %v3315_v27 = vand.u32 2147483648, %v8217_v25 }
 0x2b8   : > { %5433 = vrcp.f32 %v8285_v26  ;;  %v5432_v31 = vpop.eup %5431  ;;  %v3320_v39 = vmul.f32 %v8308_v10, %v8269_v3  ;;  %v3673_v22 = vand.u32 2147483647, %v8285_v26  ;;  %v4190_v53 = vpop.xlane.xlu0 %4189  ;;  %vm3669_vm3 = vweird.f32 %v8285_v26 }
 0x2b9   : > { %v3955_v47 = vpop.f32.mrf.mxu0  ;;  %5435 = vrcp.f32 %v8306_v59  ;;  %v8340_v29 = vadd.f32 1.0, %v5432_v31  ;;  %v3308_v12 = vadd.f32 %v8262_v33, %v3307_v9  ;;  %v4453_v55 = vperm.slane %v4190_v53, %v8338_v37 }
 0x2ba   : > { %v3956_v62 = vadd.f32 %v8154_v46, %v3955_v47  ;;  %4909 = vmatmul.msk.f32.gmra.mxu2 %vm3682_vm15, %v3287_v13  ;;  %5437 = vpow2.f32 %v4851_v54  ;;  %v3675_v13 = vand.u32 2147483648, %v8285_v26  ;;  %v8364_v9 = vadd.s32 4294967216, %v8131_v21 }
 0x2bb   : > { %v4455_v7 = vsel %vm4454_vm11, %v4453_v55, %v4451_v20  ;;  %5439 = vrcp.f32 %v8340_v29  ;;  %vm3674_vm8 = vcmp.eq.f32.partialorder %v3673_v22, 8.507059e+37  ;;  %v3312_v40 = vsel %vm8358_vm7, %v8262_v33, %v3308_v12 }
 0x2bc   : > { %v4117_v45 = vmul.f32 %v8145_v51, %v3956_v62  ;;  %v3321_v62 = vsub.f32 1.0, %v3320_v39  ;;  %v3676_v25 = vor.u32 1.1754944e-38, %v3675_v13  ;;  %vm4458_vm9 = vcmask 720512  }
 0x2bd   : > { %5441 = vpow2.f32 %v4852_v28  ;;  %v2404_v22 = vadd.f32 %v8197_v0, %v7657_v44  ;;  %v3330_v55 = vand.u32 2147483648, %v8269_v3  ;;  %vm9158_vm6 = vcmask 786112  }
 0x2be   : > { %v5434_v14 = vpop.eup %5433  ;;  %v4224_v42 = vsel %vm4160_vm0, %v4117_v45, 0.0  ;;  %v3322_v20 = vmul.f32 %v8308_v10, %v3321_v62 }
 0x2bf   : > { %v3665_v56 = vmul.f32 %v5434_v14, %v8285_v26  ;;  %4225 = vadd.xlane.f32.xlu0 %v4224_v42  ;;  %v8346_v35 = vpop.eup %5435  ;;  %vm3670_vm12 = vweird.f32 %v5434_v14 }
 0x2c0   : > { %v5438_v26 = vpop.eup %5437  ;;  %vm3671_vm14 = vmor %vm3669_vm3, %vm3670_vm12  ;;  %v3335_v39 = vmul.f32 %v8346_v35, %v8306_v59  ;;  %vm3314_vm12 = vcmp.eq.f32.partialorder %v3313_v11, 8.507059e+37  ;;  %v3323_v28 = vadd.f32 %v8308_v10, %v3322_v20  ;;  %v4853_v11 = vmul.f32 -1.442695, %v2404_v22 }
 0x2c1   : > { %v3666_v61 = vsub.f32 1.0, %v3665_v56  ;;  %v3958_v47 = vpop.f32.mrf.mxu0  ;;  %v8378_v13 = vadd.f32 1.0, %v5438_v26 }
 0x2c2   : > { %v3959_v54 = vadd.f32 %v8154_v46, %v3958_v47  ;;  %4910 = vmatmul.msk.f32.gmra.mxu2 %vm3682_vm15, %v3302_v63  ;;  %v3316_v63 = vor.u32 1.1754944e-38, %v3315_v27  ;;  %v3336_v12 = vsub.f32 1.0, %v3335_v39 }
 0x2c3   : > { %v3667_v24 = vmul.f32 %v5434_v14, %v3666_v61  ;;  %5443 = vrcp.f32 %v8378_v13 }
 0x2c4   : > { %v4118_v31 = vmul.f32 %v8145_v51, %v3959_v54  ;;  %v4193_v47 = vpop.xlane.xlu1 %4192  ;;  %v3317_v33 = vsel %vm3314_vm12, %v3316_v63, %v3312_v40  ;;  %v8386_v54 = vadd.s32 4294967208, %v8131_v21  ;;  %v3337_v36 = vmul.f32 %v8346_v35, %v3336_v12 }
 0x2c5   : > { %v3668_v45 = vadd.f32 %v5434_v14, %v3667_v24  ;;  %v8388_v24 = vpop.eup %5439  ;;  %5445 = vpow2.f32 %v4853_v11  ;;  %v2407_v40 = vadd.f32 %v8197_v0, %v7704_v5  ;;  %vm3340_vm12 = vweird.f32 %v8346_v35 }
 0x2c6   : > { %v4227_v56 = vsel %vm4160_vm0, %v4118_v31, 0.0  ;;  %v3328_v31 = vand.u32 2147483647, %v8269_v3  ;;  %v5442_v26 = vpop.eup %5441  ;;  %v3345_v5 = vand.u32 2147483648, %v8306_v59 }
 0x2c7   : > { %v3672_v42 = vsel %vm3671_vm14, %v5434_v14, %v3668_v45  ;;  %4228 = vadd.xlane.f32.xlu1 %v4227_v56  ;;  %v4457_v14 = vperm.slane %v4193_v47, %v8364_v9  ;;  %vm3325_vm14 = vweird.f32 %v8308_v10  ;;  %v4854_v12 = vmul.f32 -1.442695, %v2407_v40 }
 0x2c8   : > { %v3677_v61 = vsel %vm3674_vm8, %v3676_v25, %v3672_v42  ;;  %vm3324_vm8 = vweird.f32 %v8269_v3  ;;  %v3350_v3 = vmul.f32 %v8388_v24, %v8340_v29  ;;  %v3331_v42 = vor.u32 1.1754944e-38, %v3330_v55 }
 0x2c9   : > { %4935 = vmatmul.msk.f32.vlgmr.msra.gmra.mxu3 %vm3682_vm15, %v3677_v61  ;;  %v3961_v53 = vpop.f32.mrf.mxu0  ;;  %v4459_v44 = vsel %vm4458_vm9, %v4457_v14, %v4455_v7  ;;  %vm8395_vm3 = vmor %vm3324_vm8, %vm3325_vm14  ;;  %vm3329_vm7 = vcmp.eq.f32.partialorder %v3328_v31, 8.507059e+37  ;;  %v8410_v61 = vadd.f32 1.0, %v5442_v26  ;;  %vm3339_vm14 = vweird.f32 %v8306_v59 }
 0x2ca   : > { %v3962_v62 = vadd.f32 %v8154_v46, %v3961_v53  ;;  %4911 = vmatmul.msk.f32.gmra.mxu2 %vm3682_vm15, %v3317_v33  ;;  %v3327_v39 = vsel %vm8395_vm3, %v8308_v10, %v3323_v28  ;;  %v3338_v10 = vadd.f32 %v8346_v35, %v3337_v36  ;;  %v3351_v14 = vsub.f32 1.0, %v3350_v3  ;;  %v8416_v53 = vpop.eup %5443  ;;  %vm8424_vm8 = vmor %vm3339_vm14, %vm3340_vm12 }
 0x2cb   : > { %v3332_v47 = vsel %vm3329_vm7, %v3331_v42, %v3327_v39  ;;  %v8421_v33 = vadd.s32 4294967200, %v8131_v21  ;;  %5447 = vrcp.f32 %v8410_v61  ;;  %v5446_v11 = vpop.eup %5445  ;;  %vm9156_vm3 = vcmask 851712  }
 0x2cc   : > { %v4119_v27 = vmul.f32 %v8145_v51, %v3962_v62  ;;  %v3342_v55 = vsel %vm8424_vm8, %v8346_v35, %v3338_v10  ;;  %v3352_v31 = vmul.f32 %v8388_v24, %v3351_v14  ;;  %v3365_v36 = vmul.f32 %v8416_v53, %v8378_v13 }
 0x2cd   : > { %5449 = vpow2.f32 %v4854_v12  ;;  %v2410_v26 = vadd.f32 %v8197_v0, %v7773_v16  ;;  %v8440_v35 = vadd.f32 1.0, %v5446_v11  ;;  %vm3355_vm12 = vweird.f32 %v8388_v24 }
 0x2ce   : > { %v4230_v25 = vsel %vm4160_vm0, %v4119_v27, 0.0  ;;  %v3353_v42 = vadd.f32 %v8388_v24, %v3352_v31  ;;  %v3366_v40 = vsub.f32 1.0, %v3365_v36  ;;  %v3360_v16 = vand.u32 2147483648, %v8340_v29 }
 0x2cf   : > { %v4196_v7 = vpop.xlane.xlu2 %4195  ;;  %4231 = vadd.xlane.f32.xlu2 %v4230_v25  ;;  %vm3354_vm14 = vweird.f32 %v8340_v29  ;;  %5451 = vrcp.f32 %v8440_v35  ;;  %v8468_v11 = vadd.s32 4294967192, %v8131_v21 }
 0x2d0   : > { %v4461_v56 = vperm.slane %v4196_v7, %v8386_v54  ;;  %v3346_v7 = vor.u32 1.1754944e-38, %v3345_v5  ;;  %vm8454_vm8 = vmor %vm3354_vm14, %vm3355_vm12  ;;  %vm3370_vm12 = vweird.f32 %v8416_v53  ;;  %vm9154_vm14 = vcmask 917312  }
 0x2d1   : > { %v3964_v63 = vpop.f32.mrf.mxu0  ;;  %v3357_v12 = vsel %vm8454_vm8, %v8388_v24, %v3353_v42  ;;  %vm3369_vm8 = vweird.f32 %v8378_v13 }
 0x2d2   : > { %v4463_v20 = vsel %vm9158_vm6, %v4461_v56, %v4459_v44  ;;  %v3965_v22 = vadd.f32 %v8154_v46, %v3964_v63  ;;  %4912 = vmatmul.msk.f32.gmra.mxu2 %vm3682_vm15, %v3332_v47  ;;  %v3343_v44 = vand.u32 2147483647, %v8306_v59  ;;  %v8447_v63 = vpop.eup %5447  ;;  %v4855_v47 = vmul.f32 -1.442695, %v2410_v26 }
 0x2d3   : > { %v5450_v14 = vpop.eup %5449  ;;  %v3380_v28 = vmul.f32 %v8447_v63, %v8410_v61 }
 0x2d4   : > { %v4120_v62 = vmul.f32 %v8145_v51, %v3965_v22  ;;  %vm3344_vm7 = vcmp.eq.f32.partialorder %v3343_v44, 8.507059e+37  ;;  %v3361_v44 = vor.u32 1.1754944e-38, %v3360_v16  ;;  %5453 = vpow2.f32 %v4855_v47 }
 0x2d5   : > { %v3347_v39 = vsel %vm3344_vm7, %v3346_v7, %v3342_v55  ;;  %v8471_v31 = vadd.f32 1.0, %v5450_v14  ;;  %v3373_v16 = vand.u32 2147483647, %v8378_v13 }
 0x2d6   : > { %v4233_v27 = vsel %vm4160_vm0, %v4120_v62, 0.0  ;;  %v3367_v62 = vmul.f32 %v8416_v53, %v3366_v40 }
 0x2d7   : > { %4234 = vadd.xlane.f32.xlu0 %v4233_v27  ;;  %5455 = vrcp.f32 %v8471_v31 }
 0x2d9   : > { %v3967_v25 = vpop.f32.mrf.mxu0 }
 0x2da   : > { %v4199_v45 = vpop.xlane.xlu0 %4198  ;;  %v3968_v3 = vadd.f32 %v8154_v46, %v3967_v25  ;;  %4913 = vmatmul.msk.f32.gmra.mxu2 %vm3682_vm15, %v3347_v39  ;;  %v3973_v55 = vpop.f32.mrf.mxu2 }
 0x2db   : > { %v4465_v59 = vperm.slane %v4199_v45, %v8421_v33  ;;  %v3974_v27 = vadd.f32 %v8154_v46, %v3973_v55  ;;  %v8478_v25 = vpop.eup %5451 }
 0x2dc   : > { %v4121_v10 = vmul.f32 %v8145_v51, %v3968_v3  ;;  %v3375_v3 = vand.u32 2147483648, %v8378_v13  ;;  %v5454_v22 = vpop.eup %5453 }
 0x2dd   : > { %v4467_v56 = vsel %vm9156_vm3, %v4465_v59, %v4463_v20  ;;  %v3358_v20 = vand.u32 2147483647, %v8340_v29  ;;  %v2413_v29 = vadd.f32 %v8197_v0, %v7820_v18  ;;  %v3368_v18 = vadd.f32 %v8416_v53, %v3367_v62 }
 0x2de   : > { %v4236_v5 = vsel %vm4160_vm0, %v4121_v10, 0.0  ;;  %v3381_v59 = vsub.f32 1.0, %v3380_v28  ;;  %v4123_v26 = vmul.f32 %v8145_v51, %v3974_v27  ;;  %v3376_v62 = vor.u32 1.1754944e-38, %v3375_v3 }
 0x2df   : > { %4237 = vadd.xlane.f32.xlu1 %v4236_v5  ;;  %vm3359_vm7 = vcmp.eq.f32.partialorder %v3358_v20, 8.507059e+37  ;;  %v4856_v39 = vmul.f32 -1.442695, %v2413_v29 }
 0x2e0   : > { %v3362_v45 = vsel %vm3359_vm7, %v3361_v44, %v3357_v12  ;;  %v4242_v47 = vsel %vm4160_vm0, %v4123_v26, 0.0  ;;  %vm8489_vm7 = vmor %vm3369_vm8, %vm3370_vm12  ;;  %v3382_v5 = vmul.f32 %v8447_v63, %v3381_v59  ;;  %v3395_v12 = vmul.f32 %v8478_v25, %v8440_v35 }
 0x2e1   : > { %v3970_v24 = vpop.f32.mrf.mxu0  ;;  %4243 = vadd.xlane.f32.xlu0 %v4242_v47  ;;  %v3372_v13 = vsel %vm8489_vm7, %v8416_v53, %v3368_v18  ;;  %5457 = vpow2.f32 %v4856_v39  ;;  %vm3374_vm12 = vcmp.eq.f32.partialorder %v3373_v16, 8.507059e+37  ;;  %v8504_v44 = vadd.f32 1.0, %v5454_v22 }
 0x2e2   : > { %v3971_v36 = vadd.f32 %v8154_v46, %v3970_v24  ;;  %4914 = vmatmul.msk.f32.gmra.mxu2 %vm3682_vm15, %v3362_v45  ;;  %v3976_v28 = vpop.f32.mrf.mxu2  ;;  %v3377_v55 = vsel %vm3374_vm12, %v3376_v62, %v3372_v13  ;;  %v3383_v53 = vadd.f32 %v8447_v63, %v3382_v5  ;;  %vm3385_vm8 = vweird.f32 %v8447_v63  ;;  %v8510_v45 = vpop.eup %5455 }
 0x2e3   : > { %v3977_v29 = vadd.f32 %v8154_v46, %v3976_v28  ;;  %v3396_v27 = vsub.f32 1.0, %v3395_v12  ;;  %vm3384_vm7 = vweird.f32 %v8410_v61  ;;  %5459 = vrcp.f32 %v8504_v44 }
 0x2e4   : > { %v4122_v40 = vmul.f32 %v8145_v51, %v3971_v36  ;;  %v3390_v36 = vand.u32 2147483648, %v8410_v61  ;;  %vm8520_vm12 = vmor %vm3384_vm7, %vm3385_vm8  ;;  %v2419_v22 = vadd.f32 %v8197_v0, %v7898_v34  ;;  %vm3400_vm7 = vweird.f32 %v8478_v25 }
 0x2e5   : > { %v4202_v7 = vpop.xlane.xlu1 %4201  ;;  %v4124_v24 = vmul.f32 %v8145_v51, %v3977_v29  ;;  %v3387_v3 = vsel %vm8520_vm12, %v8447_v63, %v3383_v53  ;;  %v3405_v34 = vand.u32 2147483648, %v8440_v35  ;;  %vm3399_vm12 = vweird.f32 %v8440_v35 }
 0x2e6   : > { %v4469_v42 = vperm.slane %v4202_v7, %v8468_v11  ;;  %v4239_v14 = vsel %vm4160_vm0, %v4122_v40, 0.0  ;;  %v3388_v7 = vand.u32 2147483647, %v8410_v61  ;;  %v3397_v40 = vmul.f32 %v8478_v25, %v3396_v27 }
 0x2e7   : > { %4240 = vadd.xlane.f32.xlu2 %v4239_v14  ;;  %v4245_v59 = vsel %vm4160_vm0, %v4124_v24, 0.0  ;;  %v5458_v39 = vpop.eup %5457  ;;  %v3410_v61 = vmul.f32 %v8510_v45, %v8471_v31  ;;  %v3391_v16 = vor.u32 1.1754944e-38, %v3390_v36  ;;  %v4858_v29 = vmul.f32 -1.442695, %v2419_v22 }
 0x2e8   : > { %v4471_v20 = vsel %vm9154_vm14, %v4469_v42, %v4467_v56  ;;  %v2416_v56 = vadd.f32 %v8197_v0, %v7860_v17  ;;  %v8514_v17 = vadd.s32 4294967184, %v8131_v21  ;;  %4246 = vadd.xlane.f32.xlu1 %v4245_v59  ;;  %vm9155_vm14 = vcmask 982912  }
 0x2e9   : > { %vm3389_vm8 = vcmp.eq.f32.partialorder %v3388_v7, 8.507059e+37  ;;  %v8534_v13 = vadd.f32 1.0, %v5458_v39  ;;  %v3398_v12 = vadd.f32 %v8478_v25, %v3397_v40  ;;  %v3411_v62 = vsub.f32 1.0, %v3410_v61 }
 0x2ea   : > { %4915 = vmatmul.msk.f32.gmra.mxu2 %vm3682_vm15, %v3377_v55  ;;  %v4857_v18 = vmul.f32 -1.442695, %v2416_v56  ;;  %v3392_v63 = vsel %vm3389_vm8, %v3391_v16, %v3387_v3  ;;  %v8541_v56 = vpop.eup %5459  ;;  %v3403_v55 = vand.u32 2147483647, %v8440_v35  ;;  %vm3401_vm8 = vmor %vm3399_vm12, %vm3400_vm7  ;;  %v8553_v7 = vadd.s32 4294967176, %v8131_v21 }
 0x2eb   : > { %v3402_v27 = vsel %vm3401_vm8, %v8478_v25, %v3398_v12  ;;  %v3412_v24 = vmul.f32 %v8510_v45, %v3411_v62  ;;  %v3425_v36 = vmul.f32 %v8541_v56, %v8504_v44  ;;  %v2422_v35 = vadd.f32 %v8197_v0, %v7922_v38 }
 0x2ec   : > { %v3979_v10 = vpop.f32.mrf.mxu2  ;;  %5461 = vpow2.f32 %v4857_v18  ;;  %v3406_v18 = vor.u32 1.1754944e-38, %v3405_v34  ;;  %vm4478_vm7 = vcmask 1048512   ;;  %vm3415_vm12 = vweird.f32 %v8510_v45 }
 0x2ed   : > { %v3980_v14 = vadd.f32 %v8154_v46, %v3979_v10  ;;  %5463 = vrcp.f32 %v8534_v13  ;;  %v3426_v40 = vsub.f32 1.0, %v3425_v36  ;;  %v4859_v10 = vmul.f32 -1.442695, %v2422_v35 }
 0x2ee   : > { %5465 = vpow2.f32 %v4858_v29  ;;  %v3418_v22 = vand.u32 2147483647, %v8471_v31 }
 0x2ef   : > { %v4125_v28 = vmul.f32 %v8145_v51, %v3980_v14 }
 0x2f0   : > { %vm3419_vm3 = vcmp.eq.f32.partialorder %v3418_v22, 8.507059e+37 }
 0x2f1   : > { %v4205_v42 = vpop.xlane.xlu2 %4204 }
 0x2f2   : > { %v4473_v47 = vperm.slane %v4205_v42, %v8514_v17  ;;  %4916 = vmatmul.msk.f32.gmra.mxu2 %vm3682_vm15, %v3392_v63  ;;  %v5462_v53 = vpop.eup %5461  ;;  %v3413_v42 = vadd.f32 %v8510_v45, %v3412_v24 }
 0x2f3   : > { %v8558_v39 = vadd.f32 1.0, %v5462_v53  ;;  %v8564_v16 = vpop.eup %5463 }
 0x2f4   : > { %v4475_v5 = vsel %vm9155_vm14, %v4473_v47, %v4471_v20  ;;  %v4248_v20 = vsel %vm4160_vm0, %v4125_v28, 0.0  ;;  %v3982_v59 = vpop.f32.mrf.mxu2  ;;  %vm3404_vm14 = vcmp.eq.f32.partialorder %v3403_v55, 8.507059e+37  ;;  %v3420_v47 = vand.u32 2147483648, %v8471_v31  ;;  %v5466_v12 = vpop.eup %5465 }
 0x2f5   : > { %4249 = vadd.xlane.f32.xlu2 %v4248_v20  ;;  %v3983_v26 = vadd.f32 %v8154_v46, %v3982_v59  ;;  %v3407_v25 = vsel %vm3404_vm14, %v3406_v18, %v3402_v27  ;;  %vm3414_vm14 = vweird.f32 %v8471_v31  ;;  %5467 = vrcp.f32 %v8558_v39 }
 0x2f6   : > { %vm3416_vm8 = vmor %vm3414_vm14, %vm3415_vm12  ;;  %v3427_v28 = vmul.f32 %v8541_v56, %v3426_v40  ;;  %v3440_v34 = vmul.f32 %v8564_v16, %v8534_v13  ;;  %v3421_v29 = vor.u32 1.1754944e-38, %v3420_v47  ;;  %5469 = vpow2.f32 %v4859_v10 }
 0x2f7   : > { %v4126_v61 = vmul.f32 %v8145_v51, %v3983_v26  ;;  %v3417_v62 = vsel %vm3416_vm8, %v8510_v45, %v3413_v42  ;;  %v2425_v31 = vadd.f32 %v8197_v0, %v7964_v49  ;;  %v8582_v20 = vadd.f32 1.0, %v5466_v12  ;;  %v8594_v49 = vld [vmem:[%s9098_s7] sm:$0xf] }
 0x2f8   : > { %v3422_v53 = vsel %vm3419_vm3, %v3421_v29, %v3417_v62  ;;  %v3428_v45 = vadd.f32 %v8541_v56, %v3427_v28  ;;  %vm3430_vm12 = vweird.f32 %v8541_v56  ;;  %v3441_v27 = vsub.f32 1.0, %v3440_v34 }
 0x2f9   : > { %v4251_v14 = vsel %vm4160_vm0, %v4126_v61, 0.0  ;;  %v3435_v18 = vand.u32 2147483648, %v8504_v44  ;;  %v4086_v59 = vrot.slane %v8594_v49, 2  ;;  %v4860_v35 = vmul.f32 -1.442695, %v2425_v31 }
 0x2fa   : > { %4917 = vmatmul.msk.f32.gmra.mxu2 %vm3682_vm15, %v3407_v25  ;;  %4252 = vadd.xlane.f32.xlu0 %v4251_v14  ;;  %vm3429_vm3 = vweird.f32 %v8504_v44  ;;  %v3433_v26 = vand.u32 2147483647, %v8504_v44  ;;  %5471 = vrcp.f32 %v8582_v20  ;;  %v3442_v42 = vmul.f32 %v8564_v16, %v3441_v27 }
 0x2fb   : > { %v8588_v36 = vpop.eup %5467  ;;  %vm3431_vm14 = vmor %vm3429_vm3, %vm3430_vm12  ;;  %v3436_v61 = vor.u32 1.1754944e-38, %v3435_v18  ;;  %5473 = vpow2.f32 %v4860_v35  ;;  %v2428_v44 = vadd.f32 %v8197_v0, %v8001_v32  ;;  %vm3445_vm12 = vweird.f32 %v8564_v16 }
 0x2fc   : > { %v3455_v40 = vmul.f32 %v8588_v36, %v8558_v39  ;;  %vm3434_vm8 = vcmp.eq.f32.partialorder %v3433_v26, 8.507059e+37  ;;  %v3450_v28 = vand.u32 2147483648, %v8534_v13  ;;  %vm3444_vm3 = vweird.f32 %v8534_v13 }
 0x2fd   : > { %v4208_v3 = vpop.xlane.xlu0 %4207  ;;  %v4861_v34 = vmul.f32 -1.442695, %v2428_v44  ;;  %v3448_v29 = vand.u32 2147483647, %v8534_v13  ;;  %v3463_v44 = vand.u32 2147483647, %v8558_v39 }
 0x2fe   : > { %v4477_v38 = vperm.slane %v4208_v3, %v8553_v7  ;;  %v3432_v3 = vsel %vm3431_vm14, %v8541_v56, %v3428_v45  ;;  %v3443_v56 = vadd.f32 %v8564_v16, %v3442_v42  ;;  %v3456_v12 = vsub.f32 1.0, %v3455_v40  ;;  %vm8622_vm14 = vmor %vm3444_vm3, %vm3445_vm12 }
 0x2ff   : > { %v3985_v55 = vpop.f32.mrf.mxu2  ;;  %v3437_v22 = vsel %vm3434_vm8, %v3436_v61, %v3432_v3  ;;  %v3451_v27 = vor.u32 1.1754944e-38, %v3450_v28  ;;  %vm3449_vm8 = vcmp.eq.f32.partialorder %v3448_v29, 8.507059e+37  ;;  %vm3460_vm12 = vweird.f32 %v8588_v36 }
 0x300   : > { %v8573_v63 = vsel %vm4478_vm7, %v4477_v38, %v4475_v5  ;;  %v3986_v5 = vadd.f32 %v8154_v46, %v3985_v55  ;;  %v8605_v38 = vperm.slane %v4086_v59, 0  ;;  %v3457_v45 = vmul.f32 %v8588_v36, %v3456_v12 }
 0x301   : > { %v3465_v42 = vand.u32 2147483648, %v8558_v39  ;;  %vm3459_vm3 = vweird.f32 %v8558_v39 }
 0x302   : > { %4918 = vmatmul.msk.f32.gmra.mxu2 %vm3682_vm15, %v3422_v53  ;;  %v4127_v24 = vmul.f32 %v8145_v51, %v3986_v5  ;;  %v5470_v51 = vpop.eup %5469  ;;  %v3447_v53 = vsel %vm8622_vm14, %v8564_v16, %v3443_v56  ;;  %vm3461_vm14 = vmor %vm3459_vm3, %vm3460_vm12  ;;  %vm3474_vm3 = vweird.f32 %v8582_v20 }
 0x303   : > { %v8609_v10 = vadd.f32 1.0, %v5470_v51  ;;  %v8615_v62 = vpop.eup %5471  ;;  %v3452_v16 = vsel %vm3449_vm8, %v3451_v27, %v3447_v53  ;;  %vm3464_vm8 = vcmp.eq.f32.partialorder %v3463_v44, 8.507059e+37  ;;  %v3478_v27 = vand.u32 2147483647, %v8582_v20 }
 0x304   : > { %v4254_v25 = vsel %vm4160_vm0, %v4127_v24, 0.0  ;;  %v5474_v31 = vpop.eup %5473  ;;  %v3470_v13 = vmul.f32 %v8615_v62, %v8582_v20  ;;  %v2431_v24 = vadd.f32 %v8197_v0, %v8034_v52  ;;  %vm3475_vm12 = vweird.f32 %v8615_v62 }
 0x305   : > { %4255 = vadd.xlane.f32.xlu1 %v4254_v25  ;;  %5475 = vrcp.f32 %v8609_v10  ;;  %v8635_v59 = vadd.f32 1.0, %v5474_v31  ;;  %v3458_v25 = vadd.f32 %v8588_v36, %v3457_v45 }
 0x306   : > { %5477 = vpow2.f32 %v4861_v34  ;;  %v3471_v51 = vsub.f32 1.0, %v3470_v13  ;;  %v4862_v61 = vmul.f32 -1.442695, %v2431_v24  ;;  %v2434_v34 = vadd.f32 %v8197_v0, %v8066_v4 }
 0x307   : > { %5479 = vrcp.f32 %v8635_v59  ;;  %v3462_v56 = vsel %vm3461_vm14, %v8588_v36, %v3458_v25  ;;  %v3480_v4 = vand.u32 2147483648, %v8582_v20  ;;  %vm3476_vm14 = vmor %vm3474_vm3, %vm3475_vm12  ;;  %v8683_v25 = vld [vmem:[%s9095_s4] ss:$0 sm:$0xff]  ;;  %vm3489_vm3 = vweird.f32 %v8609_v10 }
 0x308   : > { %v4211_v5 = vpop.xlane.xlu1 %4210  ;;  %v3472_v12 = vmul.f32 %v8615_v62, %v3471_v51  ;;  %5481 = vpow2.f32 %v4862_v61  ;;  %v4863_v0 = vmul.f32 -1.442695, %v2434_v34  ;;  %v2437_v20 = vadd.f32 %v8683_v25, %v8096_v2 }
 0x309   : > { %v4480_v35 = vperm.slane %v4211_v5, %v8131_v21  ;;  %v3481_v51 = vor.u32 1.1754944e-38, %v3480_v4 }
 0x30a   : > { %4919 = vmatmul.msk.f32.gmra.mxu2 %vm3682_vm15, %v3437_v22  ;;  %v3473_v5 = vadd.f32 %v8615_v62, %v3472_v12  ;;  %v4864_v2 = vmul.f32 -1.442695, %v2437_v20  ;;  %v3495_v12 = vand.u32 2147483648, %v8609_v10 }
 0x30b   : > { %v3988_v47 = vpop.f32.mrf.mxu2  ;;  %v8642_v3 = vpop.eup %5475 }
 0x30c   : > { %v3989_v14 = vadd.f32 %v8154_v46, %v3988_v47  ;;  %v8651_v47 = vld [vmem:[%s9097_s6] ss:$0 sm:$0xff]  ;;  %v3485_v39 = vmul.f32 %v8642_v3, %v8609_v10  ;;  %vm3490_vm12 = vweird.f32 %v8642_v3 }
 0x30e   : > { %v4128_v32 = vmul.f32 %v8605_v38, %v3989_v14  ;;  %v5478_v14 = vpop.eup %5477  ;;  %v3486_v53 = vsub.f32 1.0, %v3485_v39  ;;  %v3493_v39 = vand.u32 2147483647, %v8609_v10 }
 0x30f   : > { %v8663_v46 = vadd.f32 1.0, %v5478_v14  ;;  %v8669_v45 = vpop.eup %5479 }
 0x310   : > { %v4257_v55 = vsel %vm4160_vm0, %v4128_v32, 0.0  ;;  %v3466_v32 = vor.u32 1.1754944e-38, %v3465_v42  ;;  %v5482_v24 = vpop.eup %5481 }
 0x311   : > { %4258 = vadd.xlane.f32.xlu2 %v4257_v55  ;;  %5483 = vrcp.f32 %v8663_v46 }
 0x312   : > { %v4214_v18 = vpop.xlane.xlu2 %4213  ;;  %4920 = vmatmul.msk.f32.gmra.mxu2 %vm3682_vm15, %v3452_v16  ;;  %v3467_v31 = vsel %vm3464_vm8, %v3466_v32, %v3462_v56  ;;  %v3500_v16 = vmul.f32 %v8669_v45, %v8635_v59  ;;  %5485 = vpow2.f32 %v4863_v0  ;;  %vm3479_vm8 = vcmp.eq.f32.partialorder %v3478_v27, 8.507059e+37 }
 0x313   : > { %v4481_v26 = vperm.slane %v4214_v18, %v8140_v57  ;;  %v3477_v18 = vsel %vm3476_vm14, %v8615_v62, %v3473_v5  ;;  %v8688_v62 = vadd.f32 1.0, %v5482_v24  ;;  %vm3491_vm14 = vmor %vm3489_vm3, %vm3490_vm12  ;;  %v2440_v5 = vadd.f32 %v8683_v25, %v8108_v43 }
 0x314   : > { %v3482_v42 = vsel %vm3479_vm8, %v3481_v51, %v3477_v18  ;;  %vm3494_vm8 = vcmp.eq.f32.partialorder %v3493_v39, 8.507059e+37  ;;  %vm3505_vm12 = vweird.f32 %v8669_v45  ;;  %v3510_v24 = vand.u32 2147483648, %v8635_v59 }
 0x315   : > { %v4482_v52 = vsel %vm4422_vm2, %v4481_v26, %v4480_v35  ;;  %v3487_v26 = vmul.f32 %v8642_v3, %v3486_v53  ;;  %5487 = vrcp.f32 %v8688_v62  ;;  %v4865_v18 = vmul.f32 -1.442695, %v2440_v5 }
 0x316   : > { %v3991_v40 = vpop.f32.mrf.mxu2  ;;  %5489 = vpow2.f32 %v4864_v2  ;;  %vm3504_vm3 = vweird.f32 %v8635_v59  ;;  %v3508_v43 = vand.u32 2147483647, %v8635_v59  ;;  %v3511_v59 = vor.u32 1.1754944e-38, %v3510_v24 }
 0x317   : > { %v3992_v22 = vadd.f32 %v8651_v47, %v3991_v40  ;;  %v3488_v44 = vadd.f32 %v8642_v3, %v3487_v26  ;;  %v8694_v14 = vpop.eup %5483  ;;  %v2443_v26 = vadd.f32 %v8683_v25, %v8114_v8 }
 0x318   : > { %v5486_v34 = vpop.eup %5485 }
 0x319   : > { %v4129_v28 = vmul.f32 %v8605_v38, %v3992_v22  ;;  %v3501_v22 = vsub.f32 1.0, %v3500_v16  ;;  %v8709_v10 = vadd.f32 1.0, %v5486_v34  ;;  %v3523_v34 = vand.u32 2147483647, %v8663_v46 }
 0x31a   : > { %v4217_v55 = vpop.xlane.xlu0 %4216  ;;  %4921 = vmatmul.msk.f32.gmra.mxu2 %vm3682_vm15, %v3467_v31  ;;  %v3515_v31 = vmul.f32 %v8694_v14, %v8663_v46 }
 0x31b   : > { %v4260_v29 = vsel %vm4160_vm0, %v4129_v28, 0.0  ;;  %v4483_v36 = vperm.slane %v4217_v55, %v8169_v48  ;;  %v3502_v55 = vmul.f32 %v8669_v45, %v3501_v22  ;;  %5491 = vrcp.f32 %v8709_v10 }
 0x31c   : > { %4261 = vadd.xlane.f32.xlu0 %v4260_v29  ;;  %v3492_v29 = vsel %vm3491_vm14, %v8642_v3, %v3488_v44  ;;  %v3516_v3 = vsub.f32 1.0, %v3515_v31  ;;  %vm3506_vm14 = vmor %vm3504_vm3, %vm3505_vm12  ;;  %5493 = vpow2.f32 %v4865_v18  ;;  %v4866_v44 = vmul.f32 -1.442695, %v2443_v26 }
 0x31d   : > { %v4484_v13 = vsel %vm4426_vm13, %v4483_v36, %v4482_v52  ;;  %v3496_v36 = vor.u32 1.1754944e-38, %v3495_v12  ;;  %v3503_v0 = vadd.f32 %v8669_v45, %v3502_v55  ;;  %vm3520_vm12 = vweird.f32 %v8694_v14 }
 0x31e   : > { %vm3519_vm3 = vweird.f32 %v8663_v46 }
 0x31f   : > { %v3497_v53 = vsel %vm3494_vm8, %v3496_v36, %v3492_v29  ;;  %vm3509_vm8 = vcmp.eq.f32.partialorder %v3508_v43, 8.507059e+37 }
 0x321   : > { %v3994_v35 = vpop.f32.mrf.mxu2 }
 0x322   : > { %v3995_v52 = vadd.f32 %v8651_v47, %v3994_v35  ;;  %v4220_v61 = vpop.xlane.xlu1 %4219  ;;  %4922 = vmatmul.msk.f32.gmra.mxu2 %vm3682_vm15, %v3482_v42  ;;  %v3517_v42 = vmul.f32 %v8694_v14, %v3516_v3  ;;  %v2446_v3 = vadd.f32 %v8683_v25, %v8123_v60 }
 0x323   : > { %v4485_v56 = vperm.slane %v4220_v61, %v8187_v6 }
 0x324   : > { %v4130_v40 = vmul.f32 %v8605_v38, %v3995_v52  ;;  %v3507_v52 = vsel %vm3506_vm14, %v8669_v45, %v3503_v0  ;;  %v3518_v45 = vadd.f32 %v8694_v14, %v3517_v42  ;;  %vm3521_vm14 = vmor %vm3519_vm3, %vm3520_vm12  ;;  %vm3534_vm3 = vweird.f32 %v8688_v62 }
 0x325   : > { %v4486_v32 = vsel %vm4430_vm4, %v4485_v56, %v4484_v13  ;;  %v8714_v13 = vpop.eup %5487  ;;  %v3512_v22 = vsel %vm3509_vm8, %v3511_v59, %v3507_v52  ;;  %vm3524_vm8 = vcmp.eq.f32.partialorder %v3523_v34, 8.507059e+37  ;;  %v3538_v52 = vand.u32 2147483647, %v8688_v62 }
 0x326   : > { %v4263_v28 = vsel %vm4160_vm0, %v4130_v40, 0.0  ;;  %v5490_v35 = vpop.eup %5489  ;;  %v3530_v40 = vmul.f32 %v8714_v13, %v8688_v62  ;;  %v3522_v5 = vsel %vm3521_vm14, %v8694_v14, %v3518_v45  ;;  %vm3535_vm12 = vweird.f32 %v8714_v13 }
 0x327   : > { %4264 = vadd.xlane.f32.xlu1 %v4263_v28  ;;  %v8729_v61 = vadd.f32 1.0, %v5490_v35  ;;  %v8736_v28 = vpop.eup %5491  ;;  %vm3536_vm14 = vmor %vm3534_vm3, %vm3535_vm12  ;;  %vm3549_vm3 = vweird.f32 %v8709_v10 }
 0x328   : > { %v3531_v12 = vsub.f32 1.0, %v3530_v40  ;;  %v5494_v31 = vpop.eup %5493  ;;  %vm3550_vm12 = vweird.f32 %v8736_v28 }
 0x329   : > { %5495 = vrcp.f32 %v8729_v61 }
 0x32a   : > { %v4223_v4 = vpop.xlane.xlu2 %4222  ;;  %4923 = vmatmul.msk.f32.gmra.mxu2 %vm3682_vm15, %v3497_v53  ;;  %5497 = vpow2.f32 %v4866_v44  ;;  %v3532_v53 = vmul.f32 %v8714_v13, %v3531_v12 }
 0x32b   : > { %v4487_v27 = vperm.slane %v4223_v4, %v8209_v23  ;;  %v3545_v4 = vmul.f32 %v8736_v28, %v8709_v10 }
 0x32c   : > { %v3533_v35 = vadd.f32 %v8714_v13, %v3532_v53 }
 0x32d   : > { %v4488_v16 = vsel %vm4434_vm5, %v4487_v27, %v4486_v32  ;;  %v3997_v20 = vpop.f32.mrf.mxu2  ;;  %v3525_v32 = vand.u32 2147483648, %v8663_v46  ;;  %v8752_v27 = vadd.f32 1.0, %v5494_v31  ;;  %v3546_v26 = vsub.f32 1.0, %v3545_v4 }
 0x32e   : > { %v3998_v51 = vadd.f32 %v8651_v47, %v3997_v20  ;;  %v3540_v20 = vand.u32 2147483648, %v8688_v62  ;;  %v2449_v62 = vadd.f32 %v8683_v25, %v8157_v1  ;;  %v3555_v1 = vand.u32 2147483648, %v8709_v10 }
 0x32f   : > { %v3526_v0 = vor.u32 1.1754944e-38, %v3525_v32  ;;  %v8754_v18 = vpop.eup %5495  ;;  %5499 = vrcp.f32 %v8752_v27  ;;  %v3547_v44 = vmul.f32 %v8736_v28, %v3546_v26 }
 0x330   : > { %v4131_v8 = vmul.f32 %v8605_v38, %v3998_v51  ;;  %v4867_v51 = vmul.f32 -1.442695, %v2446_v3  ;;  %v4868_v31 = vmul.f32 -1.442695, %v2449_v62 }
 0x331   : > { %v3527_v24 = vsel %vm3524_vm8, %v3526_v0, %v3522_v5  ;;  %vm3539_vm8 = vcmp.eq.f32.partialorder %v3538_v52, 8.507059e+37  ;;  %v3548_v32 = vadd.f32 %v8736_v28, %v3547_v44  ;;  %v3570_v52 = vand.u32 2147483648, %v8729_v61 }
 0x332   : > { %v4226_v2 = vpop.xlane.xlu0 %4225  ;;  %4924 = vmatmul.msk.f32.gmra.mxu2 %vm3682_vm15, %v3512_v22  ;;  %v4266_v56 = vsel %vm4160_vm0, %v4131_v8, 0.0  ;;  %v3537_v8 = vsel %vm3536_vm14, %v8714_v13, %v3533_v35  ;;  %v3560_v22 = vmul.f32 %v8754_v18, %v8729_v61  ;;  %5501 = vpow2.f32 %v4867_v51 }
 0x333   : > { %v4489_v39 = vperm.slane %v4226_v2, %v8232_v30  ;;  %4267 = vadd.xlane.f32.xlu2 %v4266_v56  ;;  %v3541_v56 = vor.u32 1.1754944e-38, %v3540_v20  ;;  %vm9328_vm14 = vcmask 523712  }
 0x334   : > { %v3561_v34 = vsub.f32 1.0, %v3560_v22 }
 0x335   : > { %v4490_v29 = vsel %vm4438_vm10, %v4489_v39, %v4488_v16  ;;  %v4000_v55 = vpop.f32.mrf.mxu2  ;;  %v5498_v16 = vpop.eup %5497  ;;  %v3542_v12 = vsel %vm3539_vm8, %v3541_v56, %v3537_v8  ;;  %vm3551_vm8 = vmor %vm3549_vm3, %vm3550_vm12  ;;  %vm3565_vm12 = vweird.f32 %v8754_v18  ;;  %vm9329_vm3 = vcmask 589312  }
 0x336   : > { %v4001_v36 = vadd.f32 %v8651_v47, %v4000_v55  ;;  %v8771_v2 = vadd.f32 1.0, %v5498_v16  ;;  %v3552_v3 = vsel %vm3551_vm8, %v8736_v28, %v3548_v32 }
 0x338   : > { %v4132_v46 = vmul.f32 %v8605_v38, %v4001_v36  ;;  %5503 = vrcp.f32 %v8771_v2  ;;  %v3553_v36 = vand.u32 2147483647, %v8709_v10 }
 0x339   : > { %5505 = vpow2.f32 %v4868_v31 }
 0x33a   : > { %v4229_v43 = vpop.xlane.xlu1 %4228  ;;  %4925 = vmatmul.msk.f32.gmra.mxu2 %vm3682_vm15, %v3527_v24  ;;  %v4269_v14 = vsel %vm4160_vm0, %v4132_v46, 0.0  ;;  %v3562_v46 = vmul.f32 %v8754_v18, %v3561_v34 }
 0x33b   : > { %v4491_v60 = vperm.slane %v4229_v43, %v8251_v15  ;;  %4270 = vadd.xlane.f32.xlu0 %v4269_v14  ;;  %v3556_v43 = vor.u32 1.1754944e-38, %v3555_v1  ;;  %v2452_v14 = vadd.f32 %v8683_v25, %v8176_v19 }
 0x33c   : > { %v3563_v20 = vadd.f32 %v8754_v18, %v3562_v46 }
 0x33d   : > { %v4492_v42 = vsel %vm9157_vm1, %v4491_v60, %v4490_v29  ;;  %v4003_v40 = vpop.f32.mrf.mxu2  ;;  %v8780_v29 = vpop.eup %5499  ;;  %vm3554_vm1 = vcmp.eq.f32.partialorder %v3553_v36, 8.507059e+37 }
 0x33e   : > { %v4004_v59 = vadd.f32 %v8651_v47, %v4003_v40  ;;  %v5502_v4 = vpop.eup %5501  ;;  %v3575_v24 = vmul.f32 %v8780_v29, %v8752_v27  ;;  %v3557_v26 = vsel %vm3554_vm1, %v3556_v43, %v3552_v3  ;;  %vm3564_vm1 = vweird.f32 %v8729_v61 }
 0x33f   : > { %v8796_v35 = vadd.f32 1.0, %v5502_v4  ;;  %v8798_v16 = vpop.eup %5503  ;;  %v3568_v40 = vand.u32 2147483647, %v8729_v61  ;;  %v2455_v61 = vadd.f32 %v8683_v25, %v8205_v58  ;;  %v3585_v25 = vand.u32 2147483648, %v8752_v27 }
 0x340   : > { %v4133_v45 = vmul.f32 %v8605_v38, %v4004_v59  ;;  %v3576_v51 = vsub.f32 1.0, %v3575_v24  ;;  %v3590_v44 = vmul.f32 %v8798_v16, %v8771_v2  ;;  %v5506_v22 = vpop.eup %5505 }
 0x341   : > { %5507 = vrcp.f32 %v8796_v35  ;;  %vm3569_vm8 = vcmp.eq.f32.partialorder %v3568_v40, 8.507059e+37  ;;  %v4870_v36 = vmul.f32 -1.442695, %v2455_v61  ;;  %v3600_v40 = vand.u32 2147483648, %v8771_v2 }
 0x342   : > { %v4232_v39 = vpop.xlane.xlu2 %4231  ;;  %4926 = vmatmul.msk.f32.gmra.mxu2 %vm3682_vm15, %v3542_v12  ;;  %v4272_v13 = vsel %vm4160_vm0, %v4133_v45, 0.0  ;;  %v3577_v45 = vmul.f32 %v8780_v29, %v3576_v51  ;;  %v3571_v12 = vor.u32 1.1754944e-38, %v3570_v52  ;;  %v3591_v34 = vsub.f32 1.0, %v3590_v44 }
 0x343   : > { %v4493_v55 = vperm.slane %v4232_v39, %v8273_v50  ;;  %4273 = vadd.xlane.f32.xlu1 %v4272_v13  ;;  %v8818_v13 = vadd.f32 1.0, %v5506_v22 }
 0x345   : > { %v4494_v5 = vsel %vm9328_vm14, %v4493_v55, %v4492_v42  ;;  %v4006_v53 = vpop.f32.mrf.mxu2  ;;  %v4869_v42 = vmul.f32 -1.442695, %v2452_v14  ;;  %vm3566_vm14 = vmor %vm3564_vm1, %vm3565_vm12  ;;  %vm3580_vm12 = vweird.f32 %v8780_v29  ;;  %vm3579_vm1 = vweird.f32 %v8752_v27 }
 0x346   : > { %v4007_v0 = vadd.f32 %v8651_v47, %v4006_v53  ;;  %v3567_v62 = vsel %vm3566_vm14, %v8754_v18, %v3563_v20  ;;  %v3578_v18 = vadd.f32 %v8780_v29, %v3577_v45  ;;  %v3586_v14 = vor.u32 1.1754944e-38, %v3585_v25 }
 0x347   : > { %5509 = vpow2.f32 %v4869_v42  ;;  %v3572_v32 = vsel %vm3569_vm8, %v3571_v12, %v3567_v62  ;;  %v8824_v31 = vpop.eup %5507  ;;  %vm3595_vm8 = vweird.f32 %v8798_v16 }
 0x348   : > { %v4134_v10 = vmul.f32 %v8605_v38, %v4007_v0  ;;  %5511 = vrcp.f32 %v8818_v13  ;;  %v3592_v0 = vmul.f32 %v8798_v16, %v3591_v34  ;;  %v3605_v43 = vmul.f32 %v8824_v31, %v8796_v35 }
 0x349   : > { %5513 = vpow2.f32 %v4870_v36 }
 0x34a   : > { %v4235_v60 = vpop.xlane.xlu0 %4234  ;;  %4927 = vmatmul.msk.f32.gmra.mxu2 %vm3682_vm15, %v3557_v26  ;;  %v4275_v28 = vsel %vm4160_vm0, %v4134_v10, 0.0 }
 0x34b   : > { %v4495_v19 = vperm.slane %v4235_v60, %v8304_v41  ;;  %4276 = vadd.xlane.f32.xlu2 %v4275_v28  ;;  %v3593_v28 = vadd.f32 %v8798_v16, %v3592_v0 }
 0x34d   : > { %v4496_v59 = vsel %vm9329_vm3, %v4495_v19, %v4494_v5  ;;  %v4009_v8 = vpop.f32.mrf.mxu2  ;;  %v3583_v5 = vand.u32 2147483647, %v8752_v27  ;;  %vm3581_vm3 = vmor %vm3579_vm1, %vm3580_vm12  ;;  %v5510_v3 = vpop.eup %5509  ;;  %v3606_v19 = vsub.f32 1.0, %v3605_v43  ;;  %vm3594_vm12 = vweird.f32 %v8771_v2 }
 0x34e   : > { %v4010_v56 = vadd.f32 %v8651_v47, %v4009_v8  ;;  %v3582_v24 = vsel %vm3581_vm3, %v8780_v29, %v3578_v18  ;;  %v8838_v26 = vadd.f32 1.0, %v5510_v3  ;;  %v8845_v52 = vpop.eup %5511  ;;  %vm8850_vm1 = vmor %vm3594_vm12, %vm3595_vm8  ;;  %v3598_v8 = vand.u32 2147483647, %v8771_v2 }
 0x34f   : > { %vm3584_vm14 = vcmp.eq.f32.partialorder %v3583_v5, 8.507059e+37  ;;  %v5514_v62 = vpop.eup %5513  ;;  %v3607_v61 = vmul.f32 %v8824_v31, %v3606_v19  ;;  %v3601_v2 = vor.u32 1.1754944e-38, %v3600_v40  ;;  %v3615_v5 = vand.u32 2147483648, %v8796_v35 }
 0x350   : > { %v4135_v39 = vmul.f32 %v8605_v38, %v4010_v56  ;;  %v3587_v60 = vsel %vm3584_vm14, %v3586_v14, %v3582_v24  ;;  %5515 = vrcp.f32 %v8838_v26  ;;  %v3597_v56 = vsel %vm8850_vm1, %v8798_v16, %v3593_v28 }
 0x351   : > { %vm3599_vm3 = vcmp.eq.f32.partialorder %v3598_v8, 8.507059e+37  ;;  %vm3610_vm14 = vweird.f32 %v8824_v31  ;;  %vm9332_vm8 = vcmask 851712   ;;  %vm3609_vm12 = vweird.f32 %v8796_v35 }
 0x352   : > { %v4238_v55 = vpop.xlane.xlu1 %4237  ;;  %4928 = vmatmul.msk.f32.gmra.mxu2 %vm3682_vm15, %v3572_v32  ;;  %v4278_v1 = vsel %vm4160_vm0, %v4135_v39, 0.0  ;;  %v3620_v39 = vmul.f32 %v8845_v52, %v8818_v13  ;;  %vm3611_vm1 = vmor %vm3609_vm12, %vm3610_vm14  ;;  %v3616_v14 = vor.u32 1.1754944e-38, %v3615_v5  ;;  %vm3625_vm14 = vweird.f32 %v8845_v52 }
 0x353   : > { %v4497_v58 = vperm.slane %v4238_v55, %v8338_v37  ;;  %4279 = vadd.xlane.f32.xlu0 %v4278_v1  ;;  %v8866_v55 = vadd.f32 1.0, %v5514_v62  ;;  %v3602_v1 = vsel %vm3599_vm3, %v3601_v2, %v3597_v56  ;;  %vm3624_vm12 = vweird.f32 %v8818_v13 }
 0x354   : > { %v4244_v10 = vpop.xlane.xlu0 %4243  ;;  %v3621_v25 = vsub.f32 1.0, %v3620_v39  ;;  %v3645_v2 = vand.u32 2147483648, %v8838_v26 }
 0x355   : > { %v4498_v53 = vsel %vm4454_vm11, %v4497_v58, %v4496_v59  ;;  %v4012_v4 = vpop.f32.mrf.mxu2  ;;  %v4501_v51 = vperm.slane %v4244_v10, %v8386_v54  ;;  %v3608_v58 = vadd.f32 %v8824_v31, %v3607_v61  ;;  %5517 = vrcp.f32 %v8866_v55 }
 0x356   : > { %v4013_v46 = vadd.f32 %v8651_v47, %v4012_v4  ;;  %v8873_v36 = vpop.eup %5515  ;;  %v3613_v4 = vand.u32 2147483647, %v8796_v35  ;;  %v3622_v24 = vmul.f32 %v8845_v52, %v3621_v25  ;;  %v3646_v25 = vor.u32 1.1754944e-38, %v3645_v2 }
 0x357   : > { %v3635_v43 = vmul.f32 %v8873_v36, %v8838_v26 }
 0x358   : > { %v4136_v27 = vmul.f32 %v8605_v38, %v4013_v46  ;;  %v3612_v46 = vsel %vm3611_vm1, %v8824_v31, %v3608_v58  ;;  %vm3614_vm3 = vcmp.eq.f32.partialorder %v3613_v4, 8.507059e+37  ;;  %vm3626_vm1 = vmor %vm3624_vm12, %vm3625_vm14  ;;  %vm3640_vm14 = vweird.f32 %v8873_v36 }
 0x359   : > { %v3636_v31 = vsub.f32 1.0, %v3635_v43  ;;  %vm3639_vm12 = vweird.f32 %v8838_v26 }
 0x35a   : > { %v4241_v20 = vpop.xlane.xlu2 %4240  ;;  %4929 = vmatmul.msk.f32.gmra.mxu2 %vm3682_vm15, %v3587_v60  ;;  %v4281_v29 = vsel %vm4160_vm0, %v4136_v27, 0.0  ;;  %v3617_v60 = vsel %vm3614_vm3, %v3616_v14, %v3612_v46  ;;  %v3660_v46 = vand.u32 2147483648, %v8866_v55 }
 0x35b   : > { %v4499_v42 = vperm.slane %v4241_v20, %v8364_v9  ;;  %4282 = vadd.xlane.f32.xlu1 %v4281_v29  ;;  %v4247_v34 = vpop.xlane.xlu1 %4246  ;;  %v3623_v20 = vadd.f32 %v8845_v52, %v3622_v24  ;;  %v5518_v29 = vpop.eup %5517  ;;  %v3658_v24 = vand.u32 2147483647, %v8866_v55 }
 0x35c   : > { %v4503_v16 = vperm.slane %v4247_v34, %v8421_v33  ;;  %v3643_v34 = vand.u32 2147483647, %v8838_v26 }
 0x35d   : > { %v4500_v44 = vsel %vm4458_vm9, %v4499_v42, %v4498_v53  ;;  %v4015_v22 = vpop.f32.mrf.mxu2  ;;  %v3628_v42 = vand.u32 2147483647, %v8818_v13  ;;  %v3627_v8 = vsel %vm3626_vm1, %v8845_v52, %v3623_v20  ;;  %vm3641_vm1 = vmor %vm3639_vm12, %vm3640_vm14  ;;  %vm3655_vm14 = vweird.f32 %v5518_v29 }
 0x35e   : > { %v4016_v45 = vadd.f32 %v8651_v47, %v4015_v22  ;;  %v4502_v12 = vsel %vm9158_vm6, %v4501_v51, %v4500_v44  ;;  %v3630_v51 = vand.u32 2147483648, %v8818_v13  ;;  %v3637_v44 = vmul.f32 %v8873_v36, %v3636_v31 }
 0x35f   : > { %v4504_v53 = vsel %vm9332_vm8, %v4503_v16, %v4502_v12  ;;  %vm9333_vm8 = vcmask 917312   ;;  %v3650_v22 = vmul.f32 %v5518_v29, %v8866_v55  ;;  %vm3629_vm3 = vcmp.eq.f32.partialorder %v3628_v42, 8.507059e+37 }
 0x360   : > { %v4137_v32 = vmul.f32 %v8605_v38, %v4016_v45  ;;  %v3631_v56 = vor.u32 1.1754944e-38, %v3630_v51  ;;  %v3638_v39 = vadd.f32 %v8873_v36, %v3637_v44  ;;  %vm4573_vm6 = vcmask 1041409  }
 0x361   : > { %v3651_v52 = vsub.f32 1.0, %v3650_v22  ;;  %v4087_v44 = vrot.slane %v8594_v49, 3 }
 0x362   : > { %4930 = vmatmul.msk.f32.gmra.mxu2 %vm3682_vm15, %v3602_v1  ;;  %v4284_v18 = vsel %vm4160_vm0, %v4137_v32, 0.0  ;;  %v3632_v12 = vsel %vm3629_vm3, %v3631_v56, %v3627_v8  ;;  %vm3644_vm3 = vcmp.eq.f32.partialorder %v3643_v34, 8.507059e+37 }
 0x363   : > { %4285 = vadd.xlane.f32.xlu2 %v4284_v18  ;;  %v3642_v18 = vsel %vm3641_vm1, %v8873_v36, %v3638_v39  ;;  %v3652_v58 = vmul.f32 %v5518_v29, %v3651_v52  ;;  %vm3659_vm1 = vcmp.eq.f32.partialorder %v3658_v24, 8.507059e+37 }
 0x364   : > { %v3647_v4 = vsel %vm3644_vm3, %v3646_v25, %v3642_v18  ;;  %vm9338_vm3 = vcmask 786112  }
 0x365   : > { %v4018_v0 = vpop.f32.mrf.mxu2 }
 0x366   : > { %v4019_v3 = vadd.f32 %v8651_v47, %v4018_v0 }
 0x368   : > { %v4138_v27 = vmul.f32 %v8605_v38, %v4019_v3  ;;  %v4250_v10 = vpop.xlane.xlu2 %4249  ;;  %v3653_v3 = vadd.f32 %v5518_v29, %v3652_v58 }
 0x369   : > { %v4505_v35 = vperm.slane %v4250_v10, %v8468_v11 }
 0x36a   : > { %4931 = vmatmul.msk.f32.gmra.mxu2 %vm3682_vm15, %v3617_v60  ;;  %v4287_v28 = vsel %vm4160_vm0, %v4138_v27, 0.0  ;;  %v3661_v60 = vor.u32 1.1754944e-38, %v3660_v46 }
 0x36b   : > { %4288 = vadd.xlane.f32.xlu0 %v4287_v28  ;;  %v4506_v19 = vsel %vm9333_vm8, %v4505_v35, %v4504_v53  ;;  %vm9334_vm8 = vcmask 982912  }
 0x36d   : > { %v4021_v40 = vpop.f32.mrf.mxu2  ;;  %v4253_v45 = vpop.xlane.xlu0 %4252 }
 0x36e   : > { %v4022_v59 = vadd.f32 %v8651_v47, %v4021_v40  ;;  %v4507_v61 = vperm.slane %v4253_v45, %v8514_v17 }
 0x370   : > { %v4139_v62 = vmul.f32 %v8605_v38, %v4022_v59  ;;  %v4508_v32 = vsel %vm9334_vm8, %v4507_v61, %v4506_v19  ;;  %vm3654_vm8 = vweird.f32 %v8866_v55 }
 0x371   : > { %vm3656_vm12 = vmor %vm3654_vm8, %vm3655_vm14  ;;  %vm9339_vm14 = vcmask 851712   ;;  %vm9340_vm8 = vcmask 917312  }
 0x372   : > { %4932 = vmatmul.msk.f32.gmra.mxu2 %vm3682_vm15, %v3632_v12  ;;  %v4290_v13 = vsel %vm4160_vm0, %v4139_v62, 0.0  ;;  %v3657_v10 = vsel %vm3656_vm12, %v5518_v29, %v3653_v3  ;;  %v8938_v62 = vperm.slane %v4087_v44, 0 }
 0x373   : > { %4291 = vadd.xlane.f32.xlu1 %v4290_v13  ;;  %v3662_v28 = vsel %vm3659_vm1, %v3661_v60, %v3657_v10  ;;  %vm9346_vm1 = vmmov %vm9339_vm14 }
 0x375   : > { %v4024_v1 = vpop.f32.mrf.mxu2 }
 0x376   : > { %v4025_v16 = vadd.f32 %v8651_v47, %v4024_v1 }
 0x378   : > { %v4140_v5 = vmul.f32 %v8605_v38, %v4025_v16  ;;  %v4256_v53 = vpop.xlane.xlu1 %4255 }
 0x379   : > { %v4509_v0 = vperm.slane %v4256_v53, %v8553_v7 }
 0x37a   : > { %4933 = vmatmul.msk.f32.gmra.mxu2 %vm3682_vm15, %v3647_v4  ;;  %v4293_v26 = vsel %vm4160_vm0, %v4140_v5, 0.0 }
 0x37b   : > { %4294 = vadd.xlane.f32.xlu2 %v4293_v26  ;;  %v4510_v36 = vsel %vm4478_vm7, %v4509_v0, %v4508_v32 }
 0x37c   : > { %v8920_v43 = vsel %vm4573_vm6, %v4510_v36, %v8573_v63  ;;  %vm9337_vm6 = vcmask 589312  }
 0x37d   : > { %v4027_v14 = vpop.f32.mrf.mxu2  ;;  %vm9344_vm12 = vmmov %vm9337_vm6 }
 0x37e   : > { %v4028_v27 = vadd.f32 %v8651_v47, %v4027_v14 }
 0x380   : > { %v4141_v35 = vmul.f32 %v8605_v38, %v4028_v27 }
 0x382   : > { %4934 = vmatmul.msk.f32.gmra.mxu2 %vm3682_vm15, %v3662_v28  ;;  %v4296_v20 = vsel %vm4160_vm0, %v4141_v35, 0.0  ;;  %vm9335_vm15 = vcmask 458112  }
 0x383   : > { %4297 = vadd.xlane.f32.xlu0 %v4296_v20 }
 0x384   : > { %v4259_v19 = vpop.xlane.xlu2 %4258 }
 0x385   : > { %v4030_v31 = vpop.f32.mrf.mxu2  ;;  %v4511_v40 = vperm.slane %v4259_v19, %v8131_v21 }
 0x386   : > { %v4031_v55 = vadd.f32 %v8651_v47, %v4030_v31 }
 0x388   : > { %v4142_v63 = vmul.f32 %v8605_v38, %v4031_v55 }
 0x38a   : > { %v4299_v51 = vsel %vm4160_vm0, %v4142_v63, 0.0 }
 0x38b   : > { %4300 = vadd.xlane.f32.xlu2 %v4299_v51 }
 0x38d   : > { %v8929_v42 = vpop.f32.mrf.mxu2 }
 0x38f   : > { %v4262_v29 = vpop.xlane.xlu0 %4261 }
 0x390   : > { %v4512_v59 = vperm.slane %v4262_v29, %v8140_v57 }
 0x392   : > { %v8934_v8 = vsel %vm4422_vm2, %v4512_v59, %v4511_v40 }
 0x395   : > { %v4036_v22 = vpop.f32.mrf.mxu2 }
 0x396   : > { %v4037_v56 = vadd.f32 %v8651_v47, %v4036_v22 }
 0x398   : > { %v4144_v45 = vmul.f32 %v8938_v62, %v4037_v56 }
 0x39a   : > { %v4305_v12 = vsel %vm4160_vm0, %v4144_v45, 0.0 }
 0x39b   : > { %4306 = vadd.xlane.f32.xlu0 %v4305_v12 }
 0x39d   : > { %v4039_v61 = vpop.f32.mrf.mxu2 }
 0x39e   : > { %v4040_v13 = vadd.f32 %v8651_v47, %v4039_v61 }
 0x3a0   : > { %v4145_v39 = vmul.f32 %v8938_v62, %v4040_v13 }
 0x3a2   : > { %v4308_v52 = vsel %vm4160_vm0, %v4145_v39, 0.0 }
 0x3a3   : > { %4309 = vadd.xlane.f32.xlu1 %v4308_v52 }
 0x3a5   : > { %v4042_v2 = vpop.f32.mrf.mxu2 }
 0x3a6   : > { %v4043_v49 = vadd.f32 %v8651_v47, %v4042_v2 }
 0x3a8   : > { %v4146_v32 = vmul.f32 %v8938_v62, %v4043_v49  ;;  %v4034_v49 = vadd.f32 %v8651_v47, %v8929_v42 }
 0x3aa   : > { %v4311_v34 = vsel %vm4160_vm0, %v4146_v32, 0.0 }
 0x3ab   : > { %4312 = vadd.xlane.f32.xlu2 %v4311_v34 }
 0x3ad   : > { %v4045_v1 = vpop.f32.mrf.mxu2 }
 0x3ae   : > { %v4046_v16 = vadd.f32 %v8651_v47, %v4045_v1 }
 0x3b0   : > { %v4147_v18 = vmul.f32 %v8938_v62, %v4046_v16  ;;  %v4143_v16 = vmul.f32 %v8605_v38, %v4034_v49 }
 0x3b2   : > { %v4314_v58 = vsel %vm4160_vm0, %v4147_v18, 0.0  ;;  %v4081_v18 = vpop.f32.mrf.mxu3 }
 0x3b3   : > { %4315 = vadd.xlane.f32.xlu0 %v4314_v58 }
 0x3b5   : > { %v4048_v25 = vpop.f32.mrf.mxu2 }
 0x3b6   : > { %v4049_v5 = vadd.f32 %v8651_v47, %v4048_v25  ;;  %v4082_v25 = vadd.f32 %v8651_v47, %v4081_v18 }
 0x3b8   : > { %v4148_v53 = vmul.f32 %v8938_v62, %v4049_v5 }
 0x3ba   : > { %v4317_v4 = vsel %vm4160_vm0, %v4148_v53, 0.0  ;;  %v4302_v53 = vsel %vm4160_vm0, %v4143_v16, 0.0 }
 0x3bb   : > { %4318 = vadd.xlane.f32.xlu1 %v4317_v4 }
 0x3bd   : > { %v4051_v0 = vpop.f32.mrf.mxu2 }
 0x3be   : > { %v4052_v26 = vadd.f32 %v8651_v47, %v4051_v0  ;;  %v4159_v0 = vmul.f32 %v8938_v62, %v4082_v25 }
 0x3c0   : > { %v4149_v3 = vmul.f32 %v8938_v62, %v4052_v26  ;;  %v4350_v38 = vsel %vm4160_vm0, %v4159_v0, 0.0 }
 0x3c2   : > { %v4320_v46 = vsel %vm4160_vm0, %v4149_v3, 0.0 }
 0x3c3   : > { %4321 = vadd.xlane.f32.xlu2 %v4320_v46  ;;  %v4265_v46 = vpop.xlane.xlu1 %4264 }
 0x3c5   : > { %v4054_v36 = vpop.f32.mrf.mxu2 }
 0x3c6   : > { %v4055_v24 = vadd.f32 %v8651_v47, %v4054_v36  ;;  %v4268_v36 = vpop.xlane.xlu2 %4267 }
 0x3c8   : > { %v4150_v14 = vmul.f32 %v8938_v62, %v4055_v24  ;;  %v4271_v24 = vpop.xlane.xlu0 %4270 }
 0x3ca   : > { %v4323_v27 = vsel %vm4160_vm0, %v4150_v14, 0.0 }
 0x3cb   : > { %4324 = vadd.xlane.f32.xlu0 %v4323_v27  ;;  %v4274_v14 = vpop.xlane.xlu1 %4273 }
 0x3cd   : > { %v4057_v10 = vpop.f32.mrf.mxu2 }
 0x3ce   : > { %v4058_v60 = vadd.f32 %v8651_v47, %v4057_v10  ;;  %v4277_v27 = vpop.xlane.xlu2 %4276 }
 0x3d0   : > { %v4151_v35 = vmul.f32 %v8938_v62, %v4058_v60  ;;  %v4280_v10 = vpop.xlane.xlu0 %4279 }
 0x3d2   : > { %v4326_v28 = vsel %vm4160_vm0, %v4151_v35, 0.0 }
 0x3d3   : > { %4327 = vadd.xlane.f32.xlu1 %v4326_v28  ;;  %v4283_v60 = vpop.xlane.xlu1 %4282 }
 0x3d5   : > { %v4060_v20 = vpop.f32.mrf.mxu2 }
 0x3d6   : > { %v4061_v31 = vadd.f32 %v8651_v47, %v4060_v20  ;;  %v4286_v35 = vpop.xlane.xlu2 %4285 }
 0x3d7   : > { %v4528_v16 = vperm.slane %v4286_v35, %v8338_v37 }
 0x3d8   : > { %v4152_v55 = vmul.f32 %v8938_v62, %v4061_v31 }
 0x3da   : > { %v4329_v63 = vsel %vm4160_vm0, %v4152_v55, 0.0 }
 0x3db   : > { %4330 = vadd.xlane.f32.xlu2 %v4329_v63 }
 0x3dd   : > { %v4063_v51 = vpop.f32.mrf.mxu2 }
 0x3de   : > { %v4064_v19 = vadd.f32 %v8651_v47, %v4063_v51  ;;  %v4289_v28 = vpop.xlane.xlu0 %4288 }
 0x3e0   : > { %v4153_v29 = vmul.f32 %v8938_v62, %v4064_v19 }
 0x3e2   : > { %v4332_v40 = vsel %vm4160_vm0, %v4153_v29, 0.0 }
 0x3e3   : > { %4333 = vadd.xlane.f32.xlu0 %v4332_v40 }
 0x3e5   : > { %v4066_v59 = vpop.f32.mrf.mxu2 }
 0x3e6   : > { %v4067_v44 = vadd.f32 %v8651_v47, %v4066_v59 }
 0x3e8   : > { %v4154_v22 = vmul.f32 %v8938_v62, %v4067_v44 }
 0x3ea   : > { %v4335_v56 = vsel %vm4160_vm0, %v4154_v22, 0.0 }
 0x3eb   : > { %4336 = vadd.xlane.f32.xlu1 %v4335_v56  ;;  %v4514_v56 = vperm.slane %v4265_v46, %v8169_v48 }
 0x3ed   : > { %v4069_v45 = vpop.f32.mrf.mxu2 }
 0x3ee   : > { %v4070_v12 = vadd.f32 %v8651_v47, %v4069_v45  ;;  %v4295_v20 = vpop.xlane.xlu2 %4294  ;;  %v4516_v45 = vperm.slane %v4268_v36, %v8187_v6 }
 0x3ef   : > { %v4534_v0 = vperm.slane %v4295_v20, %v8421_v33 }
 0x3f0   : > { %v4155_v61 = vmul.f32 %v8938_v62, %v4070_v12  ;;  %v4518_v12 = vperm.slane %v4271_v24, %v8209_v23 }
 0x3f2   : > { %v4338_v13 = vsel %vm4160_vm0, %v4155_v61, 0.0  ;;  %v4520_v61 = vperm.slane %v4274_v14, %v8232_v30 }
 0x3f3   : > { %4339 = vadd.xlane.f32.xlu2 %v4338_v13  ;;  %v4515_v13 = vsel %vm4426_vm13, %v4514_v56, %v8934_v8  ;;  %v4530_v8 = vperm.slane %v4289_v28, %v8364_v9 }
 0x3f5   : > { %v4072_v39 = vpop.f32.mrf.mxu2 }
 0x3f6   : > { %v4073_v52 = vadd.f32 %v8651_v47, %v4072_v39  ;;  %v4298_v31 = vpop.xlane.xlu0 %4297  ;;  %v4522_v39 = vperm.slane %v4277_v27, %v8251_v15 }
 0x3f8   : > { %v4156_v2 = vmul.f32 %v8938_v62, %v4073_v52  ;;  %v4517_v52 = vsel %vm4430_vm4, %v4516_v45, %v4515_v13 }
 0x3f9   : > { %v4519_v49 = vsel %vm4434_vm5, %v4518_v12, %v4517_v52 }
 0x3fa   : > { %v4341_v32 = vsel %vm4160_vm0, %v4156_v2, 0.0  ;;  %v4524_v2 = vperm.slane %v4280_v10, %v8273_v50 }
 0x3fb   : > { %4342 = vadd.xlane.f32.xlu1 %v4341_v32  ;;  %v4526_v32 = vperm.slane %v4283_v60, %v8304_v41 }
 0x3fd   : > { %v4075_v34 = vpop.f32.mrf.mxu2 }
 0x3fe   : > { %v4076_v1 = vadd.f32 %v8651_v47, %v4075_v34 }
 0x400   : > { %v4157_v58 = vmul.f32 %v8938_v62, %v4076_v1  ;;  %v4521_v1 = vsel %vm4438_vm10, %v4520_v61, %v4519_v49 }
 0x401   : > { %v4523_v25 = vsel %vm9335_vm15, %v4522_v39, %v4521_v1 }
 0x402   : > { %v4344_v5 = vsel %vm4160_vm0, %v4157_v58, 0.0 }
 0x403   : > { %4345 = vadd.xlane.f32.xlu0 %v4344_v5  ;;  %4303 = vadd.xlane.f32.xlu1 %v4302_v53 }
 0x405   : > { %v4078_v42 = vpop.f32.mrf.mxu2 }
 0x406   : > { %v4079_v4 = vadd.f32 %v8651_v47, %v4078_v42  ;;  %v4292_v47 = vpop.xlane.xlu1 %4291 }
 0x407   : > { %v4532_v53 = vperm.slane %v4292_v47, %v8386_v54 }
 0x408   : > { %v4158_v26 = vmul.f32 %v8938_v62, %v4079_v4  ;;  %v4301_v62 = vpop.xlane.xlu2 %4300 }
 0x409   : > { %v4538_v27 = vperm.slane %v4301_v62, %v8514_v17 }
 0x40a   : > { %v4347_v3 = vsel %vm4160_vm0, %v4158_v26, 0.0  ;;  %vm9336_vm0 = vcmask 523712  }
 0x40b   : > { %4351 = vadd.xlane.f32.xlu0 %v4350_v38  ;;  %4348 = vadd.xlane.f32.xlu2 %v4347_v3  ;;  %v4525_v5 = vsel %vm9336_vm0, %v4524_v2, %v4523_v25  ;;  %v4536_v3 = vperm.slane %v4298_v31, %v8468_v11 }
 0x40c   : > { %v4527_v4 = vsel %vm9337_vm6, %v4526_v32, %v4525_v5 }
 0x40d   : > { %v4529_v38 = vsel %vm4454_vm11, %v4528_v16, %v4527_v4 }
 0x40e   : > { %v4307_v63 = vpop.xlane.xlu0 %4306  ;;  %v4531_v24 = vsel %vm4458_vm9, %v4530_v8, %v4529_v38 }
 0x40f   : > { %v4542_v46 = vperm.slane %v4307_v63, %v8131_v21 }
 0x416   : > { %v4310_v55 = vpop.xlane.xlu1 %4309 }
 0x417   : > { %v4543_v42 = vperm.slane %v4310_v55, %v8140_v57  ;;  %v4533_v57 = vsel %vm9338_vm3, %v4532_v53, %v4531_v24 }
 0x418   : > { %v4535_v60 = vsel %vm9339_vm14, %v4534_v0, %v4533_v57 }
 0x419   : > { %v4544_v10 = vsel %vm4422_vm2, %v4543_v42, %v4542_v46  ;;  %v4537_v28 = vsel %vm9340_vm8, %v4536_v3, %v4535_v60  ;;  %vm4575_vm2 = vcmask 1042434  }
 0x41e   : > { %v4313_v19 = vpop.xlane.xlu2 %4312 }
 0x41f   : > { %v4545_v26 = vperm.slane %v4313_v19, %v8169_v48 }
 0x421   : > { %v4546_v35 = vsel %vm4426_vm13, %v4545_v26, %v4544_v10  ;;  %vm9341_vm13 = vcmask 982912  }
 0x426   : > { %v4316_v29 = vpop.xlane.xlu0 %4315 }
 0x427   : > { %v4547_v36 = vperm.slane %v4316_v29, %v8187_v6 }
 0x42e   : > { %v4319_v51 = vpop.xlane.xlu1 %4318 }
 0x42f   : > { %v4549_v14 = vperm.slane %v4319_v51, %v8209_v23  ;;  %v4548_v23 = vsel %vm4430_vm4, %v4547_v36, %v4546_v35  ;;  %vm9342_vm4 = vmmov %vm9335_vm15  ;;  %vm4577_vm15 = vcmask 1043459  }
 0x436   : > { %v4322_v59 = vpop.xlane.xlu2 %4321 }
 0x437   : > { %v4551_v48 = vperm.slane %v4322_v59, %v8232_v30  ;;  %v4550_v30 = vsel %vm4434_vm5, %v4549_v14, %v4548_v23  ;;  %vm9343_vm5 = vmmov %vm9336_vm0 }
 0x438   : > { %vm9348_vm0 = vmmov %vm9341_vm13 }
 0x439   : > { %v4552_v63 = vsel %vm4438_vm10, %v4551_v48, %v4550_v30  ;;  %vm9345_vm10 = vmmov %vm9338_vm3 }
 0x43e   : > { %v4325_v44 = vpop.xlane.xlu0 %4324 }
 0x43f   : > { %v4553_v21 = vperm.slane %v4325_v44, %v8251_v15  ;;  %v4539_v15 = vsel %vm9341_vm13, %v4538_v27, %v4537_v28 }
 0x441   : > { %v4554_v19 = vsel %vm9342_vm4, %v4553_v21, %v4552_v63 }
 0x446   : > { %v4328_v40 = vpop.xlane.xlu1 %4327 }
 0x447   : > { %v4555_v47 = vperm.slane %v4328_v40, %v8273_v50 }
 0x44e   : > { %v4331_v34 = vpop.xlane.xlu2 %4330 }
 0x44f   : > { %v4557_v55 = vperm.slane %v4331_v34, %v8304_v41  ;;  %v4556_v41 = vsel %vm9343_vm5, %v4555_v47, %v4554_v19 }
 0x451   : > { %v4558_v44 = vsel %vm9344_vm12, %v4557_v55, %v4556_v41 }
 0x456   : > { %v4334_v18 = vpop.xlane.xlu0 %4333 }
 0x457   : > { %v4559_v51 = vperm.slane %v4334_v18, %v8338_v37 }
 0x459   : > { %v4560_v56 = vsel %vm4454_vm11, %v4559_v51, %v4558_v44  ;;  %vm9347_vm11 = vmmov %vm9340_vm8 }
 0x45e   : > { %v8991_v22 = vpop.xlane.xlu1 %4336 }
 0x45f   : > { %v4561_v50 = vperm.slane %v8991_v22, %v8364_v9 }
 0x461   : > { %v4562_v9 = vsel %vm4458_vm9, %v4561_v50, %v4560_v56 }
 0x466   : > { %v4340_v6 = vpop.xlane.xlu2 %4339 }
 0x467   : > { %v4563_v40 = vperm.slane %v4340_v6, %v8386_v54 }
 0x469   : > { %v4564_v22 = vsel %vm9345_vm10, %v4563_v40, %v4562_v9 }
 0x46e   : > { %v4343_v58 = vpop.xlane.xlu1 %4342 }
 0x46f   : > { %v4565_v37 = vperm.slane %v4343_v58, %v8421_v33 }
 0x476   : > { %v4346_v20 = vpop.xlane.xlu0 %4345  ;;  %v4304_v31 = vpop.xlane.xlu1 %4303 }
 0x477   : > { %v4540_v62 = vperm.slane %v4304_v31, %v8553_v7  ;;  %v4567_v45 = vperm.slane %v4346_v20, %v8468_v11 }
 0x479   : > { %v4541_v29 = vsel %vm4478_vm7, %v4540_v62, %v4539_v15 }
 0x47a   : > { %v4576_v59 = vsel %vm4575_vm2, %v4541_v29, %v8920_v43  ;;  %v4566_v43 = vsel %vm9346_vm1, %v4565_v37, %v4564_v22 }
 0x47b   : > { %v4568_v11 = vsel %vm9347_vm11, %v4567_v45, %v4566_v43 }
 0x47e   : > { %v4352_v12 = vpop.xlane.xlu0 %4351  ;;  %v4349_v54 = vpop.xlane.xlu2 %4348 }
 0x47f   : > { %v4571_v61 = vperm.slane %v4352_v12, %v8553_v7  ;;  %v4569_v33 = vperm.slane %v4349_v54, %v8514_v17 }
 0x481   : > { %v4570_v13 = vsel %vm9348_vm0, %v4569_v33, %v4568_v11 }
 0x482   : > { %v4572_v39 = vsel %vm4478_vm7, %v4571_v61, %v4570_v13 }
 0x483   : > { %v4578_v52 = vsel %vm4577_vm15, %v4572_v39, %v4576_v59 }
 0x484   : > { %4580 = vst [vmem:[%s299_s9] sm:$0xf] %v4578_v52 }
 0x485   : > { %5554 = shalt.err (!%p5551_p3)
}
 0x486   : > { %4949 = dma.vmem_to_hbm [thread:$0]  (%p5678_p5), %s4595_s10, 64, %s4597_s12, %s4582_s13  }
 0x487 PF: > { %p4955_p4 = scmp.ge.s32.totalorder %s5589_s30, 2  ;;  %s4608_s21 = sand.u32 1, %s5577_s27  }
 0x488   : > { %s4609_s25 = scalar_lea.sflag [#allocation3], %s4608_s21 }
 0x489   : > { %p4952_p7 = pnand %p4955_p4, %p5682_p6 }
 0x48b   : > { %p4953_p8 = pneg %p4952_p7 }
 0x48d   : > { %5572 = dma.done.wait (%p4953_p8), %s4609_s25, 64  }
 0x48e   : > { %5574 = vsyncadd (%p4953_p8), %s4609_s25, 4294967232  ;;  %p18_p9 = scmp.ge.s32.totalorder %s5665_s11, 4   ;;  %s9349_s27 = smov %s5581_s28 }
 0x48f   : > { %s9350_s28 = smov %s5585_s29  ;;  %s9351_s29 = smov %s5676_s14 }
 0x490   : > { %s9352_s30 = smov %s5665_s11  ;;  %20 = sbr.rel (!%p18_p9) target bundleno = 3 (0x3), region = 87 }
 0x495   :  { %4615 = vsyncpa [#allocation3], 1 }
 0x496   :  { %4617 = vsyncpa [#allocation3 + $0x1], 1 }

</bundles_post_ra>
